<compile_context>
chip_gen: v6e
topology: v6e:2x2x1
jax: 0.10.0
libtpu: 0.0.40
codegen_flags: <defaults>
</compile_context>

<pallas_src>
import functools
import math

import jax
import jax.numpy as jnp
from jax.experimental import pallas as pl
from jax.experimental.pallas import tpu as pltpu

CFG = dict(vocab=64, max_pos=32, hidden=128, heads=4, layers=2, ffn=512,
           eps=1e-12, num_labels=3)

HEAD_PAD = 128     # lane-dense padding for the 3-way classification head


# ---------------------------- in-kernel helpers ----------------------------

def _ln(x, g, b, eps):
    """LayerNorm over the last dim, f32 statistics."""
    mu = jnp.mean(x, axis=-1, keepdims=True)
    xc = x - mu
    var = jnp.mean(xc * xc, axis=-1, keepdims=True)
    return xc * jax.lax.rsqrt(var + eps) * g + b


# ---------------------------- Pallas kernels ----------------------------

def _emb_ln_kernel(x_ref, g_ref, b_ref, o_ref, *, eps):
    o_ref[...] = _ln(x_ref[...], g_ref[...], b_ref[...], eps)


def emb_layernorm(x2d, gamma, beta, eps, B, S):
    H = x2d.shape[1]
    return pl.pallas_call(
        functools.partial(_emb_ln_kernel, eps=eps),
        out_shape=jax.ShapeDtypeStruct(x2d.shape, jnp.float32),
        grid=(B,),
        in_specs=[pl.BlockSpec((S, H), lambda b: (b, 0)),
                  pl.BlockSpec((1, H), lambda b: (0, 0)),
                  pl.BlockSpec((1, H), lambda b: (0, 0))],
        out_specs=pl.BlockSpec((S, H), lambda b: (b, 0)),
        compiler_params=pltpu.CompilerParams(dimension_semantics=("parallel",)),
    )(x2d, gamma, beta)


def _layer_kernel(x_ref, bias_ref,
                  wqkv_ref, bqkv_ref, wo_ref, bo_ref, ln1g_ref, ln1b_ref,
                  w1_ref, b1_ref, w2_ref, b2_ref, ln2g_ref, ln2b_ref,
                  o_ref, *, nh, dh, scale, eps):
    """Fully fused BERT encoder layer for ONE batch element (grid step).

    x_ref : (S, H) f32 activation block, resident in VMEM for the whole layer.
    """
    x = x_ref[...]                                   # (S, H) f32
    H = x.shape[1]
    bias = bias_ref[0]                               # (1, S) additive padding mask

    # ---- fused QKV projection: one MXU pass with N = 3H -------------------
    qkv = jnp.dot(x.astype(jnp.bfloat16), wqkv_ref[...],
                  preferred_element_type=jnp.float32) + bqkv_ref[...]      # (S, 3H)

    # ---- all heads inside the kernel (static unrolled loop) ---------------
    # cat(ctx_h) @ Wo  ==  sum_h ctx_h @ Wo[h*dh:(h+1)*dh, :]  -> no lane concat.
    attn_out = jnp.zeros_like(x)
    for h in range(nh):
        q = qkv[:, h * dh:(h + 1) * dh].astype(jnp.bfloat16)               # (S, dh)
        k = qkv[:, H + h * dh:H + (h + 1) * dh].astype(jnp.bfloat16)
        v = qkv[:, 2 * H + h * dh:2 * H + (h + 1) * dh].astype(jnp.bfloat16)
        # scores = q @ k^T (contract head_dim, no explicit transpose)
        s = jax.lax.dot_general(q, k, (((1,), (1,)), ((), ())),
                                preferred_element_type=jnp.float32) * scale
        s = s + bias                                                        # (S, S)
        m = jnp.max(s, axis=-1, keepdims=True)
        p = jnp.exp(s - m)
        p = p * pl.reciprocal(jnp.sum(p, axis=-1, keepdims=True), approx=True)
        ctx_h = jnp.dot(p.astype(jnp.bfloat16), v,
                        preferred_element_type=jnp.float32)                 # (S, dh)
        attn_out = attn_out + jnp.dot(ctx_h.astype(jnp.bfloat16),
                                      wo_ref[h * dh:(h + 1) * dh, :],
                                      preferred_element_type=jnp.float32)
    attn_out = attn_out + bo_ref[...]

    # ---- post-attention LayerNorm (+ residual, f32) ------------------------
    x = _ln(attn_out + x, ln1g_ref[...], ln1b_ref[...], eps)

    # ---- feed-forward -------------------------------------------------------
    ff = jnp.dot(x.astype(jnp.bfloat16), w1_ref[...],
                 preferred_element_type=jnp.float32) + b1_ref[...]          # (S, F)
    # TODO(synk): HF BERT uses exact erf GELU; tanh approximation kept (f32 VPU/EUP path).
    ff = jax.nn.gelu(ff, approximate=True)
    ff = jnp.dot(ff.astype(jnp.bfloat16), w2_ref[...],
                 preferred_element_type=jnp.float32) + b2_ref[...]          # (S, H)

    # ---- post-FFN LayerNorm (+ residual) ------------------------------------
    o_ref[...] = _ln(ff + x, ln2g_ref[...], ln2b_ref[...], eps)


def transformer_layer(x2d, bias, lyr, *, nh, dh, scale, eps, B, S, H, F):
    full = lambda shape: pl.BlockSpec(shape, lambda b: tuple(0 for _ in shape))
    return pl.pallas_call(
        functools.partial(_layer_kernel, nh=nh, dh=dh, scale=scale, eps=eps),
        out_shape=jax.ShapeDtypeStruct((B * S, H), jnp.float32),
        grid=(B,),
        in_specs=[
            pl.BlockSpec((S, H), lambda b: (b, 0)),        # x (per-batch block)
            pl.BlockSpec((1, 1, S), lambda b: (b, 0, 0)),  # additive attention mask
            full((H, 3 * H)),                              # wqkv (bf16)
            full((1, 3 * H)),                              # bqkv
            full((H, H)),                                  # wo   (bf16)
            full((1, H)),                                  # bo
            full((1, H)), full((1, H)),                    # ln1 gamma / beta
            full((H, F)),                                  # w1   (bf16)
            full((1, F)),                                  # b1
            full((F, H)),                                  # w2   (bf16)
            full((1, H)),                                  # b2
            full((1, H)), full((1, H)),                    # ln2 gamma / beta
        ],
        out_specs=pl.BlockSpec((S, H), lambda b: (b, 0)),
        compiler_params=pltpu.CompilerParams(dimension_semantics=("parallel",)),
    )(x2d, bias,
      lyr["wqkv"], lyr["bqkv"], lyr["wo"], lyr["bo"],
      lyr["ln1_g"], lyr["ln1_b"],
      lyr["w1"], lyr["b1"], lyr["w2"], lyr["b2"],
      lyr["ln2_g"], lyr["ln2_b"])


def _head_kernel(s_ref, w_ref, b_ref, o_ref):
    # (B, 2H) @ (2H, 128)  -- output padded to a lane-dense 128 columns.
    o_ref[...] = (jnp.dot(s_ref[...].astype(jnp.bfloat16), w_ref[...],
                          preferred_element_type=jnp.float32) + b_ref[...])


def dense_head(state, w_pad, b_pad, num_labels):
    B, K = state.shape
    N = w_pad.shape[1]
    out = pl.pallas_call(
        _head_kernel,
        out_shape=jax.ShapeDtypeStruct((B, N), jnp.float32),
        grid=(1,),
        in_specs=[pl.BlockSpec((B, K), lambda i: (0, 0)),
                  pl.BlockSpec((K, N), lambda i: (0, 0)),
                  pl.BlockSpec((1, N), lambda i: (0, 0))],
        out_specs=pl.BlockSpec((B, N), lambda i: (0, 0)),
    )(state, w_pad, b_pad)
    return out[:, :num_labels]


# ---------------------------- parameters ----------------------------

def init_params(key, cfg):
    h, ffn, nl = cfg["hidden"], cfg["ffn"], cfg["num_labels"]

    def nrm(k, shape, dtype=jnp.float32):
        return (0.02 * jax.random.normal(k, shape, jnp.float32)).astype(dtype)

    keys = iter(jax.random.split(key, 4 + 4 * cfg["layers"]))

    dense_w = nrm(next(keys), (2 * h, nl))                       # nn.Linear(2*hidden, 3)
    dense_w_pad = jnp.zeros((2 * h, HEAD_PAD), jnp.float32).at[:, :nl].set(dense_w)

    params = dict(
        word_emb=nrm(next(keys), (cfg["vocab"], h)),
        pos_emb=nrm(next(keys), (cfg["max_pos"], h)),
        type_emb=nrm(next(keys), (2, h)),
        emb_ln_g=jnp.ones((1, h), jnp.float32),
        emb_ln_b=jnp.zeros((1, h), jnp.float32),
        dense_w_pad=dense_w_pad.astype(jnp.bfloat16),
        dense_b_pad=jnp.zeros((1, HEAD_PAD), jnp.float32),
        layers=[],
    )
    for _ in range(cfg["layers"]):
        params["layers"].append(dict(
            wqkv=nrm(next(keys), (h, 3 * h), jnp.bfloat16),      # fused Wq|Wk|Wv
            bqkv=jnp.zeros((1, 3 * h), jnp.float32),
            wo=nrm(next(keys), (h, h), jnp.bfloat16),
            bo=jnp.zeros((1, h), jnp.float32),
            ln1_g=jnp.ones((1, h), jnp.float32),
            ln1_b=jnp.zeros((1, h), jnp.float32),
            w1=nrm(next(keys), (h, ffn), jnp.bfloat16),
            b1=jnp.zeros((1, ffn), jnp.float32),
            w2=nrm(next(keys), (ffn, h), jnp.bfloat16),
            b2=jnp.zeros((1, h), jnp.float32),
            ln2_g=jnp.ones((1, h), jnp.float32),
            ln2_b=jnp.zeros((1, h), jnp.float32),
        ))
    return params


# ---------------------------- forward pass ----------------------------

def prompt_bert_forward(params, input_ids, attention_mask, index_mask, cfg):
    B, S = input_ids.shape
    H, nh = cfg["hidden"], cfg["heads"]
    dh = H // nh
    eps = cfg["eps"]

    # --- BertEmbeddings (gathers are plain-JAX glue; LayerNorm is a Pallas kernel) ---
    tok = jnp.take(params["word_emb"], input_ids, axis=0)            # (B,S,H)
    pos = params["pos_emb"][:S][None, :, :]                          # (1,S,H)
    typ = params["type_emb"][0][None, None, :]                       # token_type_ids = 0
    emb = (tok + pos + typ).reshape(B * S, H)
    x = emb_layernorm(emb, params["emb_ln_g"], params["emb_ln_b"], eps, B, S)
    # TODO(synk): embedding / hidden / attention dropouts skipped (inference mode).

    # additive attention mask, one row per batch element: (B, 1, S)
    bias = ((1.0 - attention_mask.astype(jnp.float32)) * -10000.0).reshape(B, 1, S)

    scale = 1.0 / math.sqrt(dh)
    for lyr in params["layers"]:
        x = transformer_layer(x, bias, lyr, nh=nh, dh=dh, scale=scale, eps=eps,
                              B=B, S=S, H=H, F=cfg["ffn"])

    # --- get_rep_cls_and_mask + cat + dropout(identity) + dense head ---
    rows = jnp.arange(B, dtype=jnp.int32) * S
    cls_state = x[rows]                                              # hidden at [CLS] (pos 0)
    mask_pos = jnp.argmax(index_mask, axis=1).astype(jnp.int32)      # index_mask is one-hot
    mask_state = x[rows + mask_pos]                                  # hidden at index_mask==1
    state = jnp.concatenate([cls_state, mask_state], axis=1)         # (B, 2H)
    # TODO(synk): nn.Dropout(p=0.1) is identity at inference time.
    logits = dense_head(state, params["dense_w_pad"], params["dense_b_pad"],
                        cfg["num_labels"])
    return logits


# ---------------------------- main ----------------------------

if __name__ == "__main__":
    cfg = CFG
    key = jax.random.PRNGKey(0)
    pkey, ikey = jax.random.split(key)
    params = init_params(pkey, cfg)

    B, S = 2, 16
    input_ids = jax.random.randint(ikey, (B, S), 0, cfg["vocab"], dtype=jnp.int32)
    attention_mask = jnp.ones((B, S), jnp.int32).at[1, 12:].set(0)   # sample 1 has padding
    index_mask = jnp.zeros((B, S), jnp.float32).at[0, 3].set(1.0).at[1, 5].set(1.0)

    fwd = jax.jit(functools.partial(prompt_bert_forward, cfg=cfg))
    logits = fwd(params, input_ids, attention_mask, index_mask)
    jax.block_until_ready(logits)

    assert logits.shape == (B, cfg["num_labels"]), logits.shape
    assert bool(jnp.all(jnp.isfinite(logits)))
    print("KERNEL_OK")
</pallas_src>

<mosaic_0001>
module attributes {stable_mosaic.version = 11 : i64} {
  func.func @_emb_ln_kernel(%arg0: i32, %arg1: memref<16x128xf32, #tpu.memory_space<vmem>>, %arg2: memref<1x128xf32, #tpu.memory_space<vmem>>, %arg3: memref<1x128xf32, #tpu.memory_space<vmem>>, %arg4: memref<16x128xf32, #tpu.memory_space<vmem>>) attributes {dimension_semantics = [#tpu.dimension_semantics<parallel>], iteration_bounds = array<i64: 2>, scalar_prefetch = 0 : i64, scratch_operands = 0 : i64, tpu.core_type = #tpu.core_type<tc>, window_params = [{transform_indices = @transform_0, window_bounds = array<i64: 16, 128>}, {pipeline_mode = #tpu.pipeline_mode<synchronous>, transform_indices = @transform_1, window_bounds = array<i64: 1, 128>}, {pipeline_mode = #tpu.pipeline_mode<synchronous>, transform_indices = @transform_2, window_bounds = array<i64: 1, 128>}, {transform_indices = @transform_3, window_bounds = array<i64: 16, 128>}]} {
    %c0 = arith.constant 0 : index
    %c0_0 = arith.constant 0 : index
    %0 = vector.load %arg1[%c0, %c0_0] : memref<16x128xf32, #tpu.memory_space<vmem>>, vector<16x128xf32>
    %c0_1 = arith.constant 0 : index
    %c0_2 = arith.constant 0 : index
    %1 = vector.load %arg2[%c0_1, %c0_2] : memref<1x128xf32, #tpu.memory_space<vmem>>, vector<1x128xf32>
    %c0_3 = arith.constant 0 : index
    %c0_4 = arith.constant 0 : index
    %2 = vector.load %arg3[%c0_3, %c0_4] : memref<1x128xf32, #tpu.memory_space<vmem>>, vector<1x128xf32>
    %cst = arith.constant dense<0.000000e+00> : vector<16xf32>
    %3 = vector.multi_reduction <add>, %0, %cst [1] : vector<16x128xf32> to vector<16xf32>
    %4 = vector.shape_cast %3 : vector<16xf32> to vector<16x1xf32>
    %cst_5 = arith.constant 1.280000e+02 : f32
    %5 = vector.broadcast %cst_5 : f32 to vector<16x1xf32>
    %6 = arith.divf %4, %5 : vector<16x1xf32>
    %7 = vector.broadcast %6 : vector<16x1xf32> to vector<16x128xf32>
    %8 = arith.subf %0, %7 : vector<16x128xf32>
    %9 = arith.mulf %8, %8 : vector<16x128xf32>
    %cst_6 = arith.constant dense<0.000000e+00> : vector<16xf32>
    %10 = vector.multi_reduction <add>, %9, %cst_6 [1] : vector<16x128xf32> to vector<16xf32>
    %11 = vector.shape_cast %10 : vector<16xf32> to vector<16x1xf32>
    %cst_7 = arith.constant 1.280000e+02 : f32
    %12 = vector.broadcast %cst_7 : f32 to vector<16x1xf32>
    %13 = arith.divf %11, %12 : vector<16x1xf32>
    %cst_8 = arith.constant 9.99999996E-13 : f32
    %14 = vector.broadcast %cst_8 : f32 to vector<16x1xf32>
    %15 = arith.addf %13, %14 : vector<16x1xf32>
    %16 = math.rsqrt %15 : vector<16x1xf32>
    %17 = vector.broadcast %16 : vector<16x1xf32> to vector<16x128xf32>
    %18 = arith.mulf %8, %17 : vector<16x128xf32>
    %19 = vector.broadcast %1 : vector<1x128xf32> to vector<16x128xf32>
    %20 = arith.mulf %18, %19 : vector<16x128xf32>
    %21 = vector.broadcast %2 : vector<1x128xf32> to vector<16x128xf32>
    %22 = arith.addf %20, %21 : vector<16x128xf32>
    %c0_9 = arith.constant 0 : index
    %c0_10 = arith.constant 0 : index
    %23 = vector.load %arg4[%c0_9, %c0_10] : memref<16x128xf32, #tpu.memory_space<vmem>>, vector<16x128xf32>
    tpu.vector_store %arg4[%c0_9, %c0_10], %22 {strides = array<i32>} : memref<16x128xf32, #tpu.memory_space<vmem>>, vector<16x128xf32>,
    return
  }
  func.func @transform_0(%arg0: i32) -> (i32, i32) {
    %c0_i32 = arith.constant 0 : i32
    %c0_i32_0 = arith.constant 0 : i32
    return %arg0, %c0_i32 : i32, i32
  }
  func.func @transform_1(%arg0: i32) -> (i32, i32) {
    %c0_i32 = arith.constant 0 : i32
    %c0_i32_0 = arith.constant 0 : i32
    %c0_i32_1 = arith.constant 0 : i32
    return %c0_i32, %c0_i32_0 : i32, i32
  }
  func.func @transform_2(%arg0: i32) -> (i32, i32) {
    %c0_i32 = arith.constant 0 : i32
    %c0_i32_0 = arith.constant 0 : i32
    %c0_i32_1 = arith.constant 0 : i32
    return %c0_i32, %c0_i32_0 : i32, i32
  }
  func.func @transform_3(%arg0: i32) -> (i32, i32) {
    %c0_i32 = arith.constant 0 : i32
    %c0_i32_0 = arith.constant 0 : i32
    return %arg0, %c0_i32 : i32, i32
  }
}

module attributes {stable_mosaic.version = 11 : i64} {
  func.func @_layer_kernel(%arg0: i32, %arg1: memref<16x128xf32, #tpu.memory_space<vmem>>, %arg2: memref<1x1x16xf32, #tpu.memory_space<vmem>>, %arg3: memref<128x384xbf16, #tpu.memory_space<vmem>>, %arg4: memref<1x384xf32, #tpu.memory_space<vmem>>, %arg5: memref<128x128xbf16, #tpu.memory_space<vmem>>, %arg6: memref<1x128xf32, #tpu.memory_space<vmem>>, %arg7: memref<1x128xf32, #tpu.memory_space<vmem>>, %arg8: memref<1x128xf32, #tpu.memory_space<vmem>>, %arg9: memref<128x512xbf16, #tpu.memory_space<vmem>>, %arg10: memref<1x512xf32, #tpu.memory_space<vmem>>, %arg11: memref<512x128xbf16, #tpu.memory_space<vmem>>, %arg12: memref<1x128xf32, #tpu.memory_space<vmem>>, %arg13: memref<1x128xf32, #tpu.memory_space<vmem>>, %arg14: memref<1x128xf32, #tpu.memory_space<vmem>>, %arg15: memref<16x128xf32, #tpu.memory_space<vmem>>) attributes {dimension_semantics = [#tpu.dimension_semantics<parallel>], iteration_bounds = array<i64: 2>, scalar_prefetch = 0 : i64, scratch_operands = 0 : i64, tpu.core_type = #tpu.core_type<tc>, window_params = [{transform_indices = @transform_0, window_bounds = array<i64: 16, 128>}, {transform_indices = @transform_1, window_bounds = array<i64: 1, 1, 16>}, {pipeline_mode = #tpu.pipeline_mode<synchronous>, transform_indices = @transform_2, window_bounds = array<i64: 128, 384>}, {pipeline_mode = #tpu.pipeline_mode<synchronous>, transform_indices = @transform_3, window_bounds = array<i64: 1, 384>}, {pipeline_mode = #tpu.pipeline_mode<synchronous>, transform_indices = @transform_4, window_bounds = array<i64: 128, 128>}, {pipeline_mode = #tpu.pipeline_mode<synchronous>, transform_indices = @transform_5, window_bounds = array<i64: 1, 128>}, {pipeline_mode = #tpu.pipeline_mode<synchronous>, transform_indices = @transform_6, window_bounds = array<i64: 1, 128>}, {pipeline_mode = #tpu.pipeline_mode<synchronous>, transform_indices = @transform_7, window_bounds = array<i64: 1, 128>}, {pipeline_mode = #tpu.pipeline_mode<synchronous>, transform_indices = @transform_8, window_bounds = array<i64: 128, 512>}, {pipeline_mode = #tpu.pipeline_mode<synchronous>, transform_indices = @transform_9, window_bounds = array<i64: 1, 512>}, {pipeline_mode = #tpu.pipeline_mode<synchronous>, transform_indices = @transform_10, window_bounds = array<i64: 512, 128>}, {pipeline_mode = #tpu.pipeline_mode<synchronous>, transform_indices = @transform_11, window_bounds = array<i64: 1, 128>}, {pipeline_mode = #tpu.pipeline_mode<synchronous>, transform_indices = @transform_12, window_bounds = array<i64: 1, 128>}, {pipeline_mode = #tpu.pipeline_mode<synchronous>, transform_indices = @transform_13, window_bounds = array<i64: 1, 128>}, {transform_indices = @transform_14, window_bounds = array<i64: 16, 128>}]} {
    %c0 = arith.constant 0 : index
    %c0_0 = arith.constant 0 : index
    %0 = vector.load %arg1[%c0, %c0_0] : memref<16x128xf32, #tpu.memory_space<vmem>>, vector<16x128xf32>
    %c0_1 = arith.constant 0 : index
    %c0_2 = arith.constant 0 : index
    %c0_3 = arith.constant 0 : index
    %1 = vector.load %arg2[%c0_1, %c0_2, %c0_3] : memref<1x1x16xf32, #tpu.memory_space<vmem>>, vector<1x1x16xf32>
    %2 = vector.shape_cast %1 : vector<1x1x16xf32> to vector<1x16xf32>
    %3 = arith.truncf %0 : vector<16x128xf32> to vector<16x128xbf16>
    %c0_4 = arith.constant 0 : index
    %c0_5 = arith.constant 0 : index
    %4 = vector.load %arg3[%c0_4, %c0_5] : memref<128x384xbf16, #tpu.memory_space<vmem>>, vector<128x384xbf16>
    %cst = arith.constant dense<0.000000e+00> : vector<16x384xf32>
    %5 = tpu.matmul %3, %4, %cst {dimension_numbers = #tpu.dot_dimension_numbers<[1], [0], [0], [1], [0, 0, 1, 1], [], []>} : vector<16x128xbf16>, vector<128x384xbf16>, vector<16x384xf32> -> vector<16x384xf32>
    %c0_6 = arith.constant 0 : index
    %c0_7 = arith.constant 0 : index
    %6 = vector.load %arg4[%c0_6, %c0_7] : memref<1x384xf32, #tpu.memory_space<vmem>>, vector<1x384xf32>
    %7 = vector.broadcast %6 : vector<1x384xf32> to vector<16x384xf32>
    %8 = arith.addf %5, %7 : vector<16x384xf32>
    %cst_8 = arith.constant 0.000000e+00 : f32
    %9 = vector.broadcast %cst_8 : f32 to vector<16x128xf32>
    %10 = vector.extract_strided_slice %8 {offsets = [0, 0], sizes = [16, 32], strides = [1, 1]} : vector<16x384xf32> to vector<16x32xf32>
    %11 = arith.truncf %10 : vector<16x32xf32> to vector<16x32xbf16>
    %12 = vector.extract_strided_slice %8 {offsets = [0, 128], sizes = [16, 32], strides = [1, 1]} : vector<16x384xf32> to vector<16x32xf32>
    %13 = arith.truncf %12 : vector<16x32xf32> to vector<16x32xbf16>
    %14 = vector.extract_strided_slice %8 {offsets = [0, 256], sizes = [16, 32], strides = [1, 1]} : vector<16x384xf32> to vector<16x32xf32>
    %15 = arith.truncf %14 : vector<16x32xf32> to vector<16x32xbf16>
    %cst_9 = arith.constant dense<0.000000e+00> : vector<16x16xf32>
    %16 = tpu.matmul %11, %13, %cst_9 {dimension_numbers = #tpu.dot_dimension_numbers<[1], [1], [0], [0], [0, 0, 1, 0], [], []>} : vector<16x32xbf16>, vector<16x32xbf16>, vector<16x16xf32> -> vector<16x16xf32>
    %cst_10 = arith.constant 0.176776692 : f32
    %17 = vector.broadcast %cst_10 : f32 to vector<16x16xf32>
    %18 = arith.mulf %16, %17 : vector<16x16xf32>
    %19 = vector.broadcast %2 : vector<1x16xf32> to vector<16x16xf32>
    %20 = arith.addf %18, %19 : vector<16x16xf32>
    %cst_11 = arith.constant dense<0xFF800000> : vector<16xf32>
    %21 = vector.multi_reduction <maximumf>, %20, %cst_11 [1] : vector<16x16xf32> to vector<16xf32>
    %22 = vector.shape_cast %21 : vector<16xf32> to vector<16x1xf32>
    %23 = vector.broadcast %22 : vector<16x1xf32> to vector<16x16xf32>
    %24 = arith.subf %20, %23 : vector<16x16xf32>
    %25 = math.exp %24 : vector<16x16xf32>
    %cst_12 = arith.constant dense<0.000000e+00> : vector<16xf32>
    %26 = vector.multi_reduction <add>, %25, %cst_12 [1] : vector<16x16xf32> to vector<16xf32>
    %27 = vector.shape_cast %26 : vector<16xf32> to vector<16x1xf32>
    %28 = tpu.reciprocal %27 {approx = true} : vector<16x1xf32> -> vector<16x1xf32>
    %29 = vector.broadcast %28 : vector<16x1xf32> to vector<16x16xf32>
    %30 = arith.mulf %25, %29 : vector<16x16xf32>
    %31 = arith.truncf %30 : vector<16x16xf32> to vector<16x16xbf16>
    %cst_13 = arith.constant dense<0.000000e+00> : vector<16x32xf32>
    %32 = tpu.matmul %31, %15, %cst_13 {dimension_numbers = #tpu.dot_dimension_numbers<[1], [0], [0], [1], [0, 0, 1, 1], [], []>} : vector<16x16xbf16>, vector<16x32xbf16>, vector<16x32xf32> -> vector<16x32xf32>
    %33 = arith.truncf %32 : vector<16x32xf32> to vector<16x32xbf16>
    %c0_14 = arith.constant 0 : index
    %c0_15 = arith.constant 0 : index
    %34 = vector.load %arg5[%c0_14, %c0_15] : memref<128x128xbf16, #tpu.memory_space<vmem>>, vector<32x128xbf16>
    %cst_16 = arith.constant dense<0.000000e+00> : vector<16x128xf32>
    %35 = tpu.matmul %33, %34, %cst_16 {dimension_numbers = #tpu.dot_dimension_numbers<[1], [0], [0], [1], [0, 0, 1, 1], [], []>} : vector<16x32xbf16>, vector<32x128xbf16>, vector<16x128xf32> -> vector<16x128xf32>
    %36 = arith.addf %9, %35 : vector<16x128xf32>
    %37 = vector.extract_strided_slice %8 {offsets = [0, 32], sizes = [16, 32], strides = [1, 1]} : vector<16x384xf32> to vector<16x32xf32>
    %38 = arith.truncf %37 : vector<16x32xf32> to vector<16x32xbf16>
    %39 = vector.extract_strided_slice %8 {offsets = [0, 160], sizes = [16, 32], strides = [1, 1]} : vector<16x384xf32> to vector<16x32xf32>
    %40 = arith.truncf %39 : vector<16x32xf32> to vector<16x32xbf16>
    %41 = vector.extract_strided_slice %8 {offsets = [0, 288], sizes = [16, 32], strides = [1, 1]} : vector<16x384xf32> to vector<16x32xf32>
    %42 = arith.truncf %41 : vector<16x32xf32> to vector<16x32xbf16>
    %cst_17 = arith.constant dense<0.000000e+00> : vector<16x16xf32>
    %43 = tpu.matmul %38, %40, %cst_17 {dimension_numbers = #tpu.dot_dimension_numbers<[1], [1], [0], [0], [0, 0, 1, 0], [], []>} : vector<16x32xbf16>, vector<16x32xbf16>, vector<16x16xf32> -> vector<16x16xf32>
    %cst_18 = arith.constant 0.176776692 : f32
    %44 = vector.broadcast %cst_18 : f32 to vector<16x16xf32>
    %45 = arith.mulf %43, %44 : vector<16x16xf32>
    %46 = vector.broadcast %2 : vector<1x16xf32> to vector<16x16xf32>
    %47 = arith.addf %45, %46 : vector<16x16xf32>
    %cst_19 = arith.constant dense<0xFF800000> : vector<16xf32>
    %48 = vector.multi_reduction <maximumf>, %47, %cst_19 [1] : vector<16x16xf32> to vector<16xf32>
    %49 = vector.shape_cast %48 : vector<16xf32> to vector<16x1xf32>
    %50 = vector.broadcast %49 : vector<16x1xf32> to vector<16x16xf32>
    %51 = arith.subf %47, %50 : vector<16x16xf32>
    %52 = math.exp %51 : vector<16x16xf32>
    %cst_20 = arith.constant dense<0.000000e+00> : vector<16xf32>
    %53 = vector.multi_reduction <add>, %52, %cst_20 [1] : vector<16x16xf32> to vector<16xf32>
    %54 = vector.shape_cast %53 : vector<16xf32> to vector<16x1xf32>
    %55 = tpu.reciprocal %54 {approx = true} : vector<16x1xf32> -> vector<16x1xf32>
    %56 = vector.broadcast %55 : vector<16x1xf32> to vector<16x16xf32>
    %57 = arith.mulf %52, %56 : vector<16x16xf32>
    %58 = arith.truncf %57 : vector<16x16xf32> to vector<16x16xbf16>
    %cst_21 = arith.constant dense<0.000000e+00> : vector<16x32xf32>
    %59 = tpu.matmul %58, %42, %cst_21 {dimension_numbers = #tpu.dot_dimension_numbers<[1], [0], [0], [1], [0, 0, 1, 1], [], []>} : vector<16x16xbf16>, vector<16x32xbf16>, vector<16x32xf32> -> vector<16x32xf32>
    %60 = arith.truncf %59 : vector<16x32xf32> to vector<16x32xbf16>
    %c32 = arith.constant 32 : index
    %c0_22 = arith.constant 0 : index
    %61 = vector.load %arg5[%c32, %c0_22] : memref<128x128xbf16, #tpu.memory_space<vmem>>, vector<32x128xbf16>
    %cst_23 = arith.constant dense<0.000000e+00> : vector<16x128xf32>
    %62 = tpu.matmul %60, %61, %cst_23 {dimension_numbers = #tpu.dot_dimension_numbers<[1], [0], [0], [1], [0, 0, 1, 1], [], []>} : vector<16x32xbf16>, vector<32x128xbf16>, vector<16x128xf32> -> vector<16x128xf32>
    %63 = arith.addf %36, %62 : vector<16x128xf32>
    %64 = vector.extract_strided_slice %8 {offsets = [0, 64], sizes = [16, 32], strides = [1, 1]} : vector<16x384xf32> to vector<16x32xf32>
    %65 = arith.truncf %64 : vector<16x32xf32> to vector<16x32xbf16>
    %66 = vector.extract_strided_slice %8 {offsets = [0, 192], sizes = [16, 32], strides = [1, 1]} : vector<16x384xf32> to vector<16x32xf32>
    %67 = arith.truncf %66 : vector<16x32xf32> to vector<16x32xbf16>
    %68 = vector.extract_strided_slice %8 {offsets = [0, 320], sizes = [16, 32], strides = [1, 1]} : vector<16x384xf32> to vector<16x32xf32>
    %69 = arith.truncf %68 : vector<16x32xf32> to vector<16x32xbf16>
    %cst_24 = arith.constant dense<0.000000e+00> : vector<16x16xf32>
    %70 = tpu.matmul %65, %67, %cst_24 {dimension_numbers = #tpu.dot_dimension_numbers<[1], [1], [0], [0], [0, 0, 1, 0], [], []>} : vector<16x32xbf16>, vector<16x32xbf16>, vector<16x16xf32> -> vector<16x16xf32>
    %cst_25 = arith.constant 0.176776692 : f32
    %71 = vector.broadcast %cst_25 : f32 to vector<16x16xf32>
    %72 = arith.mulf %70, %71 : vector<16x16xf32>
    %73 = vector.broadcast %2 : vector<1x16xf32> to vector<16x16xf32>
    %74 = arith.addf %72, %73 : vector<16x16xf32>
    %cst_26 = arith.constant dense<0xFF800000> : vector<16xf32>
    %75 = vector.multi_reduction <maximumf>, %74, %cst_26 [1] : vector<16x16xf32> to vector<16xf32>
    %76 = vector.shape_cast %75 : vector<16xf32> to vector<16x1xf32>
    %77 = vector.broadcast %76 : vector<16x1xf32> to vector<16x16xf32>
    %78 = arith.subf %74, %77 : vector<16x16xf32>
    %79 = math.exp %78 : vector<16x16xf32>
    %cst_27 = arith.constant dense<0.000000e+00> : vector<16xf32>
    %80 = vector.multi_reduction <add>, %79, %cst_27 [1] : vector<16x16xf32> to vector<16xf32>
    %81 = vector.shape_cast %80 : vector<16xf32> to vector<16x1xf32>
    %82 = tpu.reciprocal %81 {approx = true} : vector<16x1xf32> -> vector<16x1xf32>
    %83 = vector.broadcast %82 : vector<16x1xf32> to vector<16x16xf32>
    %84 = arith.mulf %79, %83 : vector<16x16xf32>
    %85 = arith.truncf %84 : vector<16x16xf32> to vector<16x16xbf16>
    %cst_28 = arith.constant dense<0.000000e+00> : vector<16x32xf32>
    %86 = tpu.matmul %85, %69, %cst_28 {dimension_numbers = #tpu.dot_dimension_numbers<[1], [0], [0], [1], [0, 0, 1, 1], [], []>} : vector<16x16xbf16>, vector<16x32xbf16>, vector<16x32xf32> -> vector<16x32xf32>
    %87 = arith.truncf %86 : vector<16x32xf32> to vector<16x32xbf16>
    %c64 = arith.constant 64 : index
    %c0_29 = arith.constant 0 : index
    %88 = vector.load %arg5[%c64, %c0_29] : memref<128x128xbf16, #tpu.memory_space<vmem>>, vector<32x128xbf16>
    %cst_30 = arith.constant dense<0.000000e+00> : vector<16x128xf32>
    %89 = tpu.matmul %87, %88, %cst_30 {dimension_numbers = #tpu.dot_dimension_numbers<[1], [0], [0], [1], [0, 0, 1, 1], [], []>} : vector<16x32xbf16>, vector<32x128xbf16>, vector<16x128xf32> -> vector<16x128xf32>
    %90 = arith.addf %63, %89 : vector<16x128xf32>
    %91 = vector.extract_strided_slice %8 {offsets = [0, 96], sizes = [16, 32], strides = [1, 1]} : vector<16x384xf32> to vector<16x32xf32>
    %92 = arith.truncf %91 : vector<16x32xf32> to vector<16x32xbf16>
    %93 = vector.extract_strided_slice %8 {offsets = [0, 224], sizes = [16, 32], strides = [1, 1]} : vector<16x384xf32> to vector<16x32xf32>
    %94 = arith.truncf %93 : vector<16x32xf32> to vector<16x32xbf16>
    %95 = vector.extract_strided_slice %8 {offsets = [0, 352], sizes = [16, 32], strides = [1, 1]} : vector<16x384xf32> to vector<16x32xf32>
    %96 = arith.truncf %95 : vector<16x32xf32> to vector<16x32xbf16>
    %cst_31 = arith.constant dense<0.000000e+00> : vector<16x16xf32>
    %97 = tpu.matmul %92, %94, %cst_31 {dimension_numbers = #tpu.dot_dimension_numbers<[1], [1], [0], [0], [0, 0, 1, 0], [], []>} : vector<16x32xbf16>, vector<16x32xbf16>, vector<16x16xf32> -> vector<16x16xf32>
    %cst_32 = arith.constant 0.176776692 : f32
    %98 = vector.broadcast %cst_32 : f32 to vector<16x16xf32>
    %99 = arith.mulf %97, %98 : vector<16x16xf32>
    %100 = vector.broadcast %2 : vector<1x16xf32> to vector<16x16xf32>
    %101 = arith.addf %99, %100 : vector<16x16xf32>
    %cst_33 = arith.constant dense<0xFF800000> : vector<16xf32>
    %102 = vector.multi_reduction <maximumf>, %101, %cst_33 [1] : vector<16x16xf32> to vector<16xf32>
    %103 = vector.shape_cast %102 : vector<16xf32> to vector<16x1xf32>
    %104 = vector.broadcast %103 : vector<16x1xf32> to vector<16x16xf32>
    %105 = arith.subf %101, %104 : vector<16x16xf32>
    %106 = math.exp %105 : vector<16x16xf32>
    %cst_34 = arith.constant dense<0.000000e+00> : vector<16xf32>
    %107 = vector.multi_reduction <add>, %106, %cst_34 [1] : vector<16x16xf32> to vector<16xf32>
    %108 = vector.shape_cast %107 : vector<16xf32> to vector<16x1xf32>
    %109 = tpu.reciprocal %108 {approx = true} : vector<16x1xf32> -> vector<16x1xf32>
    %110 = vector.broadcast %109 : vector<16x1xf32> to vector<16x16xf32>
    %111 = arith.mulf %106, %110 : vector<16x16xf32>
    %112 = arith.truncf %111 : vector<16x16xf32> to vector<16x16xbf16>
    %cst_35 = arith.constant dense<0.000000e+00> : vector<16x32xf32>
    %113 = tpu.matmul %112, %96, %cst_35 {dimension_numbers = #tpu.dot_dimension_numbers<[1], [0], [0], [1], [0, 0, 1, 1], [], []>} : vector<16x16xbf16>, vector<16x32xbf16>, vector<16x32xf32> -> vector<16x32xf32>
    %114 = arith.truncf %113 : vector<16x32xf32> to vector<16x32xbf16>
    %c96 = arith.constant 96 : index
    %c0_36 = arith.constant 0 : index
    %115 = vector.load %arg5[%c96, %c0_36] : memref<128x128xbf16, #tpu.memory_space<vmem>>, vector<32x128xbf16>
    %cst_37 = arith.constant dense<0.000000e+00> : vector<16x128xf32>
    %116 = tpu.matmul %114, %115, %cst_37 {dimension_numbers = #tpu.dot_dimension_numbers<[1], [0], [0], [1], [0, 0, 1, 1], [], []>} : vector<16x32xbf16>, vector<32x128xbf16>, vector<16x128xf32> -> vector<16x128xf32>
    %117 = arith.addf %90, %116 : vector<16x128xf32>
    %c0_38 = arith.constant 0 : index
    %c0_39 = arith.constant 0 : index
    %118 = vector.load %arg6[%c0_38, %c0_39] : memref<1x128xf32, #tpu.memory_space<vmem>>, vector<1x128xf32>
    %119 = vector.broadcast %118 : vector<1x128xf32> to vector<16x128xf32>
    %120 = arith.addf %117, %119 : vector<16x128xf32>
    %121 = arith.addf %120, %0 : vector<16x128xf32>
    %c0_40 = arith.constant 0 : index
    %c0_41 = arith.constant 0 : index
    %122 = vector.load %arg7[%c0_40, %c0_41] : memref<1x128xf32, #tpu.memory_space<vmem>>, vector<1x128xf32>
    %c0_42 = arith.constant 0 : index
    %c0_43 = arith.constant 0 : index
    %123 = vector.load %arg8[%c0_42, %c0_43] : memref<1x128xf32, #tpu.memory_space<vmem>>, vector<1x128xf32>
    %cst_44 = arith.constant dense<0.000000e+00> : vector<16xf32>
    %124 = vector.multi_reduction <add>, %121, %cst_44 [1] : vector<16x128xf32> to vector<16xf32>
    %125 = vector.shape_cast %124 : vector<16xf32> to vector<16x1xf32>
    %cst_45 = arith.constant 1.280000e+02 : f32
    %126 = vector.broadcast %cst_45 : f32 to vector<16x1xf32>
    %127 = arith.divf %125, %126 : vector<16x1xf32>
    %128 = vector.broadcast %127 : vector<16x1xf32> to vector<16x128xf32>
    %129 = arith.subf %121, %128 : vector<16x128xf32>
    %130 = arith.mulf %129, %129 : vector<16x128xf32>
    %cst_46 = arith.constant dense<0.000000e+00> : vector<16xf32>
    %131 = vector.multi_reduction <add>, %130, %cst_46 [1] : vector<16x128xf32> to vector<16xf32>
    %132 = vector.shape_cast %131 : vector<16xf32> to vector<16x1xf32>
    %cst_47 = arith.constant 1.280000e+02 : f32
    %133 = vector.broadcast %cst_47 : f32 to vector<16x1xf32>
    %134 = arith.divf %132, %133 : vector<16x1xf32>
    %cst_48 = arith.constant 9.99999996E-13 : f32
    %135 = vector.broadcast %cst_48 : f32 to vector<16x1xf32>
    %136 = arith.addf %134, %135 : vector<16x1xf32>
    %137 = math.rsqrt %136 : vector<16x1xf32>
    %138 = vector.broadcast %137 : vector<16x1xf32> to vector<16x128xf32>
    %139 = arith.mulf %129, %138 : vector<16x128xf32>
    %140 = vector.broadcast %122 : vector<1x128xf32> to vector<16x128xf32>
    %141 = arith.mulf %139, %140 : vector<16x128xf32>
    %142 = vector.broadcast %123 : vector<1x128xf32> to vector<16x128xf32>
    %143 = arith.addf %141, %142 : vector<16x128xf32>
    %144 = arith.truncf %143 : vector<16x128xf32> to vector<16x128xbf16>
    %c0_49 = arith.constant 0 : index
    %c0_50 = arith.constant 0 : index
    %145 = vector.load %arg9[%c0_49, %c0_50] : memref<128x512xbf16, #tpu.memory_space<vmem>>, vector<128x512xbf16>
    %cst_51 = arith.constant dense<0.000000e+00> : vector<16x512xf32>
    %146 = tpu.matmul %144, %145, %cst_51 {dimension_numbers = #tpu.dot_dimension_numbers<[1], [0], [0], [1], [0, 0, 1, 1], [], []>} : vector<16x128xbf16>, vector<128x512xbf16>, vector<16x512xf32> -> vector<16x512xf32>
    %c0_52 = arith.constant 0 : index
    %c0_53 = arith.constant 0 : index
    %147 = vector.load %arg10[%c0_52, %c0_53] : memref<1x512xf32, #tpu.memory_space<vmem>>, vector<1x512xf32>
    %148 = vector.broadcast %147 : vector<1x512xf32> to vector<16x512xf32>
    %149 = arith.addf %146, %148 : vector<16x512xf32>
    %150 = arith.mulf %149, %149 : vector<16x512xf32>
    %151 = arith.mulf %149, %150 : vector<16x512xf32>
    %cst_54 = arith.constant 4.471500e-02 : f32
    %152 = vector.broadcast %cst_54 : f32 to vector<16x512xf32>
    %153 = arith.mulf %152, %151 : vector<16x512xf32>
    %154 = arith.addf %149, %153 : vector<16x512xf32>
    %cst_55 = arith.constant 0.797884583 : f32
    %155 = vector.broadcast %cst_55 : f32 to vector<16x512xf32>
    %156 = arith.mulf %155, %154 : vector<16x512xf32>
    %157 = math.tanh %156 : vector<16x512xf32>
    %cst_56 = arith.constant 1.000000e+00 : f32
    %158 = vector.broadcast %cst_56 : f32 to vector<16x512xf32>
    %159 = arith.addf %158, %157 : vector<16x512xf32>
    %cst_57 = arith.constant 5.000000e-01 : f32
    %160 = vector.broadcast %cst_57 : f32 to vector<16x512xf32>
    %161 = arith.mulf %160, %159 : vector<16x512xf32>
    %162 = arith.mulf %149, %161 : vector<16x512xf32>
    %163 = arith.truncf %162 : vector<16x512xf32> to vector<16x512xbf16>
    %c0_58 = arith.constant 0 : index
    %c0_59 = arith.constant 0 : index
    %164 = vector.load %arg11[%c0_58, %c0_59] : memref<512x128xbf16, #tpu.memory_space<vmem>>, vector<512x128xbf16>
    %cst_60 = arith.constant dense<0.000000e+00> : vector<16x128xf32>
    %165 = tpu.matmul %163, %164, %cst_60 {dimension_numbers = #tpu.dot_dimension_numbers<[1], [0], [0], [1], [0, 0, 1, 1], [], []>} : vector<16x512xbf16>, vector<512x128xbf16>, vector<16x128xf32> -> vector<16x128xf32>
    %c0_61 = arith.constant 0 : index
    %c0_62 = arith.constant 0 : index
    %166 = vector.load %arg12[%c0_61, %c0_62] : memref<1x128xf32, #tpu.memory_space<vmem>>, vector<1x128xf32>
    %167 = vector.broadcast %166 : vector<1x128xf32> to vector<16x128xf32>
    %168 = arith.addf %165, %167 : vector<16x128xf32>
    %169 = arith.addf %168, %143 : vector<16x128xf32>
    %c0_63 = arith.constant 0 : index
    %c0_64 = arith.constant 0 : index
    %170 = vector.load %arg13[%c0_63, %c0_64] : memref<1x128xf32, #tpu.memory_space<vmem>>, vector<1x128xf32>
    %c0_65 = arith.constant 0 : index
    %c0_66 = arith.constant 0 : index
    %171 = vector.load %arg14[%c0_65, %c0_66] : memref<1x128xf32, #tpu.memory_space<vmem>>, vector<1x128xf32>
    %cst_67 = arith.constant dense<0.000000e+00> : vector<16xf32>
    %172 = vector.multi_reduction <add>, %169, %cst_67 [1] : vector<16x128xf32> to vector<16xf32>
    %173 = vector.shape_cast %172 : vector<16xf32> to vector<16x1xf32>
    %cst_68 = arith.constant 1.280000e+02 : f32
    %174 = vector.broadcast %cst_68 : f32 to vector<16x1xf32>
    %175 = arith.divf %173, %174 : vector<16x1xf32>
    %176 = vector.broadcast %175 : vector<16x1xf32> to vector<16x128xf32>
    %177 = arith.subf %169, %176 : vector<16x128xf32>
    %178 = arith.mulf %177, %177 : vector<16x128xf32>
    %cst_69 = arith.constant dense<0.000000e+00> : vector<16xf32>
    %179 = vector.multi_reduction <add>, %178, %cst_69 [1] : vector<16x128xf32> to vector<16xf32>
    %180 = vector.shape_cast %179 : vector<16xf32> to vector<16x1xf32>
    %cst_70 = arith.constant 1.280000e+02 : f32
    %181 = vector.broadcast %cst_70 : f32 to vector<16x1xf32>
    %182 = arith.divf %180, %181 : vector<16x1xf32>
    %cst_71 = arith.constant 9.99999996E-13 : f32
    %183 = vector.broadcast %cst_71 : f32 to vector<16x1xf32>
    %184 = arith.addf %182, %183 : vector<16x1xf32>
    %185 = math.rsqrt %184 : vector<16x1xf32>
    %186 = vector.broadcast %185 : vector<16x1xf32> to vector<16x128xf32>
    %187 = arith.mulf %177, %186 : vector<16x128xf32>
    %188 = vector.broadcast %170 : vector<1x128xf32> to vector<16x128xf32>
    %189 = arith.mulf %187, %188 : vector<16x128xf32>
    %190 = vector.broadcast %171 : vector<1x128xf32> to vector<16x128xf32>
    %191 = arith.addf %189, %190 : vector<16x128xf32>
    %c0_72 = arith.constant 0 : index
    %c0_73 = arith.constant 0 : index
    %192 = vector.load %arg15[%c0_72, %c0_73] : memref<16x128xf32, #tpu.memory_space<vmem>>, vector<16x128xf32>
    tpu.vector_store %arg15[%c0_72, %c0_73], %191 {strides = array<i32>} : memref<16x128xf32, #tpu.memory_space<vmem>>, vector<16x128xf32>,
    return
  }
  func.func @transform_0(%arg0: i32) -> (i32, i32) {
    %c0_i32 = arith.constant 0 : i32
    %c0_i32_0 = arith.constant 0 : i32
    return %arg0, %c0_i32 : i32, i32
  }
  func.func @transform_1(%arg0: i32) -> (i32, i32, i32) {
    %c0_i32 = arith.constant 0 : i32
    %c0_i32_0 = arith.constant 0 : i32
    %c0_i32_1 = arith.constant 0 : i32
    return %arg0, %c0_i32, %c0_i32_0 : i32, i32, i32
  }
  func.func @transform_2(%arg0: i32) -> (i32, i32) {
    %c0_i32 = arith.constant 0 : i32
    %c0_i32_0 = arith.constant 0 : i32
    %c0_i32_1 = arith.constant 0 : i32
    return %c0_i32, %c0_i32_0 : i32, i32
  }
  func.func @transform_3(%arg0: i32) -> (i32, i32) {
    %c0_i32 = arith.constant 0 : i32
    %c0_i32_0 = arith.constant 0 : i32
    %c0_i32_1 = arith.constant 0 : i32
    return %c0_i32, %c0_i32_0 : i32, i32
  }
  func.func @transform_4(%arg0: i32) -> (i32, i32) {
    %c0_i32 = arith.constant 0 : i32
    %c0_i32_0 = arith.constant 0 : i32
    %c0_i32_1 = arith.constant 0 : i32
    return %c0_i32, %c0_i32_0 : i32, i32
  }
  func.func @transform_5(%arg0: i32) -> (i32, i32) {
    %c0_i32 = arith.constant 0 : i32
    %c0_i32_0 = arith.constant 0 : i32
    %c0_i32_1 = arith.constant 0 : i32
    return %c0_i32, %c0_i32_0 : i32, i32
  }
  func.func @transform_6(%arg0: i32) -> (i32, i32) {
    %c0_i32 = arith.constant 0 : i32
    %c0_i32_0 = arith.constant 0 : i32
    %c0_i32_1 = arith.constant 0 : i32
    return %c0_i32, %c0_i32_0 : i32, i32
  }
  func.func @transform_7(%arg0: i32) -> (i32, i32) {
    %c0_i32 = arith.constant 0 : i32
    %c0_i32_0 = arith.constant 0 : i32
    %c0_i32_1 = arith.constant 0 : i32
    return %c0_i32, %c0_i32_0 : i32, i32
  }
  func.func @transform_8(%arg0: i32) -> (i32, i32) {
    %c0_i32 = arith.constant 0 : i32
    %c0_i32_0 = arith.constant 0 : i32
    %c0_i32_1 = arith.constant 0 : i32
    return %c0_i32, %c0_i32_0 : i32, i32
  }
  func.func @transform_9(%arg0: i32) -> (i32, i32) {
    %c0_i32 = arith.constant 0 : i32
    %c0_i32_0 = arith.constant 0 : i32
    %c0_i32_1 = arith.constant 0 : i32
    return %c0_i32, %c0_i32_0 : i32, i32
  }
  func.func @transform_10(%arg0: i32) -> (i32, i32) {
    %c0_i32 = arith.constant 0 : i32
    %c0_i32_0 = arith.constant 0 : i32
    %c0_i32_1 = arith.constant 0 : i32
    return %c0_i32, %c0_i32_0 : i32, i32
  }
  func.func @transform_11(%arg0: i32) -> (i32, i32) {
    %c0_i32 = arith.constant 0 : i32
    %c0_i32_0 = arith.constant 0 : i32
    %c0_i32_1 = arith.constant 0 : i32
    return %c0_i32, %c0_i32_0 : i32, i32
  }
  func.func @transform_12(%arg0: i32) -> (i32, i32) {
    %c0_i32 = arith.constant 0 : i32
    %c0_i32_0 = arith.constant 0 : i32
    %c0_i32_1 = arith.constant 0 : i32
    return %c0_i32, %c0_i32_0 : i32, i32
  }
  func.func @transform_13(%arg0: i32) -> (i32, i32) {
    %c0_i32 = arith.constant 0 : i32
    %c0_i32_0 = arith.constant 0 : i32
    %c0_i32_1 = arith.constant 0 : i32
    return %c0_i32, %c0_i32_0 : i32, i32
  }
  func.func @transform_14(%arg0: i32) -> (i32, i32) {
    %c0_i32 = arith.constant 0 : i32
    %c0_i32_0 = arith.constant 0 : i32
    return %arg0, %c0_i32 : i32, i32
  }
}

module attributes {stable_mosaic.version = 11 : i64} {
  func.func @_layer_kernel(%arg0: i32, %arg1: memref<16x128xf32, #tpu.memory_space<vmem>>, %arg2: memref<1x1x16xf32, #tpu.memory_space<vmem>>, %arg3: memref<128x384xbf16, #tpu.memory_space<vmem>>, %arg4: memref<1x384xf32, #tpu.memory_space<vmem>>, %arg5: memref<128x128xbf16, #tpu.memory_space<vmem>>, %arg6: memref<1x128xf32, #tpu.memory_space<vmem>>, %arg7: memref<1x128xf32, #tpu.memory_space<vmem>>, %arg8: memref<1x128xf32, #tpu.memory_space<vmem>>, %arg9: memref<128x512xbf16, #tpu.memory_space<vmem>>, %arg10: memref<1x512xf32, #tpu.memory_space<vmem>>, %arg11: memref<512x128xbf16, #tpu.memory_space<vmem>>, %arg12: memref<1x128xf32, #tpu.memory_space<vmem>>, %arg13: memref<1x128xf32, #tpu.memory_space<vmem>>, %arg14: memref<1x128xf32, #tpu.memory_space<vmem>>, %arg15: memref<16x128xf32, #tpu.memory_space<vmem>>) attributes {dimension_semantics = [#tpu.dimension_semantics<parallel>], iteration_bounds = array<i64: 2>, scalar_prefetch = 0 : i64, scratch_operands = 0 : i64, tpu.core_type = #tpu.core_type<tc>, window_params = [{transform_indices = @transform_0, window_bounds = array<i64: 16, 128>}, {transform_indices = @transform_1, window_bounds = array<i64: 1, 1, 16>}, {pipeline_mode = #tpu.pipeline_mode<synchronous>, transform_indices = @transform_2, window_bounds = array<i64: 128, 384>}, {pipeline_mode = #tpu.pipeline_mode<synchronous>, transform_indices = @transform_3, window_bounds = array<i64: 1, 384>}, {pipeline_mode = #tpu.pipeline_mode<synchronous>, transform_indices = @transform_4, window_bounds = array<i64: 128, 128>}, {pipeline_mode = #tpu.pipeline_mode<synchronous>, transform_indices = @transform_5, window_bounds = array<i64: 1, 128>}, {pipeline_mode = #tpu.pipeline_mode<synchronous>, transform_indices = @transform_6, window_bounds = array<i64: 1, 128>}, {pipeline_mode = #tpu.pipeline_mode<synchronous>, transform_indices = @transform_7, window_bounds = array<i64: 1, 128>}, {pipeline_mode = #tpu.pipeline_mode<synchronous>, transform_indices = @transform_8, window_bounds = array<i64: 128, 512>}, {pipeline_mode = #tpu.pipeline_mode<synchronous>, transform_indices = @transform_9, window_bounds = array<i64: 1, 512>}, {pipeline_mode = #tpu.pipeline_mode<synchronous>, transform_indices = @transform_10, window_bounds = array<i64: 512, 128>}, {pipeline_mode = #tpu.pipeline_mode<synchronous>, transform_indices = @transform_11, window_bounds = array<i64: 1, 128>}, {pipeline_mode = #tpu.pipeline_mode<synchronous>, transform_indices = @transform_12, window_bounds = array<i64: 1, 128>}, {pipeline_mode = #tpu.pipeline_mode<synchronous>, transform_indices = @transform_13, window_bounds = array<i64: 1, 128>}, {transform_indices = @transform_14, window_bounds = array<i64: 16, 128>}]} {
    %c0 = arith.constant 0 : index
    %c0_0 = arith.constant 0 : index
    %0 = vector.load %arg1[%c0, %c0_0] : memref<16x128xf32, #tpu.memory_space<vmem>>, vector<16x128xf32>
    %c0_1 = arith.constant 0 : index
    %c0_2 = arith.constant 0 : index
    %c0_3 = arith.constant 0 : index
    %1 = vector.load %arg2[%c0_1, %c0_2, %c0_3] : memref<1x1x16xf32, #tpu.memory_space<vmem>>, vector<1x1x16xf32>
    %2 = vector.shape_cast %1 : vector<1x1x16xf32> to vector<1x16xf32>
    %3 = arith.truncf %0 : vector<16x128xf32> to vector<16x128xbf16>
    %c0_4 = arith.constant 0 : index
    %c0_5 = arith.constant 0 : index
    %4 = vector.load %arg3[%c0_4, %c0_5] : memref<128x384xbf16, #tpu.memory_space<vmem>>, vector<128x384xbf16>
    %cst = arith.constant dense<0.000000e+00> : vector<16x384xf32>
    %5 = tpu.matmul %3, %4, %cst {dimension_numbers = #tpu.dot_dimension_numbers<[1], [0], [0], [1], [0, 0, 1, 1], [], []>} : vector<16x128xbf16>, vector<128x384xbf16>, vector<16x384xf32> -> vector<16x384xf32>
    %c0_6 = arith.constant 0 : index
    %c0_7 = arith.constant 0 : index
    %6 = vector.load %arg4[%c0_6, %c0_7] : memref<1x384xf32, #tpu.memory_space<vmem>>, vector<1x384xf32>
    %7 = vector.broadcast %6 : vector<1x384xf32> to vector<16x384xf32>
    %8 = arith.addf %5, %7 : vector<16x384xf32>
    %cst_8 = arith.constant 0.000000e+00 : f32
    %9 = vector.broadcast %cst_8 : f32 to vector<16x128xf32>
    %10 = vector.extract_strided_slice %8 {offsets = [0, 0], sizes = [16, 32], strides = [1, 1]} : vector<16x384xf32> to vector<16x32xf32>
    %11 = arith.truncf %10 : vector<16x32xf32> to vector<16x32xbf16>
    %12 = vector.extract_strided_slice %8 {offsets = [0, 128], sizes = [16, 32], strides = [1, 1]} : vector<16x384xf32> to vector<16x32xf32>
    %13 = arith.truncf %12 : vector<16x32xf32> to vector<16x32xbf16>
    %14 = vector.extract_strided_slice %8 {offsets = [0, 256], sizes = [16, 32], strides = [1, 1]} : vector<16x384xf32> to vector<16x32xf32>
    %15 = arith.truncf %14 : vector<16x32xf32> to vector<16x32xbf16>
    %cst_9 = arith.constant dense<0.000000e+00> : vector<16x16xf32>
    %16 = tpu.matmul %11, %13, %cst_9 {dimension_numbers = #tpu.dot_dimension_numbers<[1], [1], [0], [0], [0, 0, 1, 0], [], []>} : vector<16x32xbf16>, vector<16x32xbf16>, vector<16x16xf32> -> vector<16x16xf32>
    %cst_10 = arith.constant 0.176776692 : f32
    %17 = vector.broadcast %cst_10 : f32 to vector<16x16xf32>
    %18 = arith.mulf %16, %17 : vector<16x16xf32>
    %19 = vector.broadcast %2 : vector<1x16xf32> to vector<16x16xf32>
    %20 = arith.addf %18, %19 : vector<16x16xf32>
    %cst_11 = arith.constant dense<0xFF800000> : vector<16xf32>
    %21 = vector.multi_reduction <maximumf>, %20, %cst_11 [1] : vector<16x16xf32> to vector<16xf32>
    %22 = vector.shape_cast %21 : vector<16xf32> to vector<16x1xf32>
    %23 = vector.broadcast %22 : vector<16x1xf32> to vector<16x16xf32>
    %24 = arith.subf %20, %23 : vector<16x16xf32>
    %25 = math.exp %24 : vector<16x16xf32>
    %cst_12 = arith.constant dense<0.000000e+00> : vector<16xf32>
    %26 = vector.multi_reduction <add>, %25, %cst_12 [1] : vector<16x16xf32> to vector<16xf32>
    %27 = vector.shape_cast %26 : vector<16xf32> to vector<16x1xf32>
    %28 = tpu.reciprocal %27 {approx = true} : vector<16x1xf32> -> vector<16x1xf32>
    %29 = vector.broadcast %28 : vector<16x1xf32> to vector<16x16xf32>
    %30 = arith.mulf %25, %29 : vector<16x16xf32>
    %31 = arith.truncf %30 : vector<16x16xf32> to vector<16x16xbf16>
    %cst_13 = arith.constant dense<0.000000e+00> : vector<16x32xf32>
    %32 = tpu.matmul %31, %15, %cst_13 {dimension_numbers = #tpu.dot_dimension_numbers<[1], [0], [0], [1], [0, 0, 1, 1], [], []>} : vector<16x16xbf16>, vector<16x32xbf16>, vector<16x32xf32> -> vector<16x32xf32>
    %33 = arith.truncf %32 : vector<16x32xf32> to vector<16x32xbf16>
    %c0_14 = arith.constant 0 : index
    %c0_15 = arith.constant 0 : index
    %34 = vector.load %arg5[%c0_14, %c0_15] : memref<128x128xbf16, #tpu.memory_space<vmem>>, vector<32x128xbf16>
    %cst_16 = arith.constant dense<0.000000e+00> : vector<16x128xf32>
    %35 = tpu.matmul %33, %34, %cst_16 {dimension_numbers = #tpu.dot_dimension_numbers<[1], [0], [0], [1], [0, 0, 1, 1], [], []>} : vector<16x32xbf16>, vector<32x128xbf16>, vector<16x128xf32> -> vector<16x128xf32>
    %36 = arith.addf %9, %35 : vector<16x128xf32>
    %37 = vector.extract_strided_slice %8 {offsets = [0, 32], sizes = [16, 32], strides = [1, 1]} : vector<16x384xf32> to vector<16x32xf32>
    %38 = arith.truncf %37 : vector<16x32xf32> to vector<16x32xbf16>
    %39 = vector.extract_strided_slice %8 {offsets = [0, 160], sizes = [16, 32], strides = [1, 1]} : vector<16x384xf32> to vector<16x32xf32>
    %40 = arith.truncf %39 : vector<16x32xf32> to vector<16x32xbf16>
    %41 = vector.extract_strided_slice %8 {offsets = [0, 288], sizes = [16, 32], strides = [1, 1]} : vector<16x384xf32> to vector<16x32xf32>
    %42 = arith.truncf %41 : vector<16x32xf32> to vector<16x32xbf16>
    %cst_17 = arith.constant dense<0.000000e+00> : vector<16x16xf32>
    %43 = tpu.matmul %38, %40, %cst_17 {dimension_numbers = #tpu.dot_dimension_numbers<[1], [1], [0], [0], [0, 0, 1, 0], [], []>} : vector<16x32xbf16>, vector<16x32xbf16>, vector<16x16xf32> -> vector<16x16xf32>
    %cst_18 = arith.constant 0.176776692 : f32
    %44 = vector.broadcast %cst_18 : f32 to vector<16x16xf32>
    %45 = arith.mulf %43, %44 : vector<16x16xf32>
    %46 = vector.broadcast %2 : vector<1x16xf32> to vector<16x16xf32>
    %47 = arith.addf %45, %46 : vector<16x16xf32>
    %cst_19 = arith.constant dense<0xFF800000> : vector<16xf32>
    %48 = vector.multi_reduction <maximumf>, %47, %cst_19 [1] : vector<16x16xf32> to vector<16xf32>
    %49 = vector.shape_cast %48 : vector<16xf32> to vector<16x1xf32>
    %50 = vector.broadcast %49 : vector<16x1xf32> to vector<16x16xf32>
    %51 = arith.subf %47, %50 : vector<16x16xf32>
    %52 = math.exp %51 : vector<16x16xf32>
    %cst_20 = arith.constant dense<0.000000e+00> : vector<16xf32>
    %53 = vector.multi_reduction <add>, %52, %cst_20 [1] : vector<16x16xf32> to vector<16xf32>
    %54 = vector.shape_cast %53 : vector<16xf32> to vector<16x1xf32>
    %55 = tpu.reciprocal %54 {approx = true} : vector<16x1xf32> -> vector<16x1xf32>
    %56 = vector.broadcast %55 : vector<16x1xf32> to vector<16x16xf32>
    %57 = arith.mulf %52, %56 : vector<16x16xf32>
    %58 = arith.truncf %57 : vector<16x16xf32> to vector<16x16xbf16>
    %cst_21 = arith.constant dense<0.000000e+00> : vector<16x32xf32>
    %59 = tpu.matmul %58, %42, %cst_21 {dimension_numbers = #tpu.dot_dimension_numbers<[1], [0], [0], [1], [0, 0, 1, 1], [], []>} : vector<16x16xbf16>, vector<16x32xbf16>, vector<16x32xf32> -> vector<16x32xf32>
    %60 = arith.truncf %59 : vector<16x32xf32> to vector<16x32xbf16>
    %c32 = arith.constant 32 : index
    %c0_22 = arith.constant 0 : index
    %61 = vector.load %arg5[%c32, %c0_22] : memref<128x128xbf16, #tpu.memory_space<vmem>>, vector<32x128xbf16>
    %cst_23 = arith.constant dense<0.000000e+00> : vector<16x128xf32>
    %62 = tpu.matmul %60, %61, %cst_23 {dimension_numbers = #tpu.dot_dimension_numbers<[1], [0], [0], [1], [0, 0, 1, 1], [], []>} : vector<16x32xbf16>, vector<32x128xbf16>, vector<16x128xf32> -> vector<16x128xf32>
    %63 = arith.addf %36, %62 : vector<16x128xf32>
    %64 = vector.extract_strided_slice %8 {offsets = [0, 64], sizes = [16, 32], strides = [1, 1]} : vector<16x384xf32> to vector<16x32xf32>
    %65 = arith.truncf %64 : vector<16x32xf32> to vector<16x32xbf16>
    %66 = vector.extract_strided_slice %8 {offsets = [0, 192], sizes = [16, 32], strides = [1, 1]} : vector<16x384xf32> to vector<16x32xf32>
    %67 = arith.truncf %66 : vector<16x32xf32> to vector<16x32xbf16>
    %68 = vector.extract_strided_slice %8 {offsets = [0, 320], sizes = [16, 32], strides = [1, 1]} : vector<16x384xf32> to vector<16x32xf32>
    %69 = arith.truncf %68 : vector<16x32xf32> to vector<16x32xbf16>
    %cst_24 = arith.constant dense<0.000000e+00> : vector<16x16xf32>
    %70 = tpu.matmul %65, %67, %cst_24 {dimension_numbers = #tpu.dot_dimension_numbers<[1], [1], [0], [0], [0, 0, 1, 0], [], []>} : vector<16x32xbf16>, vector<16x32xbf16>, vector<16x16xf32> -> vector<16x16xf32>
    %cst_25 = arith.constant 0.176776692 : f32
    %71 = vector.broadcast %cst_25 : f32 to vector<16x16xf32>
    %72 = arith.mulf %70, %71 : vector<16x16xf32>
    %73 = vector.broadcast %2 : vector<1x16xf32> to vector<16x16xf32>
    %74 = arith.addf %72, %73 : vector<16x16xf32>
    %cst_26 = arith.constant dense<0xFF800000> : vector<16xf32>
    %75 = vector.multi_reduction <maximumf>, %74, %cst_26 [1] : vector<16x16xf32> to vector<16xf32>
    %76 = vector.shape_cast %75 : vector<16xf32> to vector<16x1xf32>
    %77 = vector.broadcast %76 : vector<16x1xf32> to vector<16x16xf32>
    %78 = arith.subf %74, %77 : vector<16x16xf32>
    %79 = math.exp %78 : vector<16x16xf32>
    %cst_27 = arith.constant dense<0.000000e+00> : vector<16xf32>
    %80 = vector.multi_reduction <add>, %79, %cst_27 [1] : vector<16x16xf32> to vector<16xf32>
    %81 = vector.shape_cast %80 : vector<16xf32> to vector<16x1xf32>
    %82 = tpu.reciprocal %81 {approx = true} : vector<16x1xf32> -> vector<16x1xf32>
    %83 = vector.broadcast %82 : vector<16x1xf32> to vector<16x16xf32>
    %84 = arith.mulf %79, %83 : vector<16x16xf32>
    %85 = arith.truncf %84 : vector<16x16xf32> to vector<16x16xbf16>
    %cst_28 = arith.constant dense<0.000000e+00> : vector<16x32xf32>
    %86 = tpu.matmul %85, %69, %cst_28 {dimension_numbers = #tpu.dot_dimension_numbers<[1], [0], [0], [1], [0, 0, 1, 1], [], []>} : vector<16x16xbf16>, vector<16x32xbf16>, vector<16x32xf32> -> vector<16x32xf32>
    %87 = arith.truncf %86 : vector<16x32xf32> to vector<16x32xbf16>
    %c64 = arith.constant 64 : index
    %c0_29 = arith.constant 0 : index
    %88 = vector.load %arg5[%c64, %c0_29] : memref<128x128xbf16, #tpu.memory_space<vmem>>, vector<32x128xbf16>
    %cst_30 = arith.constant dense<0.000000e+00> : vector<16x128xf32>
    %89 = tpu.matmul %87, %88, %cst_30 {dimension_numbers = #tpu.dot_dimension_numbers<[1], [0], [0], [1], [0, 0, 1, 1], [], []>} : vector<16x32xbf16>, vector<32x128xbf16>, vector<16x128xf32> -> vector<16x128xf32>
    %90 = arith.addf %63, %89 : vector<16x128xf32>
    %91 = vector.extract_strided_slice %8 {offsets = [0, 96], sizes = [16, 32], strides = [1, 1]} : vector<16x384xf32> to vector<16x32xf32>
    %92 = arith.truncf %91 : vector<16x32xf32> to vector<16x32xbf16>
    %93 = vector.extract_strided_slice %8 {offsets = [0, 224], sizes = [16, 32], strides = [1, 1]} : vector<16x384xf32> to vector<16x32xf32>
    %94 = arith.truncf %93 : vector<16x32xf32> to vector<16x32xbf16>
    %95 = vector.extract_strided_slice %8 {offsets = [0, 352], sizes = [16, 32], strides = [1, 1]} : vector<16x384xf32> to vector<16x32xf32>
    %96 = arith.truncf %95 : vector<16x32xf32> to vector<16x32xbf16>
    %cst_31 = arith.constant dense<0.000000e+00> : vector<16x16xf32>
    %97 = tpu.matmul %92, %94, %cst_31 {dimension_numbers = #tpu.dot_dimension_numbers<[1], [1], [0], [0], [0, 0, 1, 0], [], []>} : vector<16x32xbf16>, vector<16x32xbf16>, vector<16x16xf32> -> vector<16x16xf32>
    %cst_32 = arith.constant 0.176776692 : f32
    %98 = vector.broadcast %cst_32 : f32 to vector<16x16xf32>
    %99 = arith.mulf %97, %98 : vector<16x16xf32>
    %100 = vector.broadcast %2 : vector<1x16xf32> to vector<16x16xf32>
    %101 = arith.addf %99, %100 : vector<16x16xf32>
    %cst_33 = arith.constant dense<0xFF800000> : vector<16xf32>
    %102 = vector.multi_reduction <maximumf>, %101, %cst_33 [1] : vector<16x16xf32> to vector<16xf32>
    %103 = vector.shape_cast %102 : vector<16xf32> to vector<16x1xf32>
    %104 = vector.broadcast %103 : vector<16x1xf32> to vector<16x16xf32>
    %105 = arith.subf %101, %104 : vector<16x16xf32>
    %106 = math.exp %105 : vector<16x16xf32>
    %cst_34 = arith.constant dense<0.000000e+00> : vector<16xf32>
    %107 = vector.multi_reduction <add>, %106, %cst_34 [1] : vector<16x16xf32> to vector<16xf32>
    %108 = vector.shape_cast %107 : vector<16xf32> to vector<16x1xf32>
    %109 = tpu.reciprocal %108 {approx = true} : vector<16x1xf32> -> vector<16x1xf32>
    %110 = vector.broadcast %109 : vector<16x1xf32> to vector<16x16xf32>
    %111 = arith.mulf %106, %110 : vector<16x16xf32>
    %112 = arith.truncf %111 : vector<16x16xf32> to vector<16x16xbf16>
    %cst_35 = arith.constant dense<0.000000e+00> : vector<16x32xf32>
    %113 = tpu.matmul %112, %96, %cst_35 {dimension_numbers = #tpu.dot_dimension_numbers<[1], [0], [0], [1], [0, 0, 1, 1], [], []>} : vector<16x16xbf16>, vector<16x32xbf16>, vector<16x32xf32> -> vector<16x32xf32>
    %114 = arith.truncf %113 : vector<16x32xf32> to vector<16x32xbf16>
    %c96 = arith.constant 96 : index
    %c0_36 = arith.constant 0 : index
    %115 = vector.load %arg5[%c96, %c0_36] : memref<128x128xbf16, #tpu.memory_space<vmem>>, vector<32x128xbf16>
    %cst_37 = arith.constant dense<0.000000e+00> : vector<16x128xf32>
    %116 = tpu.matmul %114, %115, %cst_37 {dimension_numbers = #tpu.dot_dimension_numbers<[1], [0], [0], [1], [0, 0, 1, 1], [], []>} : vector<16x32xbf16>, vector<32x128xbf16>, vector<16x128xf32> -> vector<16x128xf32>
    %117 = arith.addf %90, %116 : vector<16x128xf32>
    %c0_38 = arith.constant 0 : index
    %c0_39 = arith.constant 0 : index
    %118 = vector.load %arg6[%c0_38, %c0_39] : memref<1x128xf32, #tpu.memory_space<vmem>>, vector<1x128xf32>
    %119 = vector.broadcast %118 : vector<1x128xf32> to vector<16x128xf32>
    %120 = arith.addf %117, %119 : vector<16x128xf32>
    %121 = arith.addf %120, %0 : vector<16x128xf32>
    %c0_40 = arith.constant 0 : index
    %c0_41 = arith.constant 0 : index
    %122 = vector.load %arg7[%c0_40, %c0_41] : memref<1x128xf32, #tpu.memory_space<vmem>>, vector<1x128xf32>
    %c0_42 = arith.constant 0 : index
    %c0_43 = arith.constant 0 : index
    %123 = vector.load %arg8[%c0_42, %c0_43] : memref<1x128xf32, #tpu.memory_space<vmem>>, vector<1x128xf32>
    %cst_44 = arith.constant dense<0.000000e+00> : vector<16xf32>
    %124 = vector.multi_reduction <add>, %121, %cst_44 [1] : vector<16x128xf32> to vector<16xf32>
    %125 = vector.shape_cast %124 : vector<16xf32> to vector<16x1xf32>
    %cst_45 = arith.constant 1.280000e+02 : f32
    %126 = vector.broadcast %cst_45 : f32 to vector<16x1xf32>
    %127 = arith.divf %125, %126 : vector<16x1xf32>
    %128 = vector.broadcast %127 : vector<16x1xf32> to vector<16x128xf32>
    %129 = arith.subf %121, %128 : vector<16x128xf32>
    %130 = arith.mulf %129, %129 : vector<16x128xf32>
    %cst_46 = arith.constant dense<0.000000e+00> : vector<16xf32>
    %131 = vector.multi_reduction <add>, %130, %cst_46 [1] : vector<16x128xf32> to vector<16xf32>
    %132 = vector.shape_cast %131 : vector<16xf32> to vector<16x1xf32>
    %cst_47 = arith.constant 1.280000e+02 : f32
    %133 = vector.broadcast %cst_47 : f32 to vector<16x1xf32>
    %134 = arith.divf %132, %133 : vector<16x1xf32>
    %cst_48 = arith.constant 9.99999996E-13 : f32
    %135 = vector.broadcast %cst_48 : f32 to vector<16x1xf32>
    %136 = arith.addf %134, %135 : vector<16x1xf32>
    %137 = math.rsqrt %136 : vector<16x1xf32>
    %138 = vector.broadcast %137 : vector<16x1xf32> to vector<16x128xf32>
    %139 = arith.mulf %129, %138 : vector<16x128xf32>
    %140 = vector.broadcast %122 : vector<1x128xf32> to vector<16x128xf32>
    %141 = arith.mulf %139, %140 : vector<16x128xf32>
    %142 = vector.broadcast %123 : vector<1x128xf32> to vector<16x128xf32>
    %143 = arith.addf %141, %142 : vector<16x128xf32>
    %144 = arith.truncf %143 : vector<16x128xf32> to vector<16x128xbf16>
    %c0_49 = arith.constant 0 : index
    %c0_50 = arith.constant 0 : index
    %145 = vector.load %arg9[%c0_49, %c0_50] : memref<128x512xbf16, #tpu.memory_space<vmem>>, vector<128x512xbf16>
    %cst_51 = arith.constant dense<0.000000e+00> : vector<16x512xf32>
    %146 = tpu.matmul %144, %145, %cst_51 {dimension_numbers = #tpu.dot_dimension_numbers<[1], [0], [0], [1], [0, 0, 1, 1], [], []>} : vector<16x128xbf16>, vector<128x512xbf16>, vector<16x512xf32> -> vector<16x512xf32>
    %c0_52 = arith.constant 0 : index
    %c0_53 = arith.constant 0 : index
    %147 = vector.load %arg10[%c0_52, %c0_53] : memref<1x512xf32, #tpu.memory_space<vmem>>, vector<1x512xf32>
    %148 = vector.broadcast %147 : vector<1x512xf32> to vector<16x512xf32>
    %149 = arith.addf %146, %148 : vector<16x512xf32>
    %150 = arith.mulf %149, %149 : vector<16x512xf32>
    %151 = arith.mulf %149, %150 : vector<16x512xf32>
    %cst_54 = arith.constant 4.471500e-02 : f32
    %152 = vector.broadcast %cst_54 : f32 to vector<16x512xf32>
    %153 = arith.mulf %152, %151 : vector<16x512xf32>
    %154 = arith.addf %149, %153 : vector<16x512xf32>
    %cst_55 = arith.constant 0.797884583 : f32
    %155 = vector.broadcast %cst_55 : f32 to vector<16x512xf32>
    %156 = arith.mulf %155, %154 : vector<16x512xf32>
    %157 = math.tanh %156 : vector<16x512xf32>
    %cst_56 = arith.constant 1.000000e+00 : f32
    %158 = vector.broadcast %cst_56 : f32 to vector<16x512xf32>
    %159 = arith.addf %158, %157 : vector<16x512xf32>
    %cst_57 = arith.constant 5.000000e-01 : f32
    %160 = vector.broadcast %cst_57 : f32 to vector<16x512xf32>
    %161 = arith.mulf %160, %159 : vector<16x512xf32>
    %162 = arith.mulf %149, %161 : vector<16x512xf32>
    %163 = arith.truncf %162 : vector<16x512xf32> to vector<16x512xbf16>
    %c0_58 = arith.constant 0 : index
    %c0_59 = arith.constant 0 : index
    %164 = vector.load %arg11[%c0_58, %c0_59] : memref<512x128xbf16, #tpu.memory_space<vmem>>, vector<512x128xbf16>
    %cst_60 = arith.constant dense<0.000000e+00> : vector<16x128xf32>
    %165 = tpu.matmul %163, %164, %cst_60 {dimension_numbers = #tpu.dot_dimension_numbers<[1], [0], [0], [1], [0, 0, 1, 1], [], []>} : vector<16x512xbf16>, vector<512x128xbf16>, vector<16x128xf32> -> vector<16x128xf32>
    %c0_61 = arith.constant 0 : index
    %c0_62 = arith.constant 0 : index
    %166 = vector.load %arg12[%c0_61, %c0_62] : memref<1x128xf32, #tpu.memory_space<vmem>>, vector<1x128xf32>
    %167 = vector.broadcast %166 : vector<1x128xf32> to vector<16x128xf32>
    %168 = arith.addf %165, %167 : vector<16x128xf32>
    %169 = arith.addf %168, %143 : vector<16x128xf32>
    %c0_63 = arith.constant 0 : index
    %c0_64 = arith.constant 0 : index
    %170 = vector.load %arg13[%c0_63, %c0_64] : memref<1x128xf32, #tpu.memory_space<vmem>>, vector<1x128xf32>
    %c0_65 = arith.constant 0 : index
    %c0_66 = arith.constant 0 : index
    %171 = vector.load %arg14[%c0_65, %c0_66] : memref<1x128xf32, #tpu.memory_space<vmem>>, vector<1x128xf32>
    %cst_67 = arith.constant dense<0.000000e+00> : vector<16xf32>
    %172 = vector.multi_reduction <add>, %169, %cst_67 [1] : vector<16x128xf32> to vector<16xf32>
    %173 = vector.shape_cast %172 : vector<16xf32> to vector<16x1xf32>
    %cst_68 = arith.constant 1.280000e+02 : f32
    %174 = vector.broadcast %cst_68 : f32 to vector<16x1xf32>
    %175 = arith.divf %173, %174 : vector<16x1xf32>
    %176 = vector.broadcast %175 : vector<16x1xf32> to vector<16x128xf32>
    %177 = arith.subf %169, %176 : vector<16x128xf32>
    %178 = arith.mulf %177, %177 : vector<16x128xf32>
    %cst_69 = arith.constant dense<0.000000e+00> : vector<16xf32>
    %179 = vector.multi_reduction <add>, %178, %cst_69 [1] : vector<16x128xf32> to vector<16xf32>
    %180 = vector.shape_cast %179 : vector<16xf32> to vector<16x1xf32>
    %cst_70 = arith.constant 1.280000e+02 : f32
    %181 = vector.broadcast %cst_70 : f32 to vector<16x1xf32>
    %182 = arith.divf %180, %181 : vector<16x1xf32>
    %cst_71 = arith.constant 9.99999996E-13 : f32
    %183 = vector.broadcast %cst_71 : f32 to vector<16x1xf32>
    %184 = arith.addf %182, %183 : vector<16x1xf32>
    %185 = math.rsqrt %184 : vector<16x1xf32>
    %186 = vector.broadcast %185 : vector<16x1xf32> to vector<16x128xf32>
    %187 = arith.mulf %177, %186 : vector<16x128xf32>
    %188 = vector.broadcast %170 : vector<1x128xf32> to vector<16x128xf32>
    %189 = arith.mulf %187, %188 : vector<16x128xf32>
    %190 = vector.broadcast %171 : vector<1x128xf32> to vector<16x128xf32>
    %191 = arith.addf %189, %190 : vector<16x128xf32>
    %c0_72 = arith.constant 0 : index
    %c0_73 = arith.constant 0 : index
    %192 = vector.load %arg15[%c0_72, %c0_73] : memref<16x128xf32, #tpu.memory_space<vmem>>, vector<16x128xf32>
    tpu.vector_store %arg15[%c0_72, %c0_73], %191 {strides = array<i32>} : memref<16x128xf32, #tpu.memory_space<vmem>>, vector<16x128xf32>,
    return
  }
  func.func @transform_0(%arg0: i32) -> (i32, i32) {
    %c0_i32 = arith.constant 0 : i32
    %c0_i32_0 = arith.constant 0 : i32
    return %arg0, %c0_i32 : i32, i32
  }
  func.func @transform_1(%arg0: i32) -> (i32, i32, i32) {
    %c0_i32 = arith.constant 0 : i32
    %c0_i32_0 = arith.constant 0 : i32
    %c0_i32_1 = arith.constant 0 : i32
    return %arg0, %c0_i32, %c0_i32_0 : i32, i32, i32
  }
  func.func @transform_2(%arg0: i32) -> (i32, i32) {
    %c0_i32 = arith.constant 0 : i32
    %c0_i32_0 = arith.constant 0 : i32
    %c0_i32_1 = arith.constant 0 : i32
    return %c0_i32, %c0_i32_0 : i32, i32
  }
  func.func @transform_3(%arg0: i32) -> (i32, i32) {
    %c0_i32 = arith.constant 0 : i32
    %c0_i32_0 = arith.constant 0 : i32
    %c0_i32_1 = arith.constant 0 : i32
    return %c0_i32, %c0_i32_0 : i32, i32
  }
  func.func @transform_4(%arg0: i32) -> (i32, i32) {
    %c0_i32 = arith.constant 0 : i32
    %c0_i32_0 = arith.constant 0 : i32
    %c0_i32_1 = arith.constant 0 : i32
    return %c0_i32, %c0_i32_0 : i32, i32
  }
  func.func @transform_5(%arg0: i32) -> (i32, i32) {
    %c0_i32 = arith.constant 0 : i32
    %c0_i32_0 = arith.constant 0 : i32
    %c0_i32_1 = arith.constant 0 : i32
    return %c0_i32, %c0_i32_0 : i32, i32
  }
  func.func @transform_6(%arg0: i32) -> (i32, i32) {
    %c0_i32 = arith.constant 0 : i32
    %c0_i32_0 = arith.constant 0 : i32
    %c0_i32_1 = arith.constant 0 : i32
    return %c0_i32, %c0_i32_0 : i32, i32
  }
  func.func @transform_7(%arg0: i32) -> (i32, i32) {
    %c0_i32 = arith.constant 0 : i32
    %c0_i32_0 = arith.constant 0 : i32
    %c0_i32_1 = arith.constant 0 : i32
    return %c0_i32, %c0_i32_0 : i32, i32
  }
  func.func @transform_8(%arg0: i32) -> (i32, i32) {
    %c0_i32 = arith.constant 0 : i32
    %c0_i32_0 = arith.constant 0 : i32
    %c0_i32_1 = arith.constant 0 : i32
    return %c0_i32, %c0_i32_0 : i32, i32
  }
  func.func @transform_9(%arg0: i32) -> (i32, i32) {
    %c0_i32 = arith.constant 0 : i32
    %c0_i32_0 = arith.constant 0 : i32
    %c0_i32_1 = arith.constant 0 : i32
    return %c0_i32, %c0_i32_0 : i32, i32
  }
  func.func @transform_10(%arg0: i32) -> (i32, i32) {
    %c0_i32 = arith.constant 0 : i32
    %c0_i32_0 = arith.constant 0 : i32
    %c0_i32_1 = arith.constant 0 : i32
    return %c0_i32, %c0_i32_0 : i32, i32
  }
  func.func @transform_11(%arg0: i32) -> (i32, i32) {
    %c0_i32 = arith.constant 0 : i32
    %c0_i32_0 = arith.constant 0 : i32
    %c0_i32_1 = arith.constant 0 : i32
    return %c0_i32, %c0_i32_0 : i32, i32
  }
  func.func @transform_12(%arg0: i32) -> (i32, i32) {
    %c0_i32 = arith.constant 0 : i32
    %c0_i32_0 = arith.constant 0 : i32
    %c0_i32_1 = arith.constant 0 : i32
    return %c0_i32, %c0_i32_0 : i32, i32
  }
  func.func @transform_13(%arg0: i32) -> (i32, i32) {
    %c0_i32 = arith.constant 0 : i32
    %c0_i32_0 = arith.constant 0 : i32
    %c0_i32_1 = arith.constant 0 : i32
    return %c0_i32, %c0_i32_0 : i32, i32
  }
  func.func @transform_14(%arg0: i32) -> (i32, i32) {
    %c0_i32 = arith.constant 0 : i32
    %c0_i32_0 = arith.constant 0 : i32
    return %arg0, %c0_i32 : i32, i32
  }
}

module attributes {stable_mosaic.version = 11 : i64} {
  func.func @_head_kernel(%arg0: i32, %arg1: memref<2x256xf32, #tpu.memory_space<vmem>>, %arg2: memref<256x128xbf16, #tpu.memory_space<vmem>>, %arg3: memref<1x128xf32, #tpu.memory_space<vmem>>, %arg4: memref<2x128xf32, #tpu.memory_space<vmem>>) attributes {dimension_semantics = [#tpu.dimension_semantics<arbitrary>], iteration_bounds = array<i64: 1>, scalar_prefetch = 0 : i64, scratch_operands = 0 : i64, tpu.core_type = #tpu.core_type<tc>, window_params = [{pipeline_mode = #tpu.pipeline_mode<synchronous>, transform_indices = @transform_0, window_bounds = array<i64: 2, 256>}, {pipeline_mode = #tpu.pipeline_mode<synchronous>, transform_indices = @transform_1, window_bounds = array<i64: 256, 128>}, {pipeline_mode = #tpu.pipeline_mode<synchronous>, transform_indices = @transform_2, window_bounds = array<i64: 1, 128>}, {pipeline_mode = #tpu.pipeline_mode<synchronous>, transform_indices = @transform_3, window_bounds = array<i64: 2, 128>}]} {
    %c0 = arith.constant 0 : index
    %c0_0 = arith.constant 0 : index
    %0 = vector.load %arg1[%c0, %c0_0] : memref<2x256xf32, #tpu.memory_space<vmem>>, vector<2x256xf32>
    %1 = arith.truncf %0 : vector<2x256xf32> to vector<2x256xbf16>
    %c0_1 = arith.constant 0 : index
    %c0_2 = arith.constant 0 : index
    %2 = vector.load %arg2[%c0_1, %c0_2] : memref<256x128xbf16, #tpu.memory_space<vmem>>, vector<256x128xbf16>
    %cst = arith.constant dense<0.000000e+00> : vector<2x128xf32>
    %3 = tpu.matmul %1, %2, %cst {dimension_numbers = #tpu.dot_dimension_numbers<[1], [0], [0], [1], [0, 0, 1, 1], [], []>} : vector<2x256xbf16>, vector<256x128xbf16>, vector<2x128xf32> -> vector<2x128xf32>
    %c0_3 = arith.constant 0 : index
    %c0_4 = arith.constant 0 : index
    %4 = vector.load %arg3[%c0_3, %c0_4] : memref<1x128xf32, #tpu.memory_space<vmem>>, vector<1x128xf32>
    %5 = vector.broadcast %4 : vector<1x128xf32> to vector<2x128xf32>
    %6 = arith.addf %3, %5 : vector<2x128xf32>
    %c0_5 = arith.constant 0 : index
    %c0_6 = arith.constant 0 : index
    %7 = vector.load %arg4[%c0_5, %c0_6] : memref<2x128xf32, #tpu.memory_space<vmem>>, vector<2x128xf32>
    tpu.vector_store %arg4[%c0_5, %c0_6], %6 {strides = array<i32>} : memref<2x128xf32, #tpu.memory_space<vmem>>, vector<2x128xf32>,
    return
  }
  func.func @transform_0(%arg0: i32) -> (i32, i32) {
    %c0_i32 = arith.constant 0 : i32
    %c0_i32_0 = arith.constant 0 : i32
    %c0_i32_1 = arith.constant 0 : i32
    return %c0_i32, %c0_i32_0 : i32, i32
  }
  func.func @transform_1(%arg0: i32) -> (i32, i32) {
    %c0_i32 = arith.constant 0 : i32
    %c0_i32_0 = arith.constant 0 : i32
    %c0_i32_1 = arith.constant 0 : i32
    return %c0_i32, %c0_i32_0 : i32, i32
  }
  func.func @transform_2(%arg0: i32) -> (i32, i32) {
    %c0_i32 = arith.constant 0 : i32
    %c0_i32_0 = arith.constant 0 : i32
    %c0_i32_1 = arith.constant 0 : i32
    return %c0_i32, %c0_i32_0 : i32, i32
  }
  func.func @transform_3(%arg0: i32) -> (i32, i32) {
    %c0_i32 = arith.constant 0 : i32
    %c0_i32_0 = arith.constant 0 : i32
    %c0_i32_1 = arith.constant 0 : i32
    return %c0_i32, %c0_i32_0 : i32, i32
  }
}

</mosaic_0001>

<bundles_post_ra>
// kernel: prompt_bert_forward.4
= control target key start
LH: loop header
LB: loop body
LE: loop exit
PB: predicated region body
PF: predicated region fallthrough
CT: control target
= control target key end

     0   :  { %s328_s12 = smov 0   ;;  %s358_s0 = inlined_call_operand.vmem [shape: f32[32,128], index: 0, kind: input, shape index: {}]   ;;  %s359_s1 = inlined_call_operand.vmem [shape: f32[1,128], index: 1, kind: input, shape index: {}]   ;;  %s360_s2 = inlined_call_operand.vmem [shape: f32[1,128], index: 2, kind: input, shape index: {}]   ;;  %s361_s3 = inlined_call_operand.vmem [shape: f32[32,128], index: 3, kind: output, shape index: {}]  }
   0x1 LB: > { %s275_s13 = sadd.s32 4294967295, %s306_s12   ;;  %p279_p0 = scmp.ge.s32.totalorder %s306_s12, 1  ;;  %s306_s12 = sphi %s328_s12, %s13_s12  }
   0x2   : > { %p138_p1 = scmp.lt.s32.totalorder %s306_s12, 3 }
   0x4   : > { %p139_p2 = pnand %p279_p0, %p138_p1 }
   0x5   : > { %s280_s14 = sshll.u32 (!%p139_p2), %s275_s13, 1 }
   0x6   : > { %142 = sbr.rel (%p139_p2) target bundleno = 326 (0x146), region = 32  ;;  %p163_p3 = scmp.lt.s32.totalorder (!%p139_p2), %s280_s14, 3 }
   0xb   : > { %s363_s14 = smov (!%p163_p3, %s280_s14), 3  ;;  %v284_v17 = vld [vmem:[%s359_s1] ss:$0 sm:$0xff] }
   0xc   : > { %s281_s15 = sshll.u32 %s363_s14, 3  ;;  %v285_v19 = vld [vmem:[%s360_s2] ss:$0 sm:$0xff] }
   0xd   : > { %s166_s18 = scalar_lea.vmem %s358_s0, %s281_s15  ;;  %s172_s25 = scalar_lea.vmem %s361_s3, %s281_s15 }
   0xe   : > { %v174_v0 = vld [vmem:[%s166_s18] sm:$0xff]  ;;  %v175_v1 = vld [vmem:[%s166_s18 + $0x8] sm:$0xff] }
   0xf   : > { %178 = vadd.xlane.f32.xlu0 %v174_v0 }
  0x13   : > { %180 = vadd.xlane.f32.xlu0 %v175_v1 }
  0x98   : > { %v179_v2 = vpop.xlane.xlu0 %178 }
  0x99   : > { %v183_v3 = vmul.f32 0.0078125, %v179_v2 }
  0x9b   : > { %v185_v4 = vsub.f32 %v174_v0, %v183_v3 }
  0x9c   : > { %v181_v5 = vpop.xlane.xlu0 %180 }
  0x9d   : > { %v184_v6 = vmul.f32 0.0078125, %v181_v5  ;;  %v187_v7 = vmul.f32 %v185_v4, %v185_v4 }
  0x9f   : > { %v186_v8 = vsub.f32 %v175_v1, %v184_v6  ;;  %189 = vadd.xlane.f32.xlu1 %v187_v7 }
  0xa1   : > { %v188_v9 = vmul.f32 %v186_v8, %v186_v8 }
  0xa3   : > { %191 = vadd.xlane.f32.xlu1 %v188_v9 }
 0x128   : > { %v190_v10 = vpop.xlane.xlu1 %189 }
 0x129   : > { %v193_v11 = vmul.f32 0.0078125, %v190_v10 }
 0x12b   : > { %v195_v12 = vadd.f32 1e-12, %v193_v11 }
 0x12c   : > { %v192_v13 = vpop.xlane.xlu1 %191 }
 0x12d   : > { %296 = vrsqrt.f32 %v195_v12  ;;  %v194_v14 = vmul.f32 0.0078125, %v192_v13 }
 0x12f   : > { %v196_v15 = vadd.f32 1e-12, %v194_v14 }
 0x131   : > { %298 = vrsqrt.f32 %v196_v15 }
 0x13a   : > { %v297_v16 = vpop.eup %296 }
 0x13b   : > { %v199_v18 = vmul.f32 %v297_v16, %v185_v4 }
 0x13d   : > { %v207_v20 = vmul.f32 %v284_v17, %v199_v18 }
 0x13e   : > { %v299_v21 = vpop.eup %298 }
 0x13f   : > { %v215_v22 = vadd.f32 %v285_v19, %v207_v20  ;;  %v200_v23 = vmul.f32 %v299_v21, %v186_v8 }
 0x141   : > { %217 = vst [vmem:[%s172_s25] sm:$0xff] %v215_v22  ;;  %v208_v24 = vmul.f32 %v284_v17, %v200_v23 }
 0x143   : > { %v216_v25 = vadd.f32 %v285_v19, %v208_v24 }
 0x145   : > { %218 = vst [vmem:[%s172_s25 + $0x8] sm:$0xff] %v216_v25 }
 0x146 PF: > { %s13_s12 = sadd.s32 1, %s306_s12  }
 0x147   : > { %p10_p4 = scmp.ge.s32.totalorder %s13_s12, 4  }
 0x149   :  { %12 = sbr.rel (!%p10_p4) target bundleno = 1 (0x1), region = 62 }

// kernel: prompt_bert_forward.7
= control target key start
LH: loop header
LB: loop body
LE: loop exit
PB: predicated region body
PF: predicated region fallthrough
CT: control target
= control target key end

     0   :  { %s377_s0 = inlined_call_operand.vmem [shape: f32[2,256], index: 0, kind: input, shape index: {}]   ;;  %s378_s1 = inlined_call_operand.vmem [shape: bf16[256,128], index: 1, kind: input, shape index: {}]   ;;  %s379_s2 = inlined_call_operand.vmem [shape: f32[1,128], index: 2, kind: input, shape index: {}]   ;;  %s380_s3 = inlined_call_operand.hbm [shape: f32[2,128], index: 3, kind: output, shape index: {}]  }
   0x1   :  { %v261_v0 = vld [vmem:[%s378_s1 + $0x78] sm:$0xff]   ;;  %v263_v2 = vld [vmem:[%s378_s1 + $0x70] sm:$0xff]   ;;  %v265_v4 = vld [vmem:[%s378_s1 + $0x68] sm:$0xff]  }
   0x2   :  { %v262_v1 = vld [vmem:[%s378_s1 + $0x38] sm:$0xff]   ;;  %238 = vmatprep.subr.bf16.mxu0 %v261_v0  ;;  %v264_v3 = vld [vmem:[%s378_s1 + $0x30] sm:$0xff]   ;;  %v266_v5 = vld [vmem:[%s378_s1 + $0x28] sm:$0xff]  }
   0x3   :  { %239 = vmatpush3.bf16.msra.mxu0 %v262_v1  ;;  %v267_v6 = vld [vmem:[%s378_s1 + $0x60] sm:$0xff]   ;;  %v269_v8 = vld [vmem:[%s378_s1 + $0x58] sm:$0xff]   ;;  %v271_v10 = vld [vmem:[%s378_s1 + $0x50] sm:$0xff]  }
   0x4   :  { %240 = vmatprep.subr.bf16.mxu0 %v263_v2  ;;  %v268_v7 = vld [vmem:[%s378_s1 + $0x20] sm:$0xff]   ;;  %v270_v9 = vld [vmem:[%s378_s1 + $0x18] sm:$0xff]  }
   0x5   :  { %v220_v11 = vld.sshfl [vmem:[%s377_s0] sm:$0x33 pattern:$0x76325410] }
   0x7   :  { %241 = vmatpush3.bf16.msra.mxu0 %v264_v3 }
   0x8   :  { %242 = vmatprep.subr.bf16.mxu0 %v265_v4 }
   0xb   :  { %243 = vmatpush3.bf16.msra.mxu0 %v266_v5 }
   0xc   :  { %244 = vmatprep.subr.bf16.mxu0 %v267_v6 }
   0xf   :  { %245 = vmatpush3.bf16.msra.mxu0 %v268_v7 }
  0x10   :  { %246 = vmatprep.subr.bf16.mxu0 %v269_v8 }
  0x11   :  { %8 = vsyncpa [#allocation3], 0  ;;  %v25_v12 = vcombine.high %v220_v11, %v220_v11  ;;  %v272_v13 = vld [vmem:[%s378_s1 + $0x10] sm:$0xff]   ;;  %v273_v15 = vld [vmem:[%s378_s1 + $0x48] sm:$0xff]   ;;  %v28_v19 = vpack.c.bf16 %v220_v11, %v220_v11  ;;  %s299_s20 = smov [#allocation2]  }
  0x12   :  { %v274_v16 = vld [vmem:[%s378_s1 + $0x8] sm:$0xff]   ;;  %v275_v17 = vld [vmem:[%s378_s1 + $0x40] sm:$0xff]   ;;  %s212_s21 = sshll.u32 %s299_s20, 4  ;;  %s213_s21 = int_to_ptr.vmem [resolvable:$true] %s212_s21 }
  0x13   :  { %247 = vmatpush3.bf16.msra.mxu0 %v270_v9  ;;  %v29_v14 = vpack.c.bf16 %v25_v12, %v25_v12  ;;  %v276_v18 = vld [vmem:[%s378_s1] sm:$0xff]   ;;  %s277_s22 = scalar_lea.vmem %s213_s21, 32  ;;  %p282_p1 = scmp.lt.s32.totalorder %s213_s21, %s213_s21 }
  0x14   :  { %248 = vmatprep.subr.bf16.mxu0 %v271_v10  ;;  %v221_v22 = vld [vmem:[%s379_s2] ss:$0 sm:$0xff]  ;;  %p278_p0 = scmp.ne.s32.totalorder %s213_s21, %s277_s22  ;;  %p283_p2 = scmp.lt.s32.totalorder %s277_s22, %s277_s22 }
  0x15   :  { %197 = vmatprep.mubr.bf16.mxu0 %v29_v14 }
  0x16   :  { %p284_p3 = por %p283_p2, %p282_p1 }
  0x17   :  { %249 = vmatpush3.bf16.msra.mxu0 %v272_v13 }
  0x18   :  { %250 = vmatprep.subr.bf16.mxu0 %v273_v15  ;;  %p285_p4 = pnand %p284_p3, %p278_p0 }
  0x1b   :  { %251 = vmatpush3.bf16.msra.mxu0 %v274_v16 }
  0x1c   :  { %252 = vmatprep.subr.bf16.mxu0 %v275_v17 }
  0x1f   :  { %253 = vmatpush3.bf16.msra.mxu0 %v276_v18 }
  0x22   :  { %198 = vmatmul.mubr.bf16.vlgmr.msra.gmra.mxu0 %v28_v19 }
  0xe2   :  { %v254_v20 = vpop.f32.mrf.mxu0 }
  0xe4   :  { %v255_v21 = vpop.f32.mrf.mxu0 }
  0xe5   :  { %v256_v23 = vadd.f32 %v255_v21, %v254_v20 }
  0xe6   :  { %v257_v24 = vpop.f32.mrf.mxu0 }
  0xe7   :  { %v200_v25 = vadd.f32 %v256_v23, %v221_v22 }
  0xe8   :  { %v258_v26 = vpop.f32.mrf.mxu0 }
  0xe9   :  { %205 = vst [vmem:[#allocation2] sm:$0x3] %v200_v25 }
  0xea   :  { %288 = shalt.err (!%p285_p4)
}
  0xeb   :  { %215 = dma.vmem_to_hbm [thread:$0]  %s213_s21, 32, %s380_s3, [#allocation3]  }
  0xec   :  { %297 = dma.done.wait [#allocation3], 32  }
  0xed   :  { %298 = vsyncadd [#allocation3], 4294967264 }
  0xee   :  { %219 = vsyncpa [#allocation3], 1 }

// kernel: prompt_bert_forward.6
= control target key start
LH: loop header
LB: loop body
LE: loop exit
PB: predicated region body
PF: predicated region fallthrough
CT: control target
= control target key end

     0   :  { %s2975_s29 = smov 0   ;;  %s3558_s0 = inlined_call_operand.vmem [shape: f32[32,128], index: 0, kind: input, shape index: {}]   ;;  %s3559_s1 = inlined_call_operand.vmem [shape: f32[2,1,16], index: 1, kind: input, shape index: {}]   ;;  %s3560_s2 = inlined_call_operand.vmem [shape: bf16[128,384], index: 2, kind: input, shape index: {}]   ;;  %s3561_s3 = inlined_call_operand.vmem [shape: f32[1,384], index: 3, kind: input, shape index: {}]   ;;  %s3562_s4 = inlined_call_operand.vmem [shape: bf16[128,128], index: 4, kind: input, shape index: {}]   ;;  %s3563_s5 = inlined_call_operand.vmem [shape: f32[1,128], index: 5, kind: input, shape index: {}]   ;;  %s3564_s6 = inlined_call_operand.vmem [shape: f32[1,128], index: 6, kind: input, shape index: {}]   ;;  %s3565_s7 = inlined_call_operand.vmem [shape: f32[1,128], index: 7, kind: input, shape index: {}]   ;;  %s3566_s8 = inlined_call_operand.vmem [shape: bf16[128,512], index: 8, kind: input, shape index: {}]   ;;  %s3567_s9 = inlined_call_operand.vmem [shape: f32[1,512], index: 9, kind: input, shape index: {}]   ;;  %s3568_s10 = inlined_call_operand.vmem [shape: bf16[512,128], index: 10, kind: input, shape index: {}]   ;;  %s3569_s11 = inlined_call_operand.vmem [shape: f32[1,128], index: 11, kind: input, shape index: {}]   ;;  %s3570_s12 = inlined_call_operand.vmem [shape: f32[1,128], index: 12, kind: input, shape index: {}]   ;;  %s3571_s13 = inlined_call_operand.vmem [shape: f32[1,128], index: 13, kind: input, shape index: {}]   ;;  %s3572_s14 = inlined_call_operand.vmem [shape: f32[32,128], index: 14, kind: output, shape index: {}]  }
   0x1 LB: > { %s2981_s30 = sadd.s32 4294967295, %s2892_s29   ;;  %p2393_p0 = scmp.ge.s32.totalorder %s2892_s29, 1  ;;  %s2892_s29 = sphi %s2975_s29, %s24_s29  }
   0x2   : > { %p421_p1 = scmp.lt.s32.totalorder %s2892_s29, 3 }
   0x4   : > { %p422_p2 = pnand %p2393_p0, %p421_p1 }
   0x5   : > { %s2394_s17 = sshll.u32 (!%p422_p2), %s2981_s30, 1  ;;  %s2897_s15 = smov (!%p422_p2), 96  }
   0x6   : > { %425 = sbr.rel (%p422_p2) target bundleno = 3589 (0xe05), region = 76  ;;  %p471_p3 = scmp.lt.s32.totalorder (!%p422_p2), %s2394_s17, 3 }
   0x7   : > { %p476_p4 = scmp.lt.s32.totalorder (!%p422_p2), %s2981_s30, 1  ;;  %s2899_s22 = smov (!%p422_p2), 32  }
   0xb   : > { %v2710_v0 = vld [vmem:[%s3560_s2 + $0xac] ss:$12 sps:$4 sm:$0xff]   ;;  %v2712_v1 = vld [vmem:[%s3560_s2 + $0xa8] ss:$12 sps:$4 sm:$0xff]   ;;  %v2894_v2 = vmov 0   ;;  %s3574_s17 = smov (!%p471_p3, %s2394_s17), 3  ;;  %v524_v21 = vlaneseq }
   0xc   : > { %699 = vmatprep.mubr.bf16.mxu0 %v2894_v2  ;;  %667 = vmatprep.subr.bf16.mxu0 %v2710_v0  ;;  %v2713_v3 = vld [vmem:[%s3560_s2 + $0x94] ss:$12 sps:$4 sm:$0xff]   ;;  %v2715_v4 = vld [vmem:[%s3560_s2 + $0x90] ss:$12 sps:$4 sm:$0xff]   ;;  %v2718_v6 = vld [vmem:[%s3560_s2 + $0x78] ss:$12 sps:$4 sm:$0xff]  }
   0xd   : > { %668 = vmatpush1.bf16.msra.mxu0 %v2712_v1  ;;  %v2716_v5 = vld [vmem:[%s3560_s2 + $0x7c] ss:$12 sps:$4 sm:$0xff]   ;;  %v2719_v7 = vld [vmem:[%s3560_s2 + $0x64] ss:$12 sps:$4 sm:$0xff]   ;;  %v2721_v8 = vld [vmem:[%s3560_s2 + $0x60] ss:$12 sps:$4 sm:$0xff]  }
   0xe   : > { %669 = vmatprep.subr.bf16.mxu0 %v2713_v3  ;;  %v2722_v9 = vld [vmem:[%s3560_s2 + $0x4c] ss:$12 sps:$4 sm:$0xff]   ;;  %s2395_s21 = sshll.u32 %s3574_s17, 3  ;;  %v2724_v10 = vld [vmem:[%s3560_s2 + $0x48] ss:$12 sps:$4 sm:$0xff]   ;;  %v2895_v20 = vmov 0.0  }
   0xf   : > { %v2725_v11 = vld [vmem:[%s3560_s2 + $0x34] ss:$12 sps:$4 sm:$0xff]   ;;  %v2727_v12 = vld [vmem:[%s3560_s2 + $0x30] ss:$12 sps:$4 sm:$0xff]   ;;  %v2730_v14 = vld [vmem:[%s3560_s2 + $0x18] ss:$12 sps:$4 sm:$0xff]   ;;  %s474_s24 = scalar_lea.vmem %s3558_s0, %s2395_s21  ;;  %2596 = vmatprep.subr.bf16.mxu1 %v2895_v20  ;;  %s483_s18 = scalar_lea.vmem %s3572_s14, %s2395_s21 }
  0x10   : > { %v2728_v13 = vld [vmem:[%s3560_s2 + $0x1c] ss:$12 sps:$4 sm:$0xff]   ;;  %v2731_v15 = vld [vmem:[%s3560_s2 + $0x4] ss:$12 sps:$4 sm:$0xff]   ;;  %v2733_v16 = vld [vmem:[%s3560_s2] ss:$12 sps:$4 sm:$0xff]  }
  0x11   : > { %670 = vmatpush1.bf16.msra.mxu0 %v2715_v4  ;;  %v3043_v17 = vld [vmem:[%s474_s24] sm:$0xff]  ;;  %v3045_v18 = vld [vmem:[%s474_s24 + $0x8] sm:$0xff]  ;;  %vm2896_vm0 = vmmov 0   ;;  %v3055_v22 = vshrl.u32 %v524_v21, 7  ;;  %vm754_vm1 = vcmask 261120   ;;  %s3576_s30 = smov (!%p476_p4, %s2981_s30), 1 }
  0x12   : > { %671 = vmatprep.subr.bf16.mxu0 %v2716_v5  ;;  %v489_v19 = vpack.c.bf16 %v3045_v18, %v3043_v17  ;;  %2612 = vmatprep.mubr.msk.bf16.mxu1 %vm2896_vm0, %v2895_v20  ;;  %v3061_v25 = vld [vmem:[%s3561_s3] sm:$0x7]  ;;  %v2734_v39 = vld [vmem:[%s3560_s2 + $0xb0] ss:$12 sps:$4 sm:$0xff]   ;;  %v2735_v40 = vld [vmem:[%s3560_s2 + $0x98] ss:$12 sps:$4 sm:$0xff]   ;;  %s478_s25 = scalar_lea.vmem %s3559_s1, %s3576_s30 }
  0x13   : > { %v530_v23 = vsub.s32 1, %v3055_v22  ;;  %v526_v27 = vsub.s32 0, %v3055_v22  ;;  %2597 = vmatpush3.bf16.msra.mxu1 %v2734_v39  ;;  %v2736_v41 = vld [vmem:[%s3560_s2 + $0x80] ss:$12 sps:$4 sm:$0xff]   ;;  %v2737_v42 = vld [vmem:[%s3560_s2 + $0x68] ss:$12 sps:$4 sm:$0xff]  }
  0x14   : > { %2598 = vmatprep.subr.bf16.mxu1 %v2895_v20  ;;  %v2738_v43 = vld [vmem:[%s3560_s2 + $0x50] ss:$12 sps:$4 sm:$0xff]   ;;  %v2739_v44 = vld [vmem:[%s3560_s2 + $0x38] ss:$12 sps:$4 sm:$0xff]   ;;  %v2740_v45 = vld [vmem:[%s3560_s2 + $0x20] ss:$12 sps:$4 sm:$0xff]  }
  0x15   : > { %672 = vmatpush1.bf16.msra.mxu0 %v2718_v6  ;;  %v531_v28 = vrot.slane %v3061_v25, %v530_v23  ;;  %v527_v31 = vrot.slane %v3061_v25, %v526_v27  ;;  %v2741_v46 = vld [vmem:[%s3560_s2 + $0x8] ss:$12 sps:$4 sm:$0xff]   ;;  %v3129_v51 = vld [vmem:[%s478_s25] ss:$0 sm:$0xff]  ;;  %vm812_vm2 = vcmask 130048   ;;  %s2898_s30 = smov 64  }
  0x16   : > { %673 = vmatprep.subr.bf16.mxu0 %v2719_v7 }
  0x17   : > { %2599 = vmatpush3.bf16.msra.mxu1 %v2735_v40 }
  0x18   : > { %2600 = vmatprep.subr.bf16.mxu1 %v2895_v20 }
  0x19   : > { %674 = vmatpush1.bf16.msra.mxu0 %v2721_v8 }
  0x1a   : > { %675 = vmatprep.subr.bf16.mxu0 %v2722_v9 }
  0x1b   : > { %2601 = vmatpush3.bf16.msra.mxu1 %v2736_v41 }
  0x1c   : > { %2602 = vmatprep.subr.bf16.mxu1 %v2895_v20 }
  0x1d   : > { %676 = vmatpush1.bf16.msra.mxu0 %v2724_v10 }
  0x1e   : > { %677 = vmatprep.subr.bf16.mxu0 %v2725_v11 }
  0x1f   : > { %2603 = vmatpush3.bf16.msra.mxu1 %v2737_v42 }
  0x20   : > { %2604 = vmatprep.subr.bf16.mxu1 %v2895_v20 }
  0x21   : > { %678 = vmatpush1.bf16.msra.mxu0 %v2727_v12 }
  0x22   : > { %679 = vmatprep.subr.bf16.mxu0 %v2728_v13 }
  0x23   : > { %2605 = vmatpush3.bf16.msra.mxu1 %v2738_v43 }
  0x24   : > { %2606 = vmatprep.subr.bf16.mxu1 %v2895_v20 }
  0x25   : > { %680 = vmatpush1.bf16.msra.mxu0 %v2730_v14  ;;  %v534_v14 = vsub.s32 2, %v3055_v22 }
  0x26   : > { %681 = vmatprep.subr.bf16.mxu0 %v2731_v15 }
  0x27   : > { %2607 = vmatpush3.bf16.msra.mxu1 %v2739_v44 }
  0x28   : > { %2608 = vmatprep.subr.bf16.mxu1 %v2895_v20 }
  0x29   : > { %682 = vmatpush1.bf16.msra.mxu0 %v2733_v16  ;;  %v535_v16 = vrot.slane %v3061_v25, %v534_v14 }
  0x2a   : > { %2616 = vmatprep.subr.bf16.mxu0 %v2895_v20 }
  0x2b   : > { %2609 = vmatpush3.bf16.msra.mxu1 %v2740_v45 }
  0x2c   : > { %700 = vmatmul.mubr.bf16.vlgmr.msra.gmra.mxu0 %v489_v19  ;;  %2610 = vmatprep.subr.bf16.mxu1 %v2895_v20 }
  0x2d   : > { %2618 = vmatprep.mubr.msk.bf16.mxu0 %vm2896_vm0, %v2895_v20 }
  0x2f   : > { %2611 = vmatpush3.bf16.msra.mxu1 %v2741_v46 }
  0x30   : > { %2622 = vmatprep.subr.bf16.mxu1 %v2895_v20 }
  0x32   : > { %2613 = vmatmul.mubr.bf16.vlgmr.msra.gmra.mxu1 %v489_v19 }
  0x33   : > { %2624 = vmatprep.mubr.msk.bf16.mxu1 %vm2896_vm0, %v2895_v20 }
  0xec   : > { %v701_v24 = vpop.f32.mrf.mxu0 }
  0xed   : > { %v702_v36 = vadd.f32 %v701_v24, %v527_v31 }
  0xee   : > { %v703_v26 = vpop.f32.mrf.mxu0 }
  0xef   : > { %v704_v32 = vadd.f32 %v703_v26, %v531_v28 }
  0xf0   : > { %v705_v29 = vpop.f32.mrf.mxu0 }
  0xf1   : > { %v706_v34 = vadd.f32 %v705_v29, %v527_v31 }
  0xf2   : > { %v707_v30 = vpop.f32.mrf.mxu0  ;;  %v744_v15 = vpop.f32.mrf.mxu1 }
  0xf3   : > { %v708_v33 = vadd.f32 %v707_v30, %v531_v28  ;;  %v3076_v38 = vpack.c.bf16 %v706_v34, %v702_v36  ;;  %v745_v21 = vadd.f32 %v744_v15, %v535_v16 }
  0xf4   : > { %v2614_v19 = vpop.f32.mrf.mxu1 }
  0xf5   : > { %v3070_v35 = vpack.c.bf16 %v708_v33, %v704_v32 }
  0xf6   : > { %v747_v24 = vpop.f32.mrf.mxu1 }
  0xf7   : > { %889 = vrot.lane.b32.xlu0 %v3070_v35, %s2897_s15  ;;  %v759_v37 = vsel %vm754_vm1, %v3070_v35, 0  ;;  %v748_v26 = vadd.f32 %v747_v24, %v535_v16 }
  0xf8   : > { %2617 = vmatpush3.bf16.xpose.msra.mxu0 %v759_v37  ;;  %v2615_v28 = vpop.f32.mrf.mxu1 }
  0xf9   : > { %2628 = vmatprep.subr.bf16.mxu0 %v2895_v20  ;;  %v3145_v30 = vpack.c.bf16 %v748_v26, %v745_v21 }
  0xfb   : > { %886 = vrot.lane.b32.xlu0 %v3076_v38, %s2897_s15  ;;  %2623 = vmatpush3.bf16.msra.mxu1 %v3145_v30 }
  0xfc   : > { %2634 = vmatprep.subr.bf16.mxu1 %v2895_v20 }
  0xff   : > { %2619 = vmatmul.mubr.msk.bf16.vlgmr.msra.gmra.mxu0 %vm754_vm1, %v3076_v38 }
 0x100   : > { %2630 = vmatprep.mubr.msk.bf16.mxu0 %vm2896_vm0, %v2895_v20 }
 0x169   : > { %v890_v47 = vpop.permute.xlu0 %889 }
 0x16a   : > { %v895_v48 = vsel %vm754_vm1, %v890_v47, 0 }
 0x16b   : > { %2629 = vmatpush3.bf16.xpose.msra.mxu0 %v895_v48 }
 0x16c   : > { %2640 = vmatprep.subr.bf16.mxu0 %v2895_v20 }
 0x16d   : > { %v887_v49 = vpop.permute.xlu0 %886 }
 0x172   : > { %2631 = vmatmul.mubr.msk.bf16.vlgmr.msra.gmra.mxu0 %vm754_vm1, %v887_v49 }
 0x173   : > { %2644 = vmatprep.mubr.msk.bf16.mxu0 %vm2896_vm0, %v2895_v20 }
 0x1bf   : > { %v795_v50 = vpop.f32.mrf.mxu0 }
 0x1c0   : > { %v802_v52 = vmul.f32 0.17677669, %v795_v50 }
 0x1c1   : > { %v2620_v53 = vpop.f32.mrf.mxu0 }
 0x1c2   : > { %v810_v54 = vadd.f32 %v3129_v51, %v802_v52  ;;  %v2744_v53 = vld [vmem:[%s3562_s4 + $0x18] sm:$0xff]  }
 0x1c3   : > { %v798_v55 = vpop.f32.mrf.mxu0  ;;  %2641 = vmatpush3.bf16.msra.mxu0 %v2744_v53 }
 0x1c4   : > { %v803_v56 = vmul.f32 0.17677669, %v798_v55  ;;  %v813_v57 = vsel %vm812_vm2, %v810_v54, -inf  ;;  %2642 = vmatprep.subr.bf16.mxu0 %v2895_v20 }
 0x1c5   : > { %814 = vmax.xlane.f32.xlu1 %v813_v57  ;;  %v2621_v58 = vpop.f32.mrf.mxu0 }
 0x1c6   : > { %v811_v59 = vadd.f32 %v3129_v51, %v803_v56 }
 0x1c8   : > { %v816_v60 = vsel %vm812_vm2, %v811_v59, -inf }
 0x1c9   : > { %817 = vmax.xlane.f32.xlu1 %v816_v60 }
 0x232   : > { %v931_v61 = vpop.f32.mrf.mxu0 }
 0x233   : > { %v938_v62 = vmul.f32 0.17677669, %v931_v61  ;;  %v2742_v61 = vld [vmem:[%s3562_s4 + $0x8] sm:$0xff]  }
 0x234   : > { %v2632_v63 = vpop.f32.mrf.mxu0 }
 0x235   : > { %v940_v0 = vadd.f32 %v3129_v51, %v938_v62  ;;  %v2743_v63 = vld [vmem:[%s3562_s4] sm:$0xff]  }
 0x236   : > { %v934_v1 = vpop.f32.mrf.mxu0 }
 0x237   : > { %v939_v3 = vmul.f32 0.17677669, %v934_v1  ;;  %v942_v4 = vsel %vm812_vm2, %v940_v0, -inf }
 0x238   : > { %943 = vmax.xlane.f32.xlu0 %v942_v4  ;;  %v2633_v5 = vpop.f32.mrf.mxu0 }
 0x239   : > { %v941_v6 = vadd.f32 %v3129_v51, %v939_v3 }
 0x23b   : > { %v945_v7 = vsel %vm812_vm2, %v941_v6, -inf }
 0x23c   : > { %946 = vmax.xlane.f32.xlu1 %v945_v7 }
 0x24e   : > { %v815_v8 = vpop.xlane.xlu1 %814  ;;  %1132 = vrot.lane.b32.xlu0 %v3070_v35, %s2898_s30 }
 0x24f   : > { %v819_v9 = vsub.f32 %v810_v54, %v815_v8 }
 0x251   : > { %v821_v10 = vmul.f32 1.442695, %v819_v9 }
 0x252   : > { %v818_v11 = vpop.xlane.xlu1 %817 }
 0x253   : > { %2830 = vpow2.f32 %v821_v10  ;;  %v820_v12 = vsub.f32 %v811_v59, %v818_v11 }
 0x255   : > { %v823_v13 = vmul.f32 1.442695, %v820_v12 }
 0x257   : > { %2832 = vpow2.f32 %v823_v13 }
 0x260   : > { %v2831_v29 = vpop.eup %2830 }
 0x261   : > { %v825_v31 = vsel %vm812_vm2, %v2831_v29, 0.0 }
 0x262   : > { %826 = vadd.xlane.f32.xlu1 %v825_v31 }
 0x264   : > { %v2833_v32 = vpop.eup %2832 }
 0x265   : > { %v828_v33 = vsel %vm812_vm2, %v2833_v32, 0.0 }
 0x266   : > { %829 = vadd.xlane.f32.xlu1 %v828_v33 }
 0x2c1   : > { %v944_v25 = vpop.xlane.xlu0 %943 }
 0x2c2   : > { %v948_v34 = vsub.f32 %v940_v0, %v944_v25  ;;  %v2745_v0 = vld [vmem:[%s3562_s4 + $0x10] sm:$0xff]  }
 0x2c3   : > { %2643 = vmatpush3.bf16.msra.mxu0 %v2745_v0  ;;  %v2747_v0 = vld [vmem:[%s3562_s4 + $0x20] sm:$0xff]  }
 0x2c4   : > { %v950_v36 = vmul.f32 1.442695, %v948_v34  ;;  %2656 = vmatprep.subr.bf16.mxu0 %v2895_v20 }
 0x2c5   : > { %v947_v37 = vpop.xlane.xlu1 %946  ;;  %v1133_v9 = vpop.permute.xlu0 %1132 }
 0x2c6   : > { %2834 = vpow2.f32 %v950_v36  ;;  %v949_v39 = vsub.f32 %v941_v6, %v947_v37  ;;  %v1138_v13 = vsel %vm754_vm1, %v1133_v9, 0 }
 0x2c8   : > { %v952_v40 = vmul.f32 1.442695, %v949_v39 }
 0x2ca   : > { %2836 = vpow2.f32 %v952_v40 }
 0x2d3   : > { %v2835_v41 = vpop.eup %2834 }
 0x2d4   : > { %v954_v42 = vsel %vm812_vm2, %v2835_v41, 0.0 }
 0x2d5   : > { %955 = vadd.xlane.f32.xlu1 %v954_v42 }
 0x2d7   : > { %v2837_v43 = vpop.eup %2836 }
 0x2d8   : > { %v957_v44 = vsel %vm812_vm2, %v2837_v43, 0.0 }
 0x2d9   : > { %958 = vadd.xlane.f32.xlu1 %v957_v44 }
 0x2ea   : > { %966 = vrot.lane.b32.xlu1 %v3145_v30, %s2897_s15 }
 0x2eb   : > { %v827_v45 = vpop.xlane.xlu1 %826 }
 0x2ec   : > { %2838 = vrcp.f32 %v827_v45 }
 0x2ee   : > { %1130 = vrot.lane.b32.xlu1 %v3076_v38, %s2898_s30 }
 0x2ef   : > { %v830_v46 = vpop.xlane.xlu1 %829 }
 0x2f0   : > { %2840 = vrcp.f32 %v830_v46 }
 0x2f9   : > { %v2839_v47 = vpop.eup %2838 }
 0x2fa   : > { %v833_v49 = vmul.f32 %v2839_v47, %v2831_v29 }
 0x2fd   : > { %v2841_v48 = vpop.eup %2840 }
 0x2fe   : > { %v834_v50 = vmul.f32 %v2841_v48, %v2833_v32 }
 0x300   : > { %v835_v52 = vpack.c.bf16 %v834_v50, %v833_v49 }
 0x302   : > { %2625 = vmatmul.mubr.msk.bf16.vlgmr.msra.gmra.mxu1 %vm812_vm2, %v835_v52 }
 0x303   : > { %2636 = vmatprep.mubr.msk.bf16.mxu1 %vm2896_vm0, %v2895_v20 }
 0x35e   : > { %v956_v54 = vpop.xlane.xlu1 %955 }
 0x35f   : > { %2842 = vrcp.f32 %v956_v54 }
 0x362   : > { %v959_v55 = vpop.xlane.xlu1 %958 }
 0x363   : > { %2844 = vrcp.f32 %v959_v55 }
 0x366   : > { %v967_v56 = vpop.permute.xlu1 %966 }
 0x367   : > { %2635 = vmatpush3.bf16.msra.mxu1 %v967_v56 }
 0x368   : > { %2648 = vmatprep.subr.bf16.mxu1 %v2895_v20 }
 0x36a   : > { %v1131_v15 = vpop.permute.xlu1 %1130 }
 0x36c   : > { %v2843_v57 = vpop.eup %2842 }
 0x36d   : > { %v962_v59 = vmul.f32 %v2843_v57, %v2835_v41 }
 0x370   : > { %v2845_v58 = vpop.eup %2844 }
 0x371   : > { %v963_v60 = vmul.f32 %v2845_v58, %v2837_v43 }
 0x373   : > { %v964_v62 = vpack.c.bf16 %v963_v60, %v962_v59 }
 0x375   : > { %2637 = vmatmul.mubr.msk.bf16.vlgmr.msra.gmra.mxu1 %vm812_vm2, %v964_v62 }
 0x376   : > { %2649 = vmatpush3.bf16.msra.mxu1 %v2742_v61  ;;  %2652 = vmatprep.mubr.msk.bf16.mxu1 %vm2896_vm0, %v2895_v20 }
 0x377   : > { %2650 = vmatprep.subr.bf16.mxu1 %v2895_v20 }
 0x37a   : > { %2651 = vmatpush3.bf16.msra.mxu1 %v2743_v63 }
 0x37b   : > { %2662 = vmatprep.subr.bf16.mxu1 %v2895_v20 }
 0x3c2   : > { %v873_v1 = vpop.f32.mrf.mxu1 }
 0x3c4   : > { %v2626_v3 = vpop.f32.mrf.mxu1 }
 0x3c6   : > { %v876_v4 = vpop.f32.mrf.mxu1 }
 0x3c7   : > { %v880_v5 = vpack.c.bf16 %v876_v4, %v873_v1 }
 0x3c8   : > { %v2627_v6 = vpop.f32.mrf.mxu1 }
 0x3c9   : > { %2653 = vmatmul.mubr.msk.bf16.vlgmr.msra.gmra.mxu1 %vm754_vm1, %v880_v5 }
 0x3ca   : > { %2664 = vmatprep.mubr.msk.bf16.mxu1 %vm2896_vm0, %v2895_v20 }
 0x435   : > { %v1006_v7 = vpop.f32.mrf.mxu1 }
 0x437   : > { %v2638_v8 = vpop.f32.mrf.mxu1 }
 0x439   : > { %v1009_v10 = vpop.f32.mrf.mxu1 }
 0x43a   : > { %v1013_v11 = vpack.c.bf16 %v1009_v10, %v1006_v7 }
 0x43b   : > { %v2639_v12 = vpop.f32.mrf.mxu1 }
 0x43c   : > { %2645 = vmatmul.mubr.msk.bf16.vlgmr.msra.gmra.mxu0 %vm754_vm1, %v1013_v11 }
 0x43d   : > { %2657 = vmatpush3.bf16.xpose.msra.mxu0 %v1138_v13  ;;  %2658 = vmatprep.mubr.msk.bf16.mxu0 %vm2896_vm0, %v2895_v20 }
 0x43e   : > { %2668 = vmatprep.subr.bf16.mxu0 %v2895_v20 }
 0x444   : > { %2659 = vmatmul.mubr.msk.bf16.vlgmr.msra.gmra.mxu0 %vm754_vm1, %v1131_v15 }
 0x445   : > { %2672 = vmatprep.mubr.msk.bf16.mxu0 %vm2896_vm0, %v2895_v20 }
 0x489   : > { %v3191_v16 = vpop.f32.mrf.mxu1 }
 0x48b   : > { %v2654_v19 = vpop.f32.mrf.mxu1 }
 0x48d   : > { %v3193_v21 = vpop.f32.mrf.mxu1 }
 0x48f   : > { %v2655_v24 = vpop.f32.mrf.mxu1 }
 0x4fc   : > { %v3195_v26 = vpop.f32.mrf.mxu0 }
 0x4fe   : > { %v2646_v28 = vpop.f32.mrf.mxu0 }
 0x500   : > { %v3197_v29 = vpop.f32.mrf.mxu0 }
 0x502   : > { %v2647_v31 = vpop.f32.mrf.mxu0 }
 0x504   : > { %v1174_v32 = vpop.f32.mrf.mxu0 }
 0x505   : > { %v1181_v33 = vmul.f32 0.17677669, %v1174_v32 }
 0x506   : > { %v2660_v25 = vpop.f32.mrf.mxu0 }
 0x507   : > { %v1183_v34 = vadd.f32 %v3129_v51, %v1181_v33 }
 0x508   : > { %v1177_v36 = vpop.f32.mrf.mxu0 }
 0x509   : > { %v1182_v37 = vmul.f32 0.17677669, %v1177_v36  ;;  %v1185_v39 = vsel %vm812_vm2, %v1183_v34, -inf }
 0x50a   : > { %1186 = vmax.xlane.f32.xlu1 %v1185_v39  ;;  %v2661_v40 = vpop.f32.mrf.mxu0 }
 0x50b   : > { %v1184_v41 = vadd.f32 %v3129_v51, %v1182_v37 }
 0x50d   : > { %v1188_v42 = vsel %vm812_vm2, %v1184_v41, -inf }
 0x50e   : > { %1189 = vmax.xlane.f32.xlu0 %v1188_v42 }
 0x524   : > { %1208 = vrot.lane.b32.xlu0 %v3145_v30, %s2898_s30 }
 0x593   : > { %v1187_v43 = vpop.xlane.xlu1 %1186 }
 0x594   : > { %v1191_v44 = vsub.f32 %v1183_v34, %v1187_v43 }
 0x596   : > { %v1193_v45 = vmul.f32 1.442695, %v1191_v44  ;;  %v1127_v44 = vadd.f32 %v3193_v21, %v3197_v29  ;;  %v2749_v21 = vld [vmem:[%s3562_s4 + $0x30] sm:$0xff]  }
 0x597   : > { %v1190_v46 = vpop.xlane.xlu0 %1189 }
 0x598   : > { %2846 = vpow2.f32 %v1193_v45  ;;  %v1192_v47 = vsub.f32 %v1184_v41, %v1190_v46 }
 0x59a   : > { %v1195_v48 = vmul.f32 1.442695, %v1192_v47 }
 0x59b   : > { %v1209_v49 = vpop.permute.xlu0 %1208 }
 0x59c   : > { %2848 = vpow2.f32 %v1195_v48  ;;  %2663 = vmatpush3.bf16.msra.mxu1 %v1209_v49 }
 0x59d   : > { %2676 = vmatprep.subr.bf16.mxu1 %v2895_v20 }
 0x5a5   : > { %v2847_v50 = vpop.eup %2846 }
 0x5a6   : > { %v1197_v52 = vsel %vm812_vm2, %v2847_v50, 0.0 }
 0x5a7   : > { %1198 = vadd.xlane.f32.xlu1 %v1197_v52 }
 0x5a9   : > { %v2849_v53 = vpop.eup %2848 }
 0x5aa   : > { %v1200_v54 = vsel %vm812_vm2, %v2849_v53, 0.0 }
 0x5ab   : > { %1201 = vadd.xlane.f32.xlu1 %v1200_v54 }
 0x5bc   : > { %1320 = vrot.lane.b32.xlu1 %v3070_v35, %s2899_s22 }
 0x5c0   : > { %1318 = vrot.lane.b32.xlu1 %v3076_v38, %s2899_s22  ;;  %v2746_v38 = vld [vmem:[%s3562_s4 + $0x28] sm:$0xff]  }
 0x5c1   : > { %2669 = vmatpush3.bf16.msra.mxu0 %v2746_v38 }
 0x5c2   : > { %2670 = vmatprep.subr.bf16.mxu0 %v2895_v20 }
 0x5c5   : > { %2671 = vmatpush3.bf16.msra.mxu0 %v2747_v0 }
 0x5c6   : > { %2682 = vmatprep.subr.bf16.mxu0 %v2895_v20 }
 0x630   : > { %v1199_v55 = vpop.xlane.xlu1 %1198 }
 0x631   : > { %2850 = vrcp.f32 %v1199_v55 }
 0x634   : > { %v1202_v56 = vpop.xlane.xlu1 %1201 }
 0x635   : > { %2852 = vrcp.f32 %v1202_v56 }
 0x638   : > { %v1321_v61 = vpop.permute.xlu1 %1320 }
 0x639   : > { %v1326_v63 = vsel %vm754_vm1, %v1321_v61, 0 }
 0x63c   : > { %v1319_v35 = vpop.permute.xlu1 %1318 }
 0x63e   : > { %v2851_v57 = vpop.eup %2850 }
 0x63f   : > { %v1205_v59 = vmul.f32 %v2851_v57, %v2847_v50 }
 0x642   : > { %v2853_v58 = vpop.eup %2852 }
 0x643   : > { %v1206_v60 = vmul.f32 %v2853_v58, %v2849_v53 }
 0x645   : > { %v1207_v62 = vpack.c.bf16 %v1206_v60, %v1205_v59  ;;  %v2443_v60 = vld [vmem:[%s3563_s5] ss:$0 sm:$0xff] }
 0x647   : > { %2665 = vmatmul.mubr.msk.bf16.vlgmr.msra.gmra.mxu1 %vm812_vm2, %v1207_v62 }
 0x648   : > { %2677 = vmatpush3.bf16.xpose.msra.mxu1 %v1326_v63  ;;  %2678 = vmatprep.mubr.msk.bf16.mxu1 %vm2896_vm0, %v2895_v20 }
 0x649   : > { %2688 = vmatprep.subr.bf16.mxu1 %v2895_v20 }
 0x64f   : > { %2679 = vmatmul.mubr.msk.bf16.vlgmr.msra.gmra.mxu1 %vm754_vm1, %v1319_v35 }
 0x650   : > { %2692 = vmatprep.mubr.msk.bf16.mxu1 %vm2896_vm0, %v2895_v20 }
 0x707   : > { %v1248_v1 = vpop.f32.mrf.mxu1 }
 0x709   : > { %v2666_v3 = vpop.f32.mrf.mxu1 }
 0x70b   : > { %v1251_v4 = vpop.f32.mrf.mxu1 }
 0x70c   : > { %v1255_v5 = vpack.c.bf16 %v1251_v4, %v1248_v1  ;;  %v2752_v4 = vld [vmem:[%s3566_s8 + $0xe4] ss:$16 sps:$4 sm:$0xff]  }
 0x70d   : > { %v2667_v6 = vpop.f32.mrf.mxu1 }
 0x70e   : > { %2673 = vmatmul.mubr.msk.bf16.vlgmr.msra.gmra.mxu0 %vm754_vm1, %v1255_v5  ;;  %v2753_v5 = vld [vmem:[%s3566_s8 + $0xe8] ss:$16 sps:$4 sm:$0xff]  }
 0x70f   : > { %v1362_v7 = vpop.f32.mrf.mxu1  ;;  %2684 = vmatprep.mubr.msk.bf16.mxu0 %vm2896_vm0, %v2895_v20 }
 0x710   : > { %v1369_v8 = vmul.f32 0.17677669, %v1362_v7 }
 0x711   : > { %v2680_v9 = vpop.f32.mrf.mxu1 }
 0x712   : > { %v1371_v10 = vadd.f32 %v3129_v51, %v1369_v8 }
 0x713   : > { %v1365_v11 = vpop.f32.mrf.mxu1 }
 0x714   : > { %v1370_v12 = vmul.f32 0.17677669, %v1365_v11  ;;  %v1373_v13 = vsel %vm812_vm2, %v1371_v10, -inf }
 0x715   : > { %1374 = vmax.xlane.f32.xlu0 %v1373_v13  ;;  %v2681_v15 = vpop.f32.mrf.mxu1  ;;  %v2758_v13 = vld [vmem:[%s3566_s8 + $0xc4] ss:$16 sps:$4 sm:$0xff]  }
 0x716   : > { %v1372_v19 = vadd.f32 %v3129_v51, %v1370_v12  ;;  %v2761_v15 = vld [vmem:[%s3566_s8 + $0xcc] ss:$16 sps:$4 sm:$0xff]  }
 0x718   : > { %v1376_v24 = vsel %vm812_vm2, %v1372_v19, -inf }
 0x719   : > { %1377 = vmax.xlane.f32.xlu1 %v1376_v24  ;;  %v2759_v24 = vld [vmem:[%s3566_s8 + $0xc8] ss:$16 sps:$4 sm:$0xff]  }
 0x72a   : > { %1396 = vrot.lane.b32.xlu1 %v3145_v30, %s2899_s22  ;;  %v1124_v30 = vadd.f32 %v3191_v16, %v3195_v26  ;;  %v2748_v16 = vld [vmem:[%s3562_s4 + $0x38] sm:$0xff]  }
 0x72b   : > { %2689 = vmatpush3.bf16.msra.mxu1 %v2748_v16 }
 0x72c   : > { %2690 = vmatprep.subr.bf16.mxu1 %v2895_v20 }
 0x72f   : > { %2691 = vmatpush3.bf16.msra.mxu1 %v2749_v21 }
 0x79e   : > { %v1375_v28 = vpop.xlane.xlu0 %1374 }
 0x79f   : > { %v1379_v31 = vsub.f32 %v1371_v10, %v1375_v28  ;;  %v2764_v28 = vld [vmem:[%s3566_s8 + $0xa4] ss:$16 sps:$4 sm:$0xff]  }
 0x7a1   : > { %v1381_v32 = vmul.f32 1.442695, %v1379_v31  ;;  %v2767_v31 = vld [vmem:[%s3566_s8 + $0xac] ss:$16 sps:$4 sm:$0xff]  }
 0x7a2   : > { %v1378_v33 = vpop.xlane.xlu1 %1377 }
 0x7a3   : > { %2854 = vpow2.f32 %v1381_v32  ;;  %v1380_v25 = vsub.f32 %v1372_v19, %v1378_v33  ;;  %v2756_v19 = vld [vmem:[%s3566_s8 + $0xc0] ss:$16 sps:$4 sm:$0xff]   ;;  %v2765_v33 = vld [vmem:[%s3566_s8 + $0xa8] ss:$16 sps:$4 sm:$0xff]  }
 0x7a4   : > { %v2762_v32 = vld [vmem:[%s3566_s8 + $0xa0] ss:$16 sps:$4 sm:$0xff]  }
 0x7a5   : > { %v1383_v34 = vmul.f32 1.442695, %v1380_v25  ;;  %v2768_v25 = vld [vmem:[%s3566_s8 + $0x80] ss:$16 sps:$4 sm:$0xff]  }
 0x7a6   : > { %v1397_v36 = vpop.permute.xlu1 %1396 }
 0x7a7   : > { %2856 = vpow2.f32 %v1383_v34  ;;  %2683 = vmatpush3.bf16.msra.mxu0 %v1397_v36  ;;  %v2770_v34 = vld [vmem:[%s3566_s8 + $0x84] ss:$16 sps:$4 sm:$0xff]   ;;  %v2771_v36 = vld [vmem:[%s3566_s8 + $0x88] ss:$16 sps:$4 sm:$0xff]  }
 0x7a8   : > { %1773 = vmatprep.subr.bf16.mxu0 %v2752_v4  ;;  %v2802_v4 = vld [vmem:[%s3568_s10 + $0x70] sm:$0xff]  }
 0x7b0   : > { %v2855_v37 = vpop.eup %2854 }
 0x7b1   : > { %v1385_v39 = vsel %vm812_vm2, %v2855_v37, 0.0 }
 0x7b2   : > { %1386 = vadd.xlane.f32.xlu0 %v1385_v39  ;;  %v2776_v39 = vld [vmem:[%s3566_s8 + $0x64] ss:$16 sps:$4 sm:$0xff]  }
 0x7b4   : > { %v2857_v51 = vpop.eup %2856 }
 0x7b5   : > { %v1388_v40 = vsel %vm812_vm2, %v2857_v51, 0.0 }
 0x7b6   : > { %1389 = vadd.xlane.f32.xlu0 %v1388_v40  ;;  %v2774_v40 = vld [vmem:[%s3566_s8 + $0x60] ss:$16 sps:$4 sm:$0xff]  }
 0x7ce   : > { %v1309_v41 = vpop.f32.mrf.mxu0 }
 0x7cf   : > { %v1316_v42 = vadd.f32 %v1309_v41, %v1124_v30  ;;  %v2777_v30 = vld [vmem:[%s3566_s8 + $0x68] ss:$16 sps:$4 sm:$0xff]   ;;  %v2782_v41 = vld [vmem:[%s3566_s8 + $0x44] ss:$16 sps:$4 sm:$0xff]  }
 0x7d0   : > { %v2674_v43 = vpop.f32.mrf.mxu0 }
 0x7d1   : > { %v2780_v43 = vld [vmem:[%s3566_s8 + $0x40] ss:$16 sps:$4 sm:$0xff]  }
 0x7d2   : > { %v1312_v45 = vpop.f32.mrf.mxu0 }
 0x7d3   : > { %v1317_v46 = vadd.f32 %v1312_v45, %v1127_v44  ;;  %v2783_v44 = vld [vmem:[%s3566_s8 + $0x48] ss:$16 sps:$4 sm:$0xff]   ;;  %v2788_v45 = vld [vmem:[%s3566_s8 + $0x24] ss:$16 sps:$4 sm:$0xff]  }
 0x7d4   : > { %v2675_v47 = vpop.f32.mrf.mxu0 }
 0x7d5   : > { %v2786_v47 = vld [vmem:[%s3566_s8 + $0x20] ss:$16 sps:$4 sm:$0xff]  }
 0x83b   : > { %v1387_v48 = vpop.xlane.xlu0 %1386 }
 0x83c   : > { %2858 = vrcp.f32 %v1387_v48  ;;  %v2789_v48 = vld [vmem:[%s3566_s8 + $0x28] ss:$16 sps:$4 sm:$0xff]  }
 0x83f   : > { %v1390_v49 = vpop.xlane.xlu0 %1389 }
 0x840   : > { %2860 = vrcp.f32 %v1390_v49  ;;  %v2794_v49 = vld [vmem:[%s3566_s8 + $0x4] ss:$16 sps:$4 sm:$0xff]  }
 0x849   : > { %v2859_v50 = vpop.eup %2858 }
 0x84a   : > { %v1393_v53 = vmul.f32 %v2859_v50, %v2855_v37  ;;  %v2773_v37 = vld [vmem:[%s3566_s8 + $0x8c] ss:$16 sps:$4 sm:$0xff]  }
 0x84b   : > { %v2797_v50 = vld [vmem:[%s3566_s8 + $0xc] ss:$16 sps:$4 sm:$0xff]  }
 0x84d   : > { %v2861_v52 = vpop.eup %2860 }
 0x84e   : > { %v1394_v54 = vmul.f32 %v2861_v52, %v2857_v51  ;;  %v2779_v51 = vld [vmem:[%s3566_s8 + $0x6c] ss:$16 sps:$4 sm:$0xff]   ;;  %v2792_v52 = vld [vmem:[%s3566_s8] ss:$16 sps:$4 sm:$0xff]  }
 0x850   : > { %v1395_v55 = vpack.c.bf16 %v1394_v54, %v1393_v53  ;;  %v2795_v53 = vld [vmem:[%s3566_s8 + $0x8] ss:$16 sps:$4 sm:$0xff]  }
 0x852   : > { %2685 = vmatmul.mubr.msk.bf16.vlgmr.msra.gmra.mxu0 %vm812_vm2, %v1395_v55 }
 0x853   : > { %1805 = vmatprep.mubr.bf16.mxu0 %v2894_v2 }
 0x912   : > { %v1436_v26 = vpop.f32.mrf.mxu0 }
 0x914   : > { %v2686_v29 = vpop.f32.mrf.mxu0 }
 0x916   : > { %v1439_v56 = vpop.f32.mrf.mxu0 }
 0x917   : > { %v1443_v57 = vpack.c.bf16 %v1439_v56, %v1436_v26 }
 0x918   : > { %v2687_v58 = vpop.f32.mrf.mxu0 }
 0x919   : > { %2693 = vmatmul.mubr.msk.bf16.vlgmr.msra.gmra.mxu1 %vm754_vm1, %v1443_v57  ;;  %v2444_v58 = vld [vmem:[%s3564_s6] ss:$0 sm:$0xff] }
 0x91a   : > { %1848 = vmatprep.mubr.bf16.mxu1 %v2894_v2  ;;  %v2750_v2 = vld [vmem:[%s3566_s8 + $0xe0] ss:$16 sps:$4 sm:$0xff]  }
 0x91b   : > { %1774 = vmatpush1.bf16.msra.mxu0 %v2750_v2  ;;  %v2801_v2 = vld [vmem:[%s3568_s10 + $0xb8] sm:$0xff]  }
 0x91c   : > { %1775 = vmatprep.subr.bf16.mxu0 %v2758_v13  ;;  %v2813_v13 = vld [vmem:[%s3568_s10 + $0xa0] sm:$0xff]  }
 0x91f   : > { %1776 = vmatpush1.bf16.msra.mxu0 %v2756_v19  ;;  %v2815_v19 = vld [vmem:[%s3568_s10 + $0xd8] sm:$0xff]  }
 0x920   : > { %1777 = vmatprep.subr.bf16.mxu0 %v2764_v28  ;;  %v2817_v28 = vld [vmem:[%s3568_s10 + $0x98] sm:$0xff]  }
 0x923   : > { %1778 = vmatpush1.bf16.msra.mxu0 %v2762_v32  ;;  %v2819_v32 = vld [vmem:[%s3568_s10 + $0xd0] sm:$0xff]  }
 0x924   : > { %1779 = vmatprep.subr.bf16.mxu0 %v2770_v34  ;;  %v2822_v34 = vld [vmem:[%s3568_s10 + $0x48] sm:$0xff]  }
 0x927   : > { %1780 = vmatpush1.bf16.msra.mxu0 %v2768_v25  ;;  %v2821_v25 = vld [vmem:[%s3568_s10 + $0x90] sm:$0xff]  }
 0x928   : > { %1781 = vmatprep.subr.bf16.mxu0 %v2776_v39  ;;  %v2825_v39 = vld [vmem:[%s3568_s10 + $0x88] sm:$0xff]  }
 0x92b   : > { %1782 = vmatpush1.bf16.msra.mxu0 %v2774_v40  ;;  %v2827_v40 = vld [vmem:[%s3568_s10 + $0xc0] sm:$0xff]  }
 0x92c   : > { %1783 = vmatprep.subr.bf16.mxu0 %v2782_v41  ;;  %v2829_v41 = vld [vmem:[%s3568_s10 + $0x80] sm:$0xff]  }
 0x92f   : > { %1784 = vmatpush1.bf16.msra.mxu0 %v2780_v43  ;;  %v1607_v43 = vsub.s32 3, %v3055_v22 }
 0x930   : > { %1785 = vmatprep.subr.bf16.mxu0 %v2788_v45 }
 0x933   : > { %1786 = vmatpush1.bf16.msra.mxu0 %v2786_v47 }
 0x934   : > { %1787 = vmatprep.subr.bf16.mxu0 %v2794_v49 }
 0x937   : > { %1788 = vmatpush1.bf16.msra.mxu0 %v2792_v52 }
 0x9d9   : > { %v1497_v59 = vpop.f32.mrf.mxu1 }
 0x9da   : > { %v1504_v20 = vadd.f32 %v1497_v59, %v1316_v42  ;;  %v2785_v42 = vld [vmem:[%s3566_s8 + $0x4c] ss:$16 sps:$4 sm:$0xff]  }
 0x9db   : > { %v2694_v61 = vpop.f32.mrf.mxu1 }
 0x9dc   : > { %v1513_v62 = vadd.f32 %v2443_v60, %v1504_v20  ;;  %v2445_v61 = vld [vmem:[%s3565_s7] ss:$0 sm:$0xff] }
 0x9dd   : > { %v1500_v63 = vpop.f32.mrf.mxu1 }
 0x9de   : > { %v1505_v35 = vadd.f32 %v1500_v63, %v1317_v46  ;;  %v1515_v38 = vadd.f32 %v1513_v62, %v3043_v17  ;;  %v2755_v17 = vld [vmem:[%s3566_s8 + $0xec] ss:$16 sps:$4 sm:$0xff]  }
 0x9df   : > { %v2695_v0 = vpop.f32.mrf.mxu1  ;;  %1816 = vmatprep.subr.bf16.mxu1 %v2755_v17  ;;  %v2791_v46 = vld [vmem:[%s3566_s8 + $0x2c] ss:$16 sps:$4 sm:$0xff]   ;;  %v2804_v17 = vld [vmem:[%s3568_s10 + $0x30] sm:$0xff]  }
 0x9e0   : > { %v1514_v1 = vadd.f32 %v2443_v60, %v1505_v35  ;;  %1519 = vadd.xlane.f32.xlu0 %v1515_v38  ;;  %1817 = vmatpush1.bf16.msra.mxu1 %v2753_v5  ;;  %v2798_v0 = vld [vmem:[%s3568_s10 + $0x78] sm:$0xff]   ;;  %v2803_v5 = vld [vmem:[%s3568_s10 + $0xf0] sm:$0xff]  }
 0x9e1   : > { %1818 = vmatprep.subr.bf16.mxu1 %v2761_v15  ;;  %2552 = vmatprep.subr.bf16.mxu0 %v2798_v0  ;;  %v2814_v15 = vld [vmem:[%s3568_s10 + $0x58] sm:$0xff]  }
 0x9e2   : > { %v1516_v3 = vadd.f32 %v1514_v1, %v3045_v18  ;;  %v2799_v1 = vld [vmem:[%s3568_s10 + $0xf8] sm:$0xff]  }
 0x9e4   : > { %1521 = vadd.xlane.f32.xlu0 %v1516_v3  ;;  %1819 = vmatpush1.bf16.msra.mxu1 %v2759_v24  ;;  %v2816_v24 = vld [vmem:[%s3568_s10 + $0x18] sm:$0xff]  }
 0x9e5   : > { %1820 = vmatprep.subr.bf16.mxu1 %v2767_v31  ;;  %v2818_v31 = vld [vmem:[%s3568_s10 + $0x50] sm:$0xff]  }
 0x9e8   : > { %1821 = vmatpush1.bf16.msra.mxu1 %v2765_v33  ;;  %v2820_v33 = vld [vmem:[%s3568_s10 + $0x10] sm:$0xff]  }
 0x9e9   : > { %1822 = vmatprep.subr.bf16.mxu1 %v2773_v37  ;;  %v2824_v37 = vld [vmem:[%s3568_s10 + $0x8] sm:$0xff]  }
 0x9ec   : > { %1823 = vmatpush1.bf16.msra.mxu1 %v2771_v36  ;;  %v2823_v36 = vld [vmem:[%s3568_s10 + $0xc8] sm:$0xff]  }
 0x9ed   : > { %1824 = vmatprep.subr.bf16.mxu1 %v2779_v51  ;;  %v2826_v51 = vld [vmem:[%s3568_s10 + $0x40] sm:$0xff]  }
 0x9f0   : > { %1825 = vmatpush1.bf16.msra.mxu1 %v2777_v30  ;;  %v2828_v30 = vld [vmem:[%s3568_s10] sm:$0xff]  }
 0x9f1   : > { %1826 = vmatprep.subr.bf16.mxu1 %v2785_v42  ;;  %v1591_v42 = vld [vmem:[%s3567_s9] sm:$0xf] }
 0x9f2   : > { %v1604_v45 = vrot.slane %v1591_v42, %v534_v14  ;;  %v1608_v47 = vrot.slane %v1591_v42, %v1607_v43 }
 0x9f4   : > { %1827 = vmatpush1.bf16.msra.mxu1 %v2783_v44  ;;  %v1596_v44 = vrot.slane %v1591_v42, %v526_v27 }
 0x9f5   : > { %1828 = vmatprep.subr.bf16.mxu1 %v2791_v46  ;;  %v1600_v46 = vrot.slane %v1591_v42, %v530_v23 }
 0x9f8   : > { %1829 = vmatpush1.bf16.msra.mxu1 %v2789_v48 }
 0x9f9   : > { %1830 = vmatprep.subr.bf16.mxu1 %v2797_v50 }
 0x9fc   : > { %1831 = vmatpush1.bf16.msra.mxu1 %v2795_v53 }
 0x9fd   : > { %2574 = vmatprep.subr.bf16.mxu1 %v2799_v1 }
 0xa69   : > { %v1520_v18 = vpop.xlane.xlu0 %1519 }
 0xa6a   : > { %v1524_v6 = vmul.f32 0.0078125, %v1520_v18  ;;  %v2805_v18 = vld [vmem:[%s3568_s10 + $0xb0] sm:$0xff]  }
 0xa6c   : > { %v3271_v7 = vsub.f32 %v1515_v38, %v1524_v6  ;;  %v2806_v6 = vld [vmem:[%s3568_s10 + $0x68] sm:$0xff]  }
 0xa6d   : > { %v1522_v8 = vpop.xlane.xlu0 %1521 }
 0xa6e   : > { %v1525_v9 = vmul.f32 0.0078125, %v1522_v8  ;;  %v1528_v10 = vmul.f32 %v3271_v7, %v3271_v7  ;;  %v2808_v8 = vld [vmem:[%s3568_s10 + $0x28] sm:$0xff]  }
 0xa70   : > { %v3275_v11 = vsub.f32 %v1516_v3, %v1525_v9  ;;  %1530 = vadd.xlane.f32.xlu0 %v1528_v10  ;;  %v2800_v3 = vld [vmem:[%s3568_s10 + $0x38] sm:$0xff]   ;;  %v2809_v9 = vld [vmem:[%s3568_s10 + $0xa8] sm:$0xff]   ;;  %v2810_v10 = vld [vmem:[%s3568_s10 + $0x60] sm:$0xff]  }
 0xa72   : > { %v1529_v12 = vmul.f32 %v3275_v11, %v3275_v11 }
 0xa74   : > { %1532 = vadd.xlane.f32.xlu0 %v1529_v12  ;;  %v2812_v12 = vld [vmem:[%s3568_s10 + $0x20] sm:$0xff]  }
 0xaf9   : > { %v1531_v54 = vpop.xlane.xlu0 %1530 }
 0xafa   : > { %v1534_v55 = vmul.f32 0.0078125, %v1531_v54 }
 0xafc   : > { %v1536_v16 = vadd.f32 1e-12, %v1534_v55 }
 0xafd   : > { %v1533_v21 = vpop.xlane.xlu0 %1532 }
 0xafe   : > { %2862 = vrsqrt.f32 %v1536_v16  ;;  %v1535_v26 = vmul.f32 0.0078125, %v1533_v21 }
 0xb00   : > { %v1537_v29 = vadd.f32 1e-12, %v1535_v26 }
 0xb02   : > { %2864 = vrsqrt.f32 %v1537_v29 }
 0xb0b   : > { %v2863_v56 = vpop.eup %2862 }
 0xb0c   : > { %v1540_v57 = vmul.f32 %v2863_v56, %v3271_v7  ;;  %v2807_v7 = vld [vmem:[%s3568_s10 + $0xe8] sm:$0xff]  }
 0xb0e   : > { %v1548_v20 = vmul.f32 %v2444_v58, %v1540_v57 }
 0xb0f   : > { %v2865_v59 = vpop.eup %2864 }
 0xb10   : > { %v1541_v60 = vmul.f32 %v2865_v59, %v3275_v11  ;;  %v3371_v63 = vadd.f32 %v2445_v61, %v1548_v20  ;;  %v2811_v11 = vld [vmem:[%s3568_s10 + $0xe0] sm:$0xff]  }
 0xb12   : > { %v1549_v62 = vmul.f32 %v2444_v58, %v1541_v60 }
 0xb14   : > { %v3373_v35 = vadd.f32 %v2445_v61, %v1549_v62 }
 0xb16   : > { %v1558_v38 = vpack.c.bf16 %v3373_v35, %v3371_v63 }
 0xb18   : > { %1806 = vmatmul.mubr.bf16.vlgmr.msra.gmra.mxu0 %v1558_v38  ;;  %1849 = vmatmul.mubr.bf16.vlgmr.msra.gmra.mxu1 %v1558_v38 }
 0xb19   : > { %2553 = vmatpush3.bf16.msra.mxu0 %v2800_v3  ;;  %2575 = vmatpush3.bf16.msra.mxu1 %v2801_v2 }
 0xb1a   : > { %2554 = vmatprep.subr.bf16.mxu0 %v2802_v4  ;;  %2576 = vmatprep.subr.bf16.mxu1 %v2803_v5 }
 0xb1d   : > { %2555 = vmatpush3.bf16.msra.mxu0 %v2804_v17  ;;  %2577 = vmatpush3.bf16.msra.mxu1 %v2805_v18 }
 0xb1e   : > { %2556 = vmatprep.subr.bf16.mxu0 %v2806_v6  ;;  %2578 = vmatprep.subr.bf16.mxu1 %v2807_v7 }
 0xb21   : > { %2557 = vmatpush3.bf16.msra.mxu0 %v2808_v8  ;;  %2579 = vmatpush3.bf16.msra.mxu1 %v2809_v9 }
 0xb22   : > { %2558 = vmatprep.subr.bf16.mxu0 %v2810_v10  ;;  %2580 = vmatprep.subr.bf16.mxu1 %v2811_v11 }
 0xb25   : > { %2559 = vmatpush3.bf16.msra.mxu0 %v2812_v12  ;;  %2581 = vmatpush3.bf16.msra.mxu1 %v2813_v13 }
 0xb26   : > { %2560 = vmatprep.subr.bf16.mxu0 %v2814_v15  ;;  %2582 = vmatprep.subr.bf16.mxu1 %v2815_v19 }
 0xb29   : > { %2561 = vmatpush3.bf16.msra.mxu0 %v2816_v24  ;;  %2583 = vmatpush3.bf16.msra.mxu1 %v2817_v28 }
 0xb2a   : > { %2562 = vmatprep.subr.bf16.mxu0 %v2818_v31  ;;  %2584 = vmatprep.subr.bf16.mxu1 %v2819_v32 }
 0xb2d   : > { %2563 = vmatpush3.bf16.msra.mxu0 %v2820_v33  ;;  %2585 = vmatpush3.bf16.msra.mxu1 %v2821_v25 }
 0xb2e   : > { %2564 = vmatprep.subr.bf16.mxu0 %v2822_v34  ;;  %2586 = vmatprep.subr.bf16.mxu1 %v2823_v36 }
 0xb31   : > { %2565 = vmatpush3.bf16.msra.mxu0 %v2824_v37  ;;  %2587 = vmatpush3.bf16.msra.mxu1 %v2825_v39 }
 0xb32   : > { %2566 = vmatprep.subr.bf16.mxu0 %v2826_v51  ;;  %2588 = vmatprep.subr.bf16.mxu1 %v2827_v40 }
 0xb35   : > { %2567 = vmatpush3.bf16.msra.mxu0 %v2828_v30  ;;  %2589 = vmatpush3.bf16.msra.mxu1 %v2829_v41 }
 0xbd8   : > { %v1807_v48 = vpop.f32.mrf.mxu0  ;;  %v1850_v49 = vpop.f32.mrf.mxu1 }
 0xbd9   : > { %v3483_v50 = vadd.f32 %v1807_v48, %v1596_v44  ;;  %v3485_v52 = vadd.f32 %v1850_v49, %v1604_v45 }
 0xbda   : > { %v1809_v53 = vpop.f32.mrf.mxu0  ;;  %v1852_v54 = vpop.f32.mrf.mxu1 }
 0xbdb   : > { %v1859_v55 = vmul.f32 %v3483_v50, %v3483_v50  ;;  %v1861_v27 = vmul.f32 %v3485_v52, %v3485_v52  ;;  %v3491_v16 = vadd.f32 %v1809_v53, %v1600_v46  ;;  %v3493_v14 = vadd.f32 %v1852_v54, %v1608_v47 }
 0xbdc   : > { %v1811_v22 = vpop.f32.mrf.mxu0  ;;  %v1854_v23 = vpop.f32.mrf.mxu1 }
 0xbdd   : > { %v1867_v21 = vmul.f32 %v1859_v55, %v3483_v50  ;;  %v1869_v26 = vmul.f32 %v1861_v27, %v3485_v52  ;;  %v1860_v29 = vmul.f32 %v3491_v16, %v3491_v16  ;;  %v1862_v56 = vmul.f32 %v3493_v14, %v3493_v14 }
 0xbde   : > { %v3501_v57 = vadd.f32 %v1811_v22, %v1596_v44  ;;  %v3503_v58 = vadd.f32 %v1854_v23, %v1604_v45  ;;  %v1813_v59 = vpop.f32.mrf.mxu0  ;;  %v1856_v60 = vpop.f32.mrf.mxu1 }
 0xbdf   : > { %v1875_v20 = vmul.f32 0.044715, %v1867_v21  ;;  %v1877_v61 = vmul.f32 0.044715, %v1869_v26  ;;  %v1868_v62 = vmul.f32 %v1860_v29, %v3491_v16  ;;  %v1870_v38 = vmul.f32 %v1862_v56, %v3493_v14 }
 0xbe0   : > { %v1863_v0 = vmul.f32 %v3501_v57, %v3501_v57  ;;  %v1865_v1 = vmul.f32 %v3503_v58, %v3503_v58  ;;  %v3511_v3 = vadd.f32 %v1813_v59, %v1600_v46  ;;  %v3513_v2 = vadd.f32 %v1856_v60, %v1608_v47 }
 0xbe1   : > { %v1883_v4 = vadd.f32 %v1875_v20, %v3483_v50  ;;  %v1885_v5 = vadd.f32 %v1877_v61, %v3485_v52  ;;  %v1876_v17 = vmul.f32 0.044715, %v1868_v62  ;;  %v1878_v18 = vmul.f32 0.044715, %v1870_v38 }
 0xbe2   : > { %v1871_v6 = vmul.f32 %v1863_v0, %v3501_v57  ;;  %v1873_v7 = vmul.f32 %v1865_v1, %v3503_v58  ;;  %v1864_v8 = vmul.f32 %v3511_v3, %v3511_v3  ;;  %v1866_v9 = vmul.f32 %v3513_v2, %v3513_v2 }
 0xbe3   : > { %v1891_v10 = vmul.f32 0.7978846, %v1883_v4  ;;  %v1893_v11 = vmul.f32 0.7978846, %v1885_v5  ;;  %v1884_v12 = vadd.f32 %v1876_v17, %v3491_v16  ;;  %v1886_v13 = vadd.f32 %v1878_v18, %v3493_v14 }
 0xbe4   : > { %v1879_v15 = vmul.f32 0.044715, %v1871_v6  ;;  %v1881_v19 = vmul.f32 0.044715, %v1873_v7  ;;  %v1872_v24 = vmul.f32 %v1864_v8, %v3511_v3  ;;  %v1874_v28 = vmul.f32 %v1866_v9, %v3513_v2 }
 0xbe5   : > { %2866 = vtanh.f32 %v1891_v10  ;;  %v1892_v31 = vmul.f32 0.7978846, %v1884_v12  ;;  %v1894_v32 = vmul.f32 0.7978846, %v1886_v13 }
 0xbe6   : > { %2868 = vtanh.f32 %v1893_v11  ;;  %v1887_v33 = vadd.f32 %v1879_v15, %v3501_v57  ;;  %v1889_v25 = vadd.f32 %v1881_v19, %v3503_v58  ;;  %v1880_v34 = vmul.f32 0.044715, %v1872_v24 }
 0xbe7   : > { %2870 = vtanh.f32 %v1892_v31  ;;  %v1882_v36 = vmul.f32 0.044715, %v1874_v28 }
 0xbe8   : > { %2872 = vtanh.f32 %v1894_v32  ;;  %v1895_v37 = vmul.f32 0.7978846, %v1887_v33  ;;  %v1897_v39 = vmul.f32 0.7978846, %v1889_v25  ;;  %v1888_v51 = vadd.f32 %v1880_v34, %v3511_v3 }
 0xbe9   : > { %v1890_v40 = vadd.f32 %v1882_v36, %v3513_v2 }
 0xbea   : > { %2874 = vtanh.f32 %v1895_v37  ;;  %v1896_v30 = vmul.f32 0.7978846, %v1888_v51 }
 0xbeb   : > { %2876 = vtanh.f32 %v1897_v39  ;;  %v1898_v41 = vmul.f32 0.7978846, %v1890_v40 }
 0xbec   : > { %2878 = vtanh.f32 %v1896_v30 }
 0xbed   : > { %2880 = vtanh.f32 %v1898_v41 }
 0xbf2   : > { %v2867_v42 = vpop.eup %2866 }
 0xbf3   : > { %v2869_v43 = vpop.eup %2868  ;;  %v1907_v48 = vadd.f32 1.0, %v2867_v42 }
 0xbf4   : > { %v2871_v44 = vpop.eup %2870  ;;  %v1909_v54 = vadd.f32 1.0, %v2869_v43 }
 0xbf5   : > { %v2873_v45 = vpop.eup %2872  ;;  %v1908_v46 = vadd.f32 1.0, %v2871_v44  ;;  %v1915_v56 = vmul.f32 0.5, %v1907_v48  ;;  %v2511_v48 = vld [vmem:[%s3570_s12] ss:$0 sm:$0xff] }
 0xbf6   : > { %v1910_v49 = vadd.f32 1.0, %v2873_v45  ;;  %v1917_v61 = vmul.f32 0.5, %v1909_v54 }
 0xbf7   : > { %v2875_v47 = vpop.eup %2874  ;;  %v1916_v29 = vmul.f32 0.5, %v1908_v46  ;;  %v1923_v17 = vmul.f32 %v1915_v56, %v3483_v50  ;;  %v2478_v50 = vld [vmem:[%s3569_s11] ss:$0 sm:$0xff] }
 0xbf8   : > { %v2877_v53 = vpop.eup %2876  ;;  %v1911_v55 = vadd.f32 1.0, %v2875_v47  ;;  %v1918_v20 = vmul.f32 0.5, %v1910_v49  ;;  %v1925_v7 = vmul.f32 %v1917_v61, %v3485_v52 }
 0xbf9   : > { %v2879_v27 = vpop.eup %2878  ;;  %v1913_v22 = vadd.f32 1.0, %v2877_v53  ;;  %v1924_v4 = vmul.f32 %v1916_v29, %v3491_v16  ;;  %v2512_v53 = vld [vmem:[%s3571_s13] ss:$0 sm:$0xff] }
 0xbfa   : > { %v2881_v23 = vpop.eup %2880  ;;  %v1919_v21 = vmul.f32 0.5, %v1911_v55  ;;  %v1912_v26 = vadd.f32 1.0, %v2879_v27  ;;  %v1926_v18 = vmul.f32 %v1918_v20, %v3493_v14 }
 0xbfb   : > { %v1921_v59 = vmul.f32 0.5, %v1913_v22  ;;  %v1914_v60 = vadd.f32 1.0, %v2881_v23 }
 0xbfc   : > { %v1920_v62 = vmul.f32 0.5, %v1912_v26  ;;  %v1927_v38 = vmul.f32 %v1919_v21, %v3501_v57 }
 0xbfd   : > { %v1922_v0 = vmul.f32 0.5, %v1914_v60  ;;  %v1929_v1 = vmul.f32 %v1921_v59, %v3503_v58 }
 0xbfe   : > { %v1928_v5 = vmul.f32 %v1920_v62, %v3511_v3  ;;  %v1931_v10 = vpack.c.bf16 %v1927_v38, %v1923_v17 }
 0xbff   : > { %v1930_v6 = vmul.f32 %v1922_v0, %v3513_v2  ;;  %v1933_v57 = vpack.c.bf16 %v1929_v1, %v1925_v7 }
 0xc00   : > { %v1932_v8 = vpack.c.bf16 %v1928_v5, %v1924_v4 }
 0xc01   : > { %v1934_v9 = vpack.c.bf16 %v1930_v6, %v1926_v18 }
 0xc02   : > { %2230 = vmatprep.mubr.bf16.mxu0 %v1932_v8 }
 0xc03   : > { %2271 = vmatprep.mubr.bf16.mxu1 %v1934_v9  ;;  %2231 = vmatmul.mubr.bf16.vlgmr.msra.gmra.mxu0 %v1931_v10 }
 0xc04   : > { %2272 = vmatmul.mubr.bf16.vlgmr.msra.gmra.mxu1 %v1933_v57 }
 0xcc3   : > { %v2568_v58 = vpop.f32.mrf.mxu0 }
 0xcc4   : > { %v2590_v16 = vpop.f32.mrf.mxu1 }
 0xcc5   : > { %v2569_v3 = vpop.f32.mrf.mxu0 }
 0xcc6   : > { %v2570_v14 = vadd.f32 %v2569_v3, %v2568_v58  ;;  %v2591_v11 = vpop.f32.mrf.mxu1 }
 0xcc7   : > { %v2571_v2 = vpop.f32.mrf.mxu0  ;;  %v2592_v52 = vadd.f32 %v2591_v11, %v2590_v16 }
 0xcc8   : > { %v2233_v12 = vadd.f32 %v2570_v14, %v2478_v50  ;;  %v2593_v13 = vpop.f32.mrf.mxu1 }
 0xcc9   : > { %v2572_v15 = vpop.f32.mrf.mxu0 }
 0xcca   : > { %v2274_v19 = vadd.f32 %v2592_v52, %v2233_v12  ;;  %v2573_v24 = vadd.f32 %v2572_v15, %v2571_v2  ;;  %v2594_v28 = vpop.f32.mrf.mxu1 }
 0xccb   : > { %v2595_v32 = vadd.f32 %v2594_v28, %v2593_v13 }
 0xccc   : > { %v2236_v31 = vadd.f32 %v2573_v24, %v2478_v50  ;;  %v2280_v33 = vadd.f32 %v2274_v19, %v3371_v63 }
 0xcce   : > { %v2277_v25 = vadd.f32 %v2595_v32, %v2236_v31  ;;  %2284 = vadd.xlane.f32.xlu1 %v2280_v33 }
 0xcd0   : > { %v2281_v34 = vadd.f32 %v2277_v25, %v3373_v35 }
 0xcd2   : > { %2286 = vadd.xlane.f32.xlu0 %v2281_v34 }
 0xd57   : > { %v2285_v36 = vpop.xlane.xlu1 %2284 }
 0xd58   : > { %v2288_v37 = vmul.f32 0.0078125, %v2285_v36 }
 0xd5a   : > { %v2290_v39 = vsub.f32 %v2280_v33, %v2288_v37 }
 0xd5b   : > { %v2287_v51 = vpop.xlane.xlu0 %2286 }
 0xd5c   : > { %v2289_v40 = vmul.f32 0.0078125, %v2287_v51  ;;  %v2292_v30 = vmul.f32 %v2290_v39, %v2290_v39 }
 0xd5e   : > { %v2291_v41 = vsub.f32 %v2281_v34, %v2289_v40  ;;  %2294 = vadd.xlane.f32.xlu0 %v2292_v30 }
 0xd60   : > { %v2293_v42 = vmul.f32 %v2291_v41, %v2291_v41 }
 0xd62   : > { %2296 = vadd.xlane.f32.xlu0 %v2293_v42 }
 0xde7   : > { %v2295_v43 = vpop.xlane.xlu0 %2294 }
 0xde8   : > { %v2298_v44 = vmul.f32 0.0078125, %v2295_v43 }
 0xdea   : > { %v2300_v45 = vadd.f32 1e-12, %v2298_v44 }
 0xdeb   : > { %v2297_v63 = vpop.xlane.xlu0 %2296 }
 0xdec   : > { %2882 = vrsqrt.f32 %v2300_v45  ;;  %v2299_v46 = vmul.f32 0.0078125, %v2297_v63 }
 0xdee   : > { %v2301_v47 = vadd.f32 1e-12, %v2299_v46 }
 0xdf0   : > { %2884 = vrsqrt.f32 %v2301_v47 }
 0xdf9   : > { %v2883_v35 = vpop.eup %2882 }
 0xdfa   : > { %v2304_v49 = vmul.f32 %v2883_v35, %v2290_v39 }
 0xdfc   : > { %v2312_v54 = vmul.f32 %v2511_v48, %v2304_v49 }
 0xdfd   : > { %v2885_v55 = vpop.eup %2884 }
 0xdfe   : > { %v2320_v27 = vadd.f32 %v2512_v53, %v2312_v54  ;;  %v2305_v22 = vmul.f32 %v2885_v55, %v2291_v41 }
 0xe00   : > { %2322 = vst [vmem:[%s483_s18] sm:$0xff] %v2320_v27  ;;  %v2313_v23 = vmul.f32 %v2511_v48, %v2305_v22 }
 0xe02   : > { %v2321_v21 = vadd.f32 %v2512_v53, %v2313_v23 }
 0xe04   : > { %2323 = vst [vmem:[%s483_s18 + $0x8] sm:$0xff] %v2321_v21 }
 0xe05 PF: > { %s24_s29 = sadd.s32 1, %s2892_s29  }
 0xe06   : > { %p21_p5 = scmp.ge.s32.totalorder %s24_s29, 4  }
 0xe08   :  { %23 = sbr.rel (!%p21_p5) target bundleno = 1 (0x1), region = 109 }

// kernel: prompt_bert_forward.5
= control target key start
LH: loop header
LB: loop body
LE: loop exit
PB: predicated region body
PF: predicated region fallthrough
CT: control target
= control target key end

     0   :  { %19 = vsyncpa [#allocation3], 0  ;;  %s3961_s0 = inlined_call_operand.vmem [shape: f32[32,128], index: 0, kind: input, shape index: {}]   ;;  %s3962_s1 = inlined_call_operand.vmem [shape: f32[2,1,16], index: 1, kind: input, shape index: {}]   ;;  %s3963_s2 = inlined_call_operand.hbm [shape: bf16[128,384], index: 2, kind: input, shape index: {}]   ;;  %s3964_s3 = inlined_call_operand.vmem [shape: f32[1,384], index: 3, kind: input, shape index: {}]   ;;  %s3965_s4 = inlined_call_operand.vmem [shape: bf16[128,128], index: 4, kind: input, shape index: {}]   ;;  %s3966_s5 = inlined_call_operand.vmem [shape: f32[1,128], index: 5, kind: input, shape index: {}]   ;;  %s3967_s6 = inlined_call_operand.vmem [shape: f32[1,128], index: 6, kind: input, shape index: {}]   ;;  %s3968_s7 = inlined_call_operand.hbm [shape: f32[1,128], index: 7, kind: input, shape index: {}]   ;;  %s3969_s8 = inlined_call_operand.vmem [shape: bf16[128,512], index: 8, kind: input, shape index: {}]   ;;  %s3970_s9 = inlined_call_operand.hbm [shape: f32[1,512], index: 9, kind: input, shape index: {}]   ;;  %s3971_s10 = inlined_call_operand.vmem [shape: bf16[512,128], index: 10, kind: input, shape index: {}]   ;;  %s3972_s11 = inlined_call_operand.hbm [shape: f32[1,128], index: 11, kind: input, shape index: {}]   ;;  %s3973_s12 = inlined_call_operand.hbm [shape: f32[1,128], index: 12, kind: input, shape index: {}]   ;;  %s3974_s13 = inlined_call_operand.hbm [shape: f32[1,128], index: 13, kind: input, shape index: {}]   ;;  %s3975_s14 = inlined_call_operand.vmem [shape: f32[32,128], index: 14, kind: output, shape index: {}]  }
   0x1   :  { %20 = vsyncpa [#allocation5], 0 }
   0x2   :  { %21 = vsyncpa [#allocation8], 0 }
   0x3   :  { %22 = vsyncpa [#allocation11], 0  ;;  %s3368_s29 = smov 0  }
   0x4 LB: > { %s3279_s30 = smov [#allocation4]   ;;  %s3374_s16 = sadd.s32 4294967295, %s3277_s29   ;;  %s3277_s29 = sphi %s3368_s29, %s28_s29  }
   0x5   : > { %s401_s15 = sshll.u32 %s3279_s30, 4  ;;  %p2529_p0 = scmp.ge.s32.totalorder %s3277_s29, 1  ;;  %s402_s15 = int_to_ptr.vmem [resolvable:$true] %s401_s15 }
   0x6   : > { %p363_p1 = scmp.lt.s32.totalorder %s3277_s29, 3  ;;  %p3976_p2 = scmp.eq.s32.totalorder %s3374_s16, 0 }
   0x7   : > { %s3280_s18 = smov [#allocation7]   ;;  %s3281_s20 = smov [#allocation2]  }
   0x8   : > { %p3379_p3 = pnand %p2529_p0, %p363_p1  ;;  %s429_s19 = sshll.u32 %s3280_s18, 4  ;;  %s3385_s19 = int_to_ptr.vmem [resolvable:$true] %s429_s19 }
   0x9   : > { %s375_s21 = sshll.u32 %s3281_s20, 4  ;;  %s3282_s23 = smov [#allocation6]   ;;  %s3393_s21 = int_to_ptr.vmem [resolvable:$true] %s375_s21 }
   0xa   : > { %p2870_p4 = pneg %p3379_p3  ;;  %s3395_s24 = sshll.u32 %s3282_s23, 4  ;;  %s416_s24 = int_to_ptr.vmem [resolvable:$true] %s3395_s24 }
   0xb   : > { %s3110_s26 = scalar_lea.vmem %s402_s15, 16  ;;  %s3117_s27 = scalar_lea.vmem %s402_s15, 32 }
   0xc   : > { %p3389_p5 = pnand %p3976_p2, %p2870_p4  ;;  %p3111_p7 = scmp.ne.s32.totalorder %s402_s15, %s3110_s26 }
   0xd   : > { %p3118_p10 = scmp.lt.s32.totalorder %s402_s15, %s402_s15  ;;  %p3119_p11 = scmp.lt.s32.totalorder %s3117_s27, %s3110_s26 }
   0xe   : > { %p3399_p6 = pneg %p3389_p5 }
   0xf   : > { %p3120_p12 = por %p3119_p11, %p3118_p10 }
  0x10   : > { %p3113_p8 = pnand %p3111_p7, %p3399_p6 }
  0x12   : > { %p3114_p9 = pneg %p3113_p8 }
  0x14   : > { %p3121_p13 = pnand %p3120_p12, %p3114_p9 }
  0x16   : > { %3124 = shalt.err (!%p3121_p13)
}
  0x17   : > { %2876 = dma.hbm_to_vmem [thread:$0]  (!%p3389_p5), %s3968_s7, 16, %s402_s15, [#allocation5]  }
  0x18   : > { %s3136_s18 = scalar_lea.vmem %s3385_s19, 16  ;;  %s3143_s20 = scalar_lea.vmem %s3385_s19, 32 }
  0x19   : > { %p3137_p0 = scmp.ne.s32.totalorder %s3385_s19, %s3136_s18  ;;  %p3144_p7 = scmp.lt.s32.totalorder %s3385_s19, %s3385_s19 }
  0x1a   : > { %p3145_p8 = scmp.lt.s32.totalorder %s3143_s20, %s3136_s18 }
  0x1b   : > { %p3139_p1 = pnand %p3137_p0, %p3399_p6 }
  0x1c   : > { %p3146_p9 = por %p3145_p8, %p3144_p7 }
  0x1d   : > { %p3140_p4 = pneg %p3139_p1 }
  0x1f   : > { %p3147_p10 = pnand %p3146_p9, %p3140_p4 }
  0x21   : > { %3150 = shalt.err (!%p3147_p10)
}
  0x22   : > { %2882 = dma.hbm_to_vmem [thread:$0]  (!%p3389_p5), %s3972_s11, 16, %s3385_s19, [#allocation8]  }
  0x23   : > { %s3162_s15 = scalar_lea.vmem %s3393_s21, 3072  ;;  %p3170_p0 = scmp.lt.s32.totalorder %s3393_s21, %s3393_s21 }
  0x24   : > { %p3163_p11 = scmp.ne.s32.totalorder %s3393_s21, %s3162_s15  ;;  %p3171_p1 = scmp.lt.s32.totalorder %s3162_s15, %s3162_s15 }
  0x26   : > { %p3165_p12 = pnand %p3163_p11, %p3399_p6  ;;  %p3172_p4 = por %p3171_p1, %p3170_p0 }
  0x28   : > { %p3166_p13 = pneg %p3165_p12 }
  0x2a   : > { %p3173_p7 = pnand %p3172_p4, %p3166_p13 }
  0x2c   : > { %3176 = shalt.err (!%p3173_p7)
}
  0x2d   : > { %s3283_s27 = smov 192   ;;  %s3284_s28 = smov 12  }
  0x2e   : > { %2873 = dma.hbm_to_vmem [thread:$0]  (!%p3389_p5), %s3963_s2, 3072, %s3393_s21, [#allocation3], %s3283_s27, %s3283_s27, %s3284_s28  }
  0x2f   : > { %s3188_s18 = scalar_lea.vmem %s416_s24, 64  ;;  %p3196_p11 = scmp.lt.s32.totalorder %s416_s24, %s416_s24 }
  0x30   : > { %p3189_p8 = scmp.ne.s32.totalorder %s416_s24, %s3188_s18  ;;  %p3197_p12 = scmp.lt.s32.totalorder %s3188_s18, %s3188_s18 }
  0x32   : > { %p3191_p9 = pnand %p3189_p8, %p3399_p6  ;;  %p3198_p13 = por %p3197_p12, %p3196_p11 }
  0x34   : > { %p3192_p10 = pneg %p3191_p9 }
  0x36   : > { %p3199_p0 = pnand %p3198_p13, %p3192_p10 }
  0x38   : > { %3202 = shalt.err (!%p3199_p0)
}
  0x39   : > { %2879 = dma.hbm_to_vmem [thread:$0]  (!%p3389_p5), %s3970_s9, 64, %s416_s24, [#allocation5]  }
  0x3a   : > { %s3285_s26 = smov [#allocation9]   ;;  %s3286_s15 = smov [#allocation10]  }
  0x3b   : > { %s440_s21 = sshll.u32 %s3285_s26, 4  ;;  %s451_s27 = sshll.u32 %s3286_s15, 4  ;;  %s441_s21 = int_to_ptr.vmem [resolvable:$true] %s440_s21  ;;  %s452_s27 = int_to_ptr.vmem [resolvable:$true] %s451_s27 }
  0x3c   : > { %s3214_s28 = scalar_lea.vmem %s441_s21, 16  ;;  %s3221_s30 = scalar_lea.vmem %s441_s21, 32 }
  0x3d   : > { %p3215_p1 = scmp.ne.s32.totalorder %s441_s21, %s3214_s28  ;;  %p3222_p8 = scmp.lt.s32.totalorder %s441_s21, %s441_s21 }
  0x3e   : > { %p3223_p9 = scmp.lt.s32.totalorder %s3221_s30, %s3214_s28 }
  0x3f   : > { %p3217_p4 = pnand %p3215_p1, %p3399_p6 }
  0x40   : > { %p3224_p10 = por %p3223_p9, %p3222_p8 }
  0x41   : > { %p3218_p7 = pneg %p3217_p4 }
  0x43   : > { %p3225_p11 = pnand %p3224_p10, %p3218_p7 }
  0x45   : > { %3228 = shalt.err (!%p3225_p11)
}
  0x46   : > { %2885 = dma.hbm_to_vmem [thread:$0]  (!%p3389_p5), %s3973_s12, 16, %s441_s21, [#allocation8]  }
  0x47   : > { %s3240_s18 = scalar_lea.vmem %s452_s27, 16  ;;  %s3247_s20 = scalar_lea.vmem %s452_s27, 32 }
  0x48   : > { %p3241_p12 = scmp.ne.s32.totalorder %s452_s27, %s3240_s18  ;;  %p3248_p1 = scmp.lt.s32.totalorder %s452_s27, %s452_s27 }
  0x49   : > { %p3249_p4 = scmp.lt.s32.totalorder %s3247_s20, %s3240_s18 }
  0x4a   : > { %p3243_p13 = pnand %p3241_p12, %p3399_p6 }
  0x4b   : > { %p3250_p2 = por %p3249_p4, %p3248_p1 }
  0x4c   : > { %p3244_p0 = pneg %p3243_p13 }
  0x4e   : > { %p3251_p8 = pnand %p3250_p2, %p3244_p0 }
  0x50   : > { %3254 = shalt.err (!%p3251_p8)
}
  0x51   : > { %2888 = dma.hbm_to_vmem [thread:$0]  (!%p3389_p5), %s3974_s13, 16, %s452_s27, [#allocation11]  }
  0x52   : > { %479 = sbr.rel (%p3379_p3) target bundleno = 3676 (0xe5c), region = 76  ;;  %p3980_p7 = scmp.eq.s32.totalorder (!%p3379_p3), %s3374_s16, 0 }
  0x57   : > { %3260 = dma.done.wait (%p3980_p7), [#allocation3], 3072   ;;  %p3981_p6 = pmov %p3980_p7 }
  0x59   : > { %3262 = vsyncadd (%p3981_p6), [#allocation3], 4294964224  ;;  %p3982_p9 = pmov %p3981_p6 }
  0x5a   : > { %p3983_p2 = pmov %p3981_p6 }
  0x5b   : > { %3264 = dma.done.wait (%p3982_p9), [#allocation5], 80  }
  0x5c   : > { %3266 = vsyncadd (%p3983_p2), [#allocation5], 4294967216  ;;  %p3984_p10 = pmov %p3983_p2 }
  0x5d   : > { %p3985_p5 = pmov %p3983_p2 }
  0x5e   : > { %3268 = dma.done.wait (%p3984_p10), [#allocation8], 32  }
  0x5f   : > { %3270 = vsyncadd (%p3985_p5), [#allocation8], 4294967264  ;;  %p3986_p3 = pmov %p3983_p2 }
  0x60   : > { %p3987_p11 = pmov %p3983_p2 }
  0x61   : > { %3272 = dma.done.wait (%p3986_p3), [#allocation11], 16  }
  0x62   : > { %3274 = vsyncadd (%p3987_p11), [#allocation11], 4294967280  ;;  %v3287_v0 = vmov 0   ;;  %s2544_s17 = sshll.u32 %s3374_s16, 1  ;;  %v2923_v1 = vld [vmem:[#allocation2 + $0xac] ss:$12 sps:$4 sm:$0xff]   ;;  %v602_v21 = vlaneseq }
  0x63   : > { %777 = vmatprep.mubr.bf16.mxu0 %v3287_v0  ;;  %v2925_v2 = vld [vmem:[#allocation2 + $0xa8] ss:$12 sps:$4 sm:$0xff]   ;;  %745 = vmatprep.subr.bf16.mxu0 %v2923_v1  ;;  %p549_p12 = scmp.lt.s32.totalorder %s2544_s17, 3  ;;  %v2928_v4 = vld [vmem:[#allocation2 + $0x90] ss:$12 sps:$4 sm:$0xff]   ;;  %v3288_v20 = vmov 0.0  }
  0x64   : > { %v2926_v3 = vld [vmem:[#allocation2 + $0x94] ss:$12 sps:$4 sm:$0xff]   ;;  %746 = vmatpush1.bf16.msra.mxu0 %v2925_v2  ;;  %v2929_v5 = vld [vmem:[#allocation2 + $0x7c] ss:$12 sps:$4 sm:$0xff]   ;;  %v2931_v6 = vld [vmem:[#allocation2 + $0x78] ss:$12 sps:$4 sm:$0xff]   ;;  %2746 = vmatprep.subr.bf16.mxu1 %v3288_v20 }
  0x65   : > { %747 = vmatprep.subr.bf16.mxu0 %v2926_v3  ;;  %s3989_s17 = smov (!%p549_p12, %s2544_s17), 3  ;;  %v2932_v7 = vld [vmem:[#allocation2 + $0x64] ss:$12 sps:$4 sm:$0xff]   ;;  %v2934_v8 = vld [vmem:[#allocation2 + $0x60] ss:$12 sps:$4 sm:$0xff]   ;;  %vm3289_vm0 = vmmov 0  }
  0x66   : > { %s2545_s22 = sshll.u32 %s3989_s17, 3  ;;  %v2935_v9 = vld [vmem:[#allocation2 + $0x4c] ss:$12 sps:$4 sm:$0xff]   ;;  %v2937_v10 = vld [vmem:[#allocation2 + $0x48] ss:$12 sps:$4 sm:$0xff]   ;;  %2762 = vmatprep.mubr.msk.bf16.mxu1 %vm3289_vm0, %v3288_v20  ;;  %v3497_v22 = vshrl.u32 %v602_v21, 7 }
  0x67   : > { %v2938_v11 = vld [vmem:[#allocation2 + $0x34] ss:$12 sps:$4 sm:$0xff]   ;;  %v2940_v12 = vld [vmem:[#allocation2 + $0x30] ss:$12 sps:$4 sm:$0xff]   ;;  %v2943_v14 = vld [vmem:[#allocation2 + $0x18] ss:$12 sps:$4 sm:$0xff]   ;;  %s552_s15 = scalar_lea.vmem %s3961_s0, %s2545_s22 }
  0x68   : > { %748 = vmatpush1.bf16.msra.mxu0 %v2928_v4  ;;  %v2941_v13 = vld [vmem:[#allocation2 + $0x1c] ss:$12 sps:$4 sm:$0xff]   ;;  %v2944_v15 = vld [vmem:[#allocation2 + $0x4] ss:$12 sps:$4 sm:$0xff]   ;;  %v2946_v16 = vld [vmem:[#allocation2] ss:$12 sps:$4 sm:$0xff]  }
  0x69   : > { %749 = vmatprep.subr.bf16.mxu0 %v2929_v5  ;;  %v3485_v17 = vld [vmem:[%s552_s15] sm:$0xff]  ;;  %v3487_v18 = vld [vmem:[%s552_s15 + $0x8] sm:$0xff]  ;;  %v608_v23 = vsub.s32 1, %v3497_v22  ;;  %v604_v27 = vsub.s32 0, %v3497_v22  ;;  %vm832_vm1 = vcmask 261120   ;;  %s3290_s30 = smov 96  }
  0x6a   : > { %v567_v19 = vpack.c.bf16 %v3487_v18, %v3485_v17  ;;  %v3503_v25 = vld [vmem:[%s3964_s3] sm:$0x7]  ;;  %v2947_v39 = vld [vmem:[#allocation2 + $0xb0] ss:$12 sps:$4 sm:$0xff]   ;;  %v2948_v40 = vld [vmem:[#allocation2 + $0x98] ss:$12 sps:$4 sm:$0xff]  }
  0x6b   : > { %v609_v28 = vrot.slane %v3503_v25, %v608_v23  ;;  %v605_v31 = vrot.slane %v3503_v25, %v604_v27  ;;  %2747 = vmatpush3.bf16.msra.mxu1 %v2947_v39  ;;  %v2949_v41 = vld [vmem:[#allocation2 + $0x80] ss:$12 sps:$4 sm:$0xff]   ;;  %v2950_v42 = vld [vmem:[#allocation2 + $0x68] ss:$12 sps:$4 sm:$0xff]   ;;  %v2951_v43 = vld [vmem:[#allocation2 + $0x50] ss:$12 sps:$4 sm:$0xff]  }
  0x6c   : > { %750 = vmatpush1.bf16.msra.mxu0 %v2931_v6  ;;  %2748 = vmatprep.subr.bf16.mxu1 %v3288_v20  ;;  %v2952_v44 = vld [vmem:[#allocation2 + $0x38] ss:$12 sps:$4 sm:$0xff]   ;;  %v2953_v45 = vld [vmem:[#allocation2 + $0x20] ss:$12 sps:$4 sm:$0xff]   ;;  %v2954_v46 = vld [vmem:[#allocation2 + $0x8] ss:$12 sps:$4 sm:$0xff]  }
  0x6d   : > { %751 = vmatprep.subr.bf16.mxu0 %v2932_v7  ;;  %p554_p13 = scmp.lt.s32.totalorder %s3374_s16, 1  ;;  %vm890_vm2 = vcmask 130048  }
  0x6f   : > { %2749 = vmatpush3.bf16.msra.mxu1 %v2948_v40  ;;  %s3991_s16 = smov (!%p554_p13, %s3374_s16), 1 }
  0x70   : > { %752 = vmatpush1.bf16.msra.mxu0 %v2934_v8  ;;  %2750 = vmatprep.subr.bf16.mxu1 %v3288_v20  ;;  %s556_s18 = scalar_lea.vmem %s3962_s1, %s3991_s16  ;;  %s3291_s16 = smov 64  }
  0x71   : > { %753 = vmatprep.subr.bf16.mxu0 %v2935_v9  ;;  %v3547_v51 = vld [vmem:[%s556_s18] ss:$0 sm:$0xff] }
  0x73   : > { %2751 = vmatpush3.bf16.msra.mxu1 %v2949_v41 }
  0x74   : > { %754 = vmatpush1.bf16.msra.mxu0 %v2937_v10  ;;  %2752 = vmatprep.subr.bf16.mxu1 %v3288_v20 }
  0x75   : > { %755 = vmatprep.subr.bf16.mxu0 %v2938_v11 }
  0x77   : > { %2753 = vmatpush3.bf16.msra.mxu1 %v2950_v42 }
  0x78   : > { %756 = vmatpush1.bf16.msra.mxu0 %v2940_v12  ;;  %2754 = vmatprep.subr.bf16.mxu1 %v3288_v20 }
  0x79   : > { %757 = vmatprep.subr.bf16.mxu0 %v2941_v13 }
  0x7b   : > { %2755 = vmatpush3.bf16.msra.mxu1 %v2951_v43 }
  0x7c   : > { %758 = vmatpush1.bf16.msra.mxu0 %v2943_v14  ;;  %2756 = vmatprep.subr.bf16.mxu1 %v3288_v20  ;;  %v612_v14 = vsub.s32 2, %v3497_v22 }
  0x7d   : > { %759 = vmatprep.subr.bf16.mxu0 %v2944_v15 }
  0x7f   : > { %2757 = vmatpush3.bf16.msra.mxu1 %v2952_v44 }
  0x80   : > { %760 = vmatpush1.bf16.msra.mxu0 %v2946_v16  ;;  %2758 = vmatprep.subr.bf16.mxu1 %v3288_v20  ;;  %v613_v16 = vrot.slane %v3503_v25, %v612_v14 }
  0x81   : > { %2766 = vmatprep.subr.bf16.mxu0 %v3288_v20 }
  0x83   : > { %778 = vmatmul.mubr.bf16.vlgmr.msra.gmra.mxu0 %v567_v19  ;;  %2759 = vmatpush3.bf16.msra.mxu1 %v2953_v45 }
  0x84   : > { %2768 = vmatprep.mubr.msk.bf16.mxu0 %vm3289_vm0, %v3288_v20  ;;  %2760 = vmatprep.subr.bf16.mxu1 %v3288_v20 }
  0x87   : > { %2761 = vmatpush3.bf16.msra.mxu1 %v2954_v46 }
  0x88   : > { %2772 = vmatprep.subr.bf16.mxu1 %v3288_v20 }
  0x8a   : > { %2763 = vmatmul.mubr.bf16.vlgmr.msra.gmra.mxu1 %v567_v19 }
  0x8b   : > { %2774 = vmatprep.mubr.msk.bf16.mxu1 %vm3289_vm0, %v3288_v20 }
 0x143   : > { %v779_v24 = vpop.f32.mrf.mxu0 }
 0x144   : > { %v780_v36 = vadd.f32 %v779_v24, %v605_v31 }
 0x145   : > { %v781_v26 = vpop.f32.mrf.mxu0 }
 0x146   : > { %v782_v32 = vadd.f32 %v781_v26, %v609_v28 }
 0x147   : > { %v783_v29 = vpop.f32.mrf.mxu0 }
 0x148   : > { %v784_v34 = vadd.f32 %v783_v29, %v605_v31 }
 0x149   : > { %v785_v30 = vpop.f32.mrf.mxu0 }
 0x14a   : > { %v786_v33 = vadd.f32 %v785_v30, %v609_v28  ;;  %v3518_v38 = vpack.c.bf16 %v784_v34, %v780_v36  ;;  %v822_v15 = vpop.f32.mrf.mxu1 }
 0x14b   : > { %v823_v21 = vadd.f32 %v822_v15, %v613_v16 }
 0x14c   : > { %v3512_v35 = vpack.c.bf16 %v786_v33, %v782_v32  ;;  %v2764_v19 = vpop.f32.mrf.mxu1 }
 0x14e   : > { %967 = vrot.lane.b32.xlu0 %v3512_v35, %s3290_s30  ;;  %v837_v37 = vsel %vm832_vm1, %v3512_v35, 0  ;;  %v825_v24 = vpop.f32.mrf.mxu1 }
 0x14f   : > { %2767 = vmatpush3.bf16.xpose.msra.mxu0 %v837_v37  ;;  %v826_v26 = vadd.f32 %v825_v24, %v613_v16 }
 0x150   : > { %2778 = vmatprep.subr.bf16.mxu0 %v3288_v20  ;;  %v2765_v28 = vpop.f32.mrf.mxu1 }
 0x151   : > { %v3563_v30 = vpack.c.bf16 %v826_v26, %v823_v21 }
 0x152   : > { %964 = vrot.lane.b32.xlu0 %v3518_v38, %s3290_s30 }
 0x153   : > { %2773 = vmatpush3.bf16.msra.mxu1 %v3563_v30 }
 0x154   : > { %2784 = vmatprep.subr.bf16.mxu1 %v3288_v20 }
 0x156   : > { %2769 = vmatmul.mubr.msk.bf16.vlgmr.msra.gmra.mxu0 %vm832_vm1, %v3518_v38 }
 0x157   : > { %2780 = vmatprep.mubr.msk.bf16.mxu0 %vm3289_vm0, %v3288_v20 }
 0x1c0   : > { %v968_v47 = vpop.permute.xlu0 %967 }
 0x1c1   : > { %v973_v48 = vsel %vm832_vm1, %v968_v47, 0 }
 0x1c2   : > { %2779 = vmatpush3.bf16.xpose.msra.mxu0 %v973_v48 }
 0x1c3   : > { %2790 = vmatprep.subr.bf16.mxu0 %v3288_v20 }
 0x1c4   : > { %v965_v49 = vpop.permute.xlu0 %964 }
 0x1c9   : > { %2781 = vmatmul.mubr.msk.bf16.vlgmr.msra.gmra.mxu0 %vm832_vm1, %v965_v49 }
 0x1ca   : > { %2794 = vmatprep.mubr.msk.bf16.mxu0 %vm3289_vm0, %v3288_v20 }
 0x216   : > { %v873_v50 = vpop.f32.mrf.mxu0 }
 0x217   : > { %v880_v52 = vmul.f32 0.17677669, %v873_v50 }
 0x218   : > { %v2770_v53 = vpop.f32.mrf.mxu0 }
 0x219   : > { %v888_v54 = vadd.f32 %v3547_v51, %v880_v52  ;;  %v2957_v53 = vld [vmem:[%s3965_s4 + $0x18] sm:$0xff]  }
 0x21a   : > { %v876_v55 = vpop.f32.mrf.mxu0  ;;  %2791 = vmatpush3.bf16.msra.mxu0 %v2957_v53 }
 0x21b   : > { %v881_v56 = vmul.f32 0.17677669, %v876_v55  ;;  %v891_v57 = vsel %vm890_vm2, %v888_v54, -inf  ;;  %2792 = vmatprep.subr.bf16.mxu0 %v3288_v20 }
 0x21c   : > { %892 = vmax.xlane.f32.xlu1 %v891_v57  ;;  %v2771_v58 = vpop.f32.mrf.mxu0 }
 0x21d   : > { %v889_v59 = vadd.f32 %v3547_v51, %v881_v56 }
 0x21f   : > { %v894_v60 = vsel %vm890_vm2, %v889_v59, -inf }
 0x220   : > { %895 = vmax.xlane.f32.xlu1 %v894_v60 }
 0x289   : > { %v1009_v61 = vpop.f32.mrf.mxu0 }
 0x28a   : > { %v1016_v62 = vmul.f32 0.17677669, %v1009_v61  ;;  %v2955_v61 = vld [vmem:[%s3965_s4 + $0x8] sm:$0xff]  }
 0x28b   : > { %v2782_v63 = vpop.f32.mrf.mxu0 }
 0x28c   : > { %v1018_v1 = vadd.f32 %v3547_v51, %v1016_v62  ;;  %v2956_v63 = vld [vmem:[%s3965_s4] sm:$0xff]  }
 0x28d   : > { %v1012_v2 = vpop.f32.mrf.mxu0 }
 0x28e   : > { %v1017_v3 = vmul.f32 0.17677669, %v1012_v2  ;;  %v1020_v4 = vsel %vm890_vm2, %v1018_v1, -inf }
 0x28f   : > { %1021 = vmax.xlane.f32.xlu0 %v1020_v4  ;;  %v2783_v5 = vpop.f32.mrf.mxu0 }
 0x290   : > { %v1019_v6 = vadd.f32 %v3547_v51, %v1017_v3 }
 0x292   : > { %v1023_v7 = vsel %vm890_vm2, %v1019_v6, -inf }
 0x293   : > { %1024 = vmax.xlane.f32.xlu1 %v1023_v7 }
 0x2a5   : > { %v893_v8 = vpop.xlane.xlu1 %892  ;;  %1210 = vrot.lane.b32.xlu0 %v3512_v35, %s3291_s16 }
 0x2a6   : > { %v897_v9 = vsub.f32 %v888_v54, %v893_v8 }
 0x2a8   : > { %v899_v10 = vmul.f32 1.442695, %v897_v9 }
 0x2a9   : > { %v896_v11 = vpop.xlane.xlu1 %895 }
 0x2aa   : > { %3043 = vpow2.f32 %v899_v10  ;;  %v898_v12 = vsub.f32 %v889_v59, %v896_v11 }
 0x2ac   : > { %v901_v13 = vmul.f32 1.442695, %v898_v12 }
 0x2ae   : > { %3045 = vpow2.f32 %v901_v13 }
 0x2b7   : > { %v3044_v29 = vpop.eup %3043 }
 0x2b8   : > { %v903_v31 = vsel %vm890_vm2, %v3044_v29, 0.0 }
 0x2b9   : > { %904 = vadd.xlane.f32.xlu1 %v903_v31 }
 0x2bb   : > { %v3046_v32 = vpop.eup %3045 }
 0x2bc   : > { %v906_v33 = vsel %vm890_vm2, %v3046_v32, 0.0 }
 0x2bd   : > { %907 = vadd.xlane.f32.xlu1 %v906_v33 }
 0x318   : > { %v1022_v25 = vpop.xlane.xlu0 %1021 }
 0x319   : > { %v1026_v34 = vsub.f32 %v1018_v1, %v1022_v25  ;;  %v2958_v1 = vld [vmem:[%s3965_s4 + $0x10] sm:$0xff]  }
 0x31a   : > { %2793 = vmatpush3.bf16.msra.mxu0 %v2958_v1  ;;  %v2960_v1 = vld [vmem:[%s3965_s4 + $0x20] sm:$0xff]  }
 0x31b   : > { %v1028_v36 = vmul.f32 1.442695, %v1026_v34  ;;  %2806 = vmatprep.subr.bf16.mxu0 %v3288_v20 }
 0x31c   : > { %v1025_v37 = vpop.xlane.xlu1 %1024  ;;  %v1211_v9 = vpop.permute.xlu0 %1210 }
 0x31d   : > { %3047 = vpow2.f32 %v1028_v36  ;;  %v1027_v39 = vsub.f32 %v1019_v6, %v1025_v37  ;;  %v1216_v13 = vsel %vm832_vm1, %v1211_v9, 0 }
 0x31f   : > { %v1030_v40 = vmul.f32 1.442695, %v1027_v39 }
 0x321   : > { %3049 = vpow2.f32 %v1030_v40 }
 0x32a   : > { %v3048_v41 = vpop.eup %3047 }
 0x32b   : > { %v1032_v42 = vsel %vm890_vm2, %v3048_v41, 0.0 }
 0x32c   : > { %1033 = vadd.xlane.f32.xlu1 %v1032_v42 }
 0x32e   : > { %v3050_v43 = vpop.eup %3049 }
 0x32f   : > { %v1035_v44 = vsel %vm890_vm2, %v3050_v43, 0.0 }
 0x330   : > { %1036 = vadd.xlane.f32.xlu1 %v1035_v44 }
 0x341   : > { %1044 = vrot.lane.b32.xlu1 %v3563_v30, %s3290_s30  ;;  %s3292_s30 = smov 32  }
 0x342   : > { %v905_v45 = vpop.xlane.xlu1 %904 }
 0x343   : > { %3051 = vrcp.f32 %v905_v45 }
 0x345   : > { %1208 = vrot.lane.b32.xlu1 %v3518_v38, %s3291_s16 }
 0x346   : > { %v908_v46 = vpop.xlane.xlu1 %907 }
 0x347   : > { %3053 = vrcp.f32 %v908_v46 }
 0x350   : > { %v3052_v47 = vpop.eup %3051 }
 0x351   : > { %v911_v49 = vmul.f32 %v3052_v47, %v3044_v29 }
 0x354   : > { %v3054_v48 = vpop.eup %3053 }
 0x355   : > { %v912_v50 = vmul.f32 %v3054_v48, %v3046_v32 }
 0x357   : > { %v913_v52 = vpack.c.bf16 %v912_v50, %v911_v49 }
 0x359   : > { %2775 = vmatmul.mubr.msk.bf16.vlgmr.msra.gmra.mxu1 %vm890_vm2, %v913_v52 }
 0x35a   : > { %2786 = vmatprep.mubr.msk.bf16.mxu1 %vm3289_vm0, %v3288_v20 }
 0x3b5   : > { %v1034_v54 = vpop.xlane.xlu1 %1033 }
 0x3b6   : > { %3055 = vrcp.f32 %v1034_v54 }
 0x3b9   : > { %v1037_v55 = vpop.xlane.xlu1 %1036 }
 0x3ba   : > { %3057 = vrcp.f32 %v1037_v55 }
 0x3bd   : > { %v1045_v56 = vpop.permute.xlu1 %1044 }
 0x3be   : > { %2785 = vmatpush3.bf16.msra.mxu1 %v1045_v56 }
 0x3bf   : > { %2798 = vmatprep.subr.bf16.mxu1 %v3288_v20 }
 0x3c1   : > { %v1209_v15 = vpop.permute.xlu1 %1208 }
 0x3c3   : > { %v3056_v57 = vpop.eup %3055 }
 0x3c4   : > { %v1040_v59 = vmul.f32 %v3056_v57, %v3048_v41 }
 0x3c7   : > { %v3058_v58 = vpop.eup %3057 }
 0x3c8   : > { %v1041_v60 = vmul.f32 %v3058_v58, %v3050_v43 }
 0x3ca   : > { %v1042_v62 = vpack.c.bf16 %v1041_v60, %v1040_v59 }
 0x3cc   : > { %2787 = vmatmul.mubr.msk.bf16.vlgmr.msra.gmra.mxu1 %vm890_vm2, %v1042_v62 }
 0x3cd   : > { %2799 = vmatpush3.bf16.msra.mxu1 %v2955_v61  ;;  %2802 = vmatprep.mubr.msk.bf16.mxu1 %vm3289_vm0, %v3288_v20 }
 0x3ce   : > { %2800 = vmatprep.subr.bf16.mxu1 %v3288_v20 }
 0x3d1   : > { %2801 = vmatpush3.bf16.msra.mxu1 %v2956_v63 }
 0x3d2   : > { %2812 = vmatprep.subr.bf16.mxu1 %v3288_v20 }
 0x419   : > { %v951_v2 = vpop.f32.mrf.mxu1 }
 0x41b   : > { %v2776_v3 = vpop.f32.mrf.mxu1 }
 0x41d   : > { %v954_v4 = vpop.f32.mrf.mxu1 }
 0x41e   : > { %v958_v5 = vpack.c.bf16 %v954_v4, %v951_v2 }
 0x41f   : > { %v2777_v6 = vpop.f32.mrf.mxu1 }
 0x420   : > { %2803 = vmatmul.mubr.msk.bf16.vlgmr.msra.gmra.mxu1 %vm832_vm1, %v958_v5 }
 0x421   : > { %2814 = vmatprep.mubr.msk.bf16.mxu1 %vm3289_vm0, %v3288_v20 }
 0x48c   : > { %v1084_v7 = vpop.f32.mrf.mxu1 }
 0x48e   : > { %v2788_v8 = vpop.f32.mrf.mxu1 }
 0x490   : > { %v1087_v10 = vpop.f32.mrf.mxu1 }
 0x491   : > { %v1091_v11 = vpack.c.bf16 %v1087_v10, %v1084_v7 }
 0x492   : > { %v2789_v12 = vpop.f32.mrf.mxu1 }
 0x493   : > { %2795 = vmatmul.mubr.msk.bf16.vlgmr.msra.gmra.mxu0 %vm832_vm1, %v1091_v11 }
 0x494   : > { %2807 = vmatpush3.bf16.xpose.msra.mxu0 %v1216_v13  ;;  %2808 = vmatprep.mubr.msk.bf16.mxu0 %vm3289_vm0, %v3288_v20 }
 0x495   : > { %2818 = vmatprep.subr.bf16.mxu0 %v3288_v20 }
 0x49b   : > { %2809 = vmatmul.mubr.msk.bf16.vlgmr.msra.gmra.mxu0 %vm832_vm1, %v1209_v15 }
 0x49c   : > { %2822 = vmatprep.mubr.msk.bf16.mxu0 %vm3289_vm0, %v3288_v20 }
 0x4e0   : > { %v3609_v16 = vpop.f32.mrf.mxu1 }
 0x4e2   : > { %v2804_v19 = vpop.f32.mrf.mxu1 }
 0x4e4   : > { %v3611_v21 = vpop.f32.mrf.mxu1 }
 0x4e6   : > { %v2805_v24 = vpop.f32.mrf.mxu1 }
 0x553   : > { %v3613_v26 = vpop.f32.mrf.mxu0 }
 0x555   : > { %v2796_v28 = vpop.f32.mrf.mxu0 }
 0x557   : > { %v3615_v29 = vpop.f32.mrf.mxu0 }
 0x559   : > { %v2797_v31 = vpop.f32.mrf.mxu0 }
 0x55b   : > { %v1252_v32 = vpop.f32.mrf.mxu0 }
 0x55c   : > { %v1259_v33 = vmul.f32 0.17677669, %v1252_v32 }
 0x55d   : > { %v2810_v25 = vpop.f32.mrf.mxu0 }
 0x55e   : > { %v1261_v34 = vadd.f32 %v3547_v51, %v1259_v33 }
 0x55f   : > { %v1255_v36 = vpop.f32.mrf.mxu0 }
 0x560   : > { %v1260_v37 = vmul.f32 0.17677669, %v1255_v36  ;;  %v1263_v39 = vsel %vm890_vm2, %v1261_v34, -inf }
 0x561   : > { %1264 = vmax.xlane.f32.xlu1 %v1263_v39  ;;  %v2811_v40 = vpop.f32.mrf.mxu0 }
 0x562   : > { %v1262_v41 = vadd.f32 %v3547_v51, %v1260_v37 }
 0x564   : > { %v1266_v42 = vsel %vm890_vm2, %v1262_v41, -inf }
 0x565   : > { %1267 = vmax.xlane.f32.xlu0 %v1266_v42 }
 0x57b   : > { %1286 = vrot.lane.b32.xlu0 %v3563_v30, %s3291_s16 }
 0x5ea   : > { %v1265_v43 = vpop.xlane.xlu1 %1264 }
 0x5eb   : > { %v1269_v44 = vsub.f32 %v1261_v34, %v1265_v43 }
 0x5ed   : > { %v1271_v45 = vmul.f32 1.442695, %v1269_v44  ;;  %v1205_v44 = vadd.f32 %v3611_v21, %v3615_v29  ;;  %v2962_v21 = vld [vmem:[%s3965_s4 + $0x30] sm:$0xff]  }
 0x5ee   : > { %v1268_v46 = vpop.xlane.xlu0 %1267 }
 0x5ef   : > { %3059 = vpow2.f32 %v1271_v45  ;;  %v1270_v47 = vsub.f32 %v1262_v41, %v1268_v46 }
 0x5f1   : > { %v1273_v48 = vmul.f32 1.442695, %v1270_v47 }
 0x5f2   : > { %v1287_v49 = vpop.permute.xlu0 %1286 }
 0x5f3   : > { %3061 = vpow2.f32 %v1273_v48  ;;  %2813 = vmatpush3.bf16.msra.mxu1 %v1287_v49 }
 0x5f4   : > { %2826 = vmatprep.subr.bf16.mxu1 %v3288_v20 }
 0x5fc   : > { %v3060_v50 = vpop.eup %3059 }
 0x5fd   : > { %v1275_v52 = vsel %vm890_vm2, %v3060_v50, 0.0 }
 0x5fe   : > { %1276 = vadd.xlane.f32.xlu1 %v1275_v52 }
 0x600   : > { %v3062_v53 = vpop.eup %3061 }
 0x601   : > { %v1278_v54 = vsel %vm890_vm2, %v3062_v53, 0.0 }
 0x602   : > { %1279 = vadd.xlane.f32.xlu1 %v1278_v54 }
 0x613   : > { %1398 = vrot.lane.b32.xlu1 %v3512_v35, %s3292_s30 }
 0x617   : > { %1396 = vrot.lane.b32.xlu1 %v3518_v38, %s3292_s30  ;;  %v2959_v38 = vld [vmem:[%s3965_s4 + $0x28] sm:$0xff]  }
 0x618   : > { %2819 = vmatpush3.bf16.msra.mxu0 %v2959_v38 }
 0x619   : > { %2820 = vmatprep.subr.bf16.mxu0 %v3288_v20 }
 0x61c   : > { %2821 = vmatpush3.bf16.msra.mxu0 %v2960_v1 }
 0x61d   : > { %2832 = vmatprep.subr.bf16.mxu0 %v3288_v20 }
 0x687   : > { %v1277_v55 = vpop.xlane.xlu1 %1276 }
 0x688   : > { %3063 = vrcp.f32 %v1277_v55 }
 0x68b   : > { %v1280_v56 = vpop.xlane.xlu1 %1279 }
 0x68c   : > { %3065 = vrcp.f32 %v1280_v56 }
 0x68f   : > { %v1399_v61 = vpop.permute.xlu1 %1398 }
 0x690   : > { %v1404_v63 = vsel %vm832_vm1, %v1399_v61, 0 }
 0x693   : > { %v1397_v35 = vpop.permute.xlu1 %1396 }
 0x695   : > { %v3064_v57 = vpop.eup %3063 }
 0x696   : > { %v1283_v59 = vmul.f32 %v3064_v57, %v3060_v50 }
 0x699   : > { %v3066_v58 = vpop.eup %3065 }
 0x69a   : > { %v1284_v60 = vmul.f32 %v3066_v58, %v3062_v53 }
 0x69c   : > { %v1285_v62 = vpack.c.bf16 %v1284_v60, %v1283_v59  ;;  %v2593_v60 = vld [vmem:[%s3966_s5] ss:$0 sm:$0xff] }
 0x69e   : > { %2815 = vmatmul.mubr.msk.bf16.vlgmr.msra.gmra.mxu1 %vm890_vm2, %v1285_v62 }
 0x69f   : > { %2827 = vmatpush3.bf16.xpose.msra.mxu1 %v1404_v63  ;;  %2828 = vmatprep.mubr.msk.bf16.mxu1 %vm3289_vm0, %v3288_v20 }
 0x6a0   : > { %2838 = vmatprep.subr.bf16.mxu1 %v3288_v20 }
 0x6a6   : > { %2829 = vmatmul.mubr.msk.bf16.vlgmr.msra.gmra.mxu1 %vm832_vm1, %v1397_v35 }
 0x6a7   : > { %2842 = vmatprep.mubr.msk.bf16.mxu1 %vm3289_vm0, %v3288_v20 }
 0x75e   : > { %v1326_v2 = vpop.f32.mrf.mxu1 }
 0x760   : > { %v2816_v3 = vpop.f32.mrf.mxu1 }
 0x762   : > { %v1329_v4 = vpop.f32.mrf.mxu1 }
 0x763   : > { %v1333_v5 = vpack.c.bf16 %v1329_v4, %v1326_v2  ;;  %v2965_v4 = vld [vmem:[%s3969_s8 + $0xe4] ss:$16 sps:$4 sm:$0xff]  }
 0x764   : > { %v2817_v6 = vpop.f32.mrf.mxu1 }
 0x765   : > { %2823 = vmatmul.mubr.msk.bf16.vlgmr.msra.gmra.mxu0 %vm832_vm1, %v1333_v5  ;;  %v2966_v5 = vld [vmem:[%s3969_s8 + $0xe8] ss:$16 sps:$4 sm:$0xff]  }
 0x766   : > { %v1440_v7 = vpop.f32.mrf.mxu1  ;;  %2834 = vmatprep.mubr.msk.bf16.mxu0 %vm3289_vm0, %v3288_v20 }
 0x767   : > { %v1447_v8 = vmul.f32 0.17677669, %v1440_v7 }
 0x768   : > { %v2830_v9 = vpop.f32.mrf.mxu1 }
 0x769   : > { %v1449_v10 = vadd.f32 %v3547_v51, %v1447_v8 }
 0x76a   : > { %v1443_v11 = vpop.f32.mrf.mxu1 }
 0x76b   : > { %v1448_v12 = vmul.f32 0.17677669, %v1443_v11  ;;  %v1451_v13 = vsel %vm890_vm2, %v1449_v10, -inf }
 0x76c   : > { %1452 = vmax.xlane.f32.xlu0 %v1451_v13  ;;  %v2831_v15 = vpop.f32.mrf.mxu1  ;;  %v2971_v13 = vld [vmem:[%s3969_s8 + $0xc4] ss:$16 sps:$4 sm:$0xff]  }
 0x76d   : > { %v1450_v19 = vadd.f32 %v3547_v51, %v1448_v12  ;;  %v2974_v15 = vld [vmem:[%s3969_s8 + $0xcc] ss:$16 sps:$4 sm:$0xff]  }
 0x76f   : > { %v1454_v24 = vsel %vm890_vm2, %v1450_v19, -inf }
 0x770   : > { %1455 = vmax.xlane.f32.xlu1 %v1454_v24  ;;  %v2972_v24 = vld [vmem:[%s3969_s8 + $0xc8] ss:$16 sps:$4 sm:$0xff]  }
 0x781   : > { %1474 = vrot.lane.b32.xlu1 %v3563_v30, %s3292_s30  ;;  %v1202_v30 = vadd.f32 %v3609_v16, %v3613_v26  ;;  %v2961_v16 = vld [vmem:[%s3965_s4 + $0x38] sm:$0xff]   ;;  %s561_s30 = scalar_lea.vmem %s3975_s14, %s2545_s22 }
 0x782   : > { %2839 = vmatpush3.bf16.msra.mxu1 %v2961_v16 }
 0x783   : > { %2840 = vmatprep.subr.bf16.mxu1 %v3288_v20 }
 0x786   : > { %2841 = vmatpush3.bf16.msra.mxu1 %v2962_v21 }
 0x7f5   : > { %v1453_v28 = vpop.xlane.xlu0 %1452 }
 0x7f6   : > { %v1457_v31 = vsub.f32 %v1449_v10, %v1453_v28  ;;  %v2977_v28 = vld [vmem:[%s3969_s8 + $0xa4] ss:$16 sps:$4 sm:$0xff]  }
 0x7f8   : > { %v1459_v32 = vmul.f32 1.442695, %v1457_v31  ;;  %v2980_v31 = vld [vmem:[%s3969_s8 + $0xac] ss:$16 sps:$4 sm:$0xff]  }
 0x7f9   : > { %v1456_v33 = vpop.xlane.xlu1 %1455 }
 0x7fa   : > { %3067 = vpow2.f32 %v1459_v32  ;;  %v1458_v25 = vsub.f32 %v1450_v19, %v1456_v33  ;;  %v2969_v19 = vld [vmem:[%s3969_s8 + $0xc0] ss:$16 sps:$4 sm:$0xff]   ;;  %v2978_v33 = vld [vmem:[%s3969_s8 + $0xa8] ss:$16 sps:$4 sm:$0xff]  }
 0x7fb   : > { %v2975_v32 = vld [vmem:[%s3969_s8 + $0xa0] ss:$16 sps:$4 sm:$0xff]  }
 0x7fc   : > { %v1461_v34 = vmul.f32 1.442695, %v1458_v25  ;;  %v2981_v25 = vld [vmem:[%s3969_s8 + $0x80] ss:$16 sps:$4 sm:$0xff]  }
 0x7fd   : > { %v1475_v36 = vpop.permute.xlu1 %1474 }
 0x7fe   : > { %3069 = vpow2.f32 %v1461_v34  ;;  %2833 = vmatpush3.bf16.msra.mxu0 %v1475_v36  ;;  %v2983_v34 = vld [vmem:[%s3969_s8 + $0x84] ss:$16 sps:$4 sm:$0xff]   ;;  %v2984_v36 = vld [vmem:[%s3969_s8 + $0x88] ss:$16 sps:$4 sm:$0xff]  }
 0x7ff   : > { %1851 = vmatprep.subr.bf16.mxu0 %v2965_v4  ;;  %v3015_v4 = vld [vmem:[%s3971_s10 + $0x70] sm:$0xff]  }
 0x807   : > { %v3068_v37 = vpop.eup %3067 }
 0x808   : > { %v1463_v39 = vsel %vm890_vm2, %v3068_v37, 0.0 }
 0x809   : > { %1464 = vadd.xlane.f32.xlu0 %v1463_v39  ;;  %v2989_v39 = vld [vmem:[%s3969_s8 + $0x64] ss:$16 sps:$4 sm:$0xff]  }
 0x80b   : > { %v3070_v51 = vpop.eup %3069 }
 0x80c   : > { %v1466_v40 = vsel %vm890_vm2, %v3070_v51, 0.0 }
 0x80d   : > { %1467 = vadd.xlane.f32.xlu0 %v1466_v40  ;;  %v2987_v40 = vld [vmem:[%s3969_s8 + $0x60] ss:$16 sps:$4 sm:$0xff]  }
 0x825   : > { %v1387_v41 = vpop.f32.mrf.mxu0 }
 0x826   : > { %v1394_v42 = vadd.f32 %v1387_v41, %v1202_v30  ;;  %v2990_v30 = vld [vmem:[%s3969_s8 + $0x68] ss:$16 sps:$4 sm:$0xff]   ;;  %v2995_v41 = vld [vmem:[%s3969_s8 + $0x44] ss:$16 sps:$4 sm:$0xff]  }
 0x827   : > { %v2824_v43 = vpop.f32.mrf.mxu0 }
 0x828   : > { %v2993_v43 = vld [vmem:[%s3969_s8 + $0x40] ss:$16 sps:$4 sm:$0xff]  }
 0x829   : > { %v1390_v45 = vpop.f32.mrf.mxu0 }
 0x82a   : > { %v1395_v46 = vadd.f32 %v1390_v45, %v1205_v44  ;;  %v2996_v44 = vld [vmem:[%s3969_s8 + $0x48] ss:$16 sps:$4 sm:$0xff]   ;;  %v3001_v45 = vld [vmem:[%s3969_s8 + $0x24] ss:$16 sps:$4 sm:$0xff]  }
 0x82b   : > { %v2825_v47 = vpop.f32.mrf.mxu0 }
 0x82c   : > { %v2999_v47 = vld [vmem:[%s3969_s8 + $0x20] ss:$16 sps:$4 sm:$0xff]  }
 0x892   : > { %v1465_v48 = vpop.xlane.xlu0 %1464 }
 0x893   : > { %3071 = vrcp.f32 %v1465_v48  ;;  %v3002_v48 = vld [vmem:[%s3969_s8 + $0x28] ss:$16 sps:$4 sm:$0xff]  }
 0x896   : > { %v1468_v49 = vpop.xlane.xlu0 %1467 }
 0x897   : > { %3073 = vrcp.f32 %v1468_v49  ;;  %v3007_v49 = vld [vmem:[%s3969_s8 + $0x4] ss:$16 sps:$4 sm:$0xff]  }
 0x8a0   : > { %v3072_v50 = vpop.eup %3071 }
 0x8a1   : > { %v1471_v53 = vmul.f32 %v3072_v50, %v3068_v37  ;;  %v2986_v37 = vld [vmem:[%s3969_s8 + $0x8c] ss:$16 sps:$4 sm:$0xff]  }
 0x8a2   : > { %v3010_v50 = vld [vmem:[%s3969_s8 + $0xc] ss:$16 sps:$4 sm:$0xff]  }
 0x8a4   : > { %v3074_v52 = vpop.eup %3073 }
 0x8a5   : > { %v1472_v54 = vmul.f32 %v3074_v52, %v3070_v51  ;;  %v2992_v51 = vld [vmem:[%s3969_s8 + $0x6c] ss:$16 sps:$4 sm:$0xff]   ;;  %v3005_v52 = vld [vmem:[%s3969_s8] ss:$16 sps:$4 sm:$0xff]  }
 0x8a7   : > { %v1473_v55 = vpack.c.bf16 %v1472_v54, %v1471_v53  ;;  %v3008_v53 = vld [vmem:[%s3969_s8 + $0x8] ss:$16 sps:$4 sm:$0xff]  }
 0x8a9   : > { %2835 = vmatmul.mubr.msk.bf16.vlgmr.msra.gmra.mxu0 %vm890_vm2, %v1473_v55 }
 0x8aa   : > { %1883 = vmatprep.mubr.bf16.mxu0 %v3287_v0 }
 0x969   : > { %v1514_v26 = vpop.f32.mrf.mxu0 }
 0x96b   : > { %v2836_v29 = vpop.f32.mrf.mxu0 }
 0x96d   : > { %v1517_v56 = vpop.f32.mrf.mxu0 }
 0x96e   : > { %v1521_v57 = vpack.c.bf16 %v1517_v56, %v1514_v26 }
 0x96f   : > { %v2837_v58 = vpop.f32.mrf.mxu0 }
 0x970   : > { %2843 = vmatmul.mubr.msk.bf16.vlgmr.msra.gmra.mxu1 %vm832_vm1, %v1521_v57  ;;  %v2594_v58 = vld [vmem:[%s3967_s6] ss:$0 sm:$0xff] }
 0x971   : > { %1926 = vmatprep.mubr.bf16.mxu1 %v3287_v0  ;;  %v2963_v0 = vld [vmem:[%s3969_s8 + $0xe0] ss:$16 sps:$4 sm:$0xff]  }
 0x972   : > { %1852 = vmatpush1.bf16.msra.mxu0 %v2963_v0  ;;  %v3014_v0 = vld [vmem:[%s3971_s10 + $0xb8] sm:$0xff]  }
 0x973   : > { %1853 = vmatprep.subr.bf16.mxu0 %v2971_v13  ;;  %v3026_v13 = vld [vmem:[%s3971_s10 + $0xa0] sm:$0xff]  }
 0x976   : > { %1854 = vmatpush1.bf16.msra.mxu0 %v2969_v19  ;;  %v3028_v19 = vld [vmem:[%s3971_s10 + $0xd8] sm:$0xff]  }
 0x977   : > { %1855 = vmatprep.subr.bf16.mxu0 %v2977_v28  ;;  %v3030_v28 = vld [vmem:[%s3971_s10 + $0x98] sm:$0xff]  }
 0x97a   : > { %1856 = vmatpush1.bf16.msra.mxu0 %v2975_v32  ;;  %v3032_v32 = vld [vmem:[%s3971_s10 + $0xd0] sm:$0xff]  }
 0x97b   : > { %1857 = vmatprep.subr.bf16.mxu0 %v2983_v34  ;;  %v3035_v34 = vld [vmem:[%s3971_s10 + $0x48] sm:$0xff]  }
 0x97e   : > { %1858 = vmatpush1.bf16.msra.mxu0 %v2981_v25  ;;  %v3034_v25 = vld [vmem:[%s3971_s10 + $0x90] sm:$0xff]  }
 0x97f   : > { %1859 = vmatprep.subr.bf16.mxu0 %v2989_v39  ;;  %v3038_v39 = vld [vmem:[%s3971_s10 + $0x88] sm:$0xff]  }
 0x982   : > { %1860 = vmatpush1.bf16.msra.mxu0 %v2987_v40  ;;  %v3040_v40 = vld [vmem:[%s3971_s10 + $0xc0] sm:$0xff]  }
 0x983   : > { %1861 = vmatprep.subr.bf16.mxu0 %v2995_v41  ;;  %v3042_v41 = vld [vmem:[%s3971_s10 + $0x80] sm:$0xff]  }
 0x986   : > { %1862 = vmatpush1.bf16.msra.mxu0 %v2993_v43  ;;  %v1685_v43 = vsub.s32 3, %v3497_v22 }
 0x987   : > { %1863 = vmatprep.subr.bf16.mxu0 %v3001_v45 }
 0x98a   : > { %1864 = vmatpush1.bf16.msra.mxu0 %v2999_v47 }
 0x98b   : > { %1865 = vmatprep.subr.bf16.mxu0 %v3007_v49 }
 0x98e   : > { %1866 = vmatpush1.bf16.msra.mxu0 %v3005_v52 }
 0xa30   : > { %v1575_v59 = vpop.f32.mrf.mxu1 }
 0xa31   : > { %v1582_v20 = vadd.f32 %v1575_v59, %v1394_v42  ;;  %v2998_v42 = vld [vmem:[%s3969_s8 + $0x4c] ss:$16 sps:$4 sm:$0xff]  }
 0xa32   : > { %v2844_v61 = vpop.f32.mrf.mxu1 }
 0xa33   : > { %v1591_v62 = vadd.f32 %v2593_v60, %v1582_v20  ;;  %v2595_v61 = vld [vmem:[#allocation4] ss:$0 sm:$0xff] }
 0xa34   : > { %v1578_v63 = vpop.f32.mrf.mxu1 }
 0xa35   : > { %v1583_v35 = vadd.f32 %v1578_v63, %v1395_v46  ;;  %v1593_v38 = vadd.f32 %v1591_v62, %v3485_v17  ;;  %v2968_v17 = vld [vmem:[%s3969_s8 + $0xec] ss:$16 sps:$4 sm:$0xff]  }
 0xa36   : > { %v2845_v1 = vpop.f32.mrf.mxu1  ;;  %1894 = vmatprep.subr.bf16.mxu1 %v2968_v17  ;;  %v3004_v46 = vld [vmem:[%s3969_s8 + $0x2c] ss:$16 sps:$4 sm:$0xff]   ;;  %v3017_v17 = vld [vmem:[%s3971_s10 + $0x30] sm:$0xff]  }
 0xa37   : > { %v1592_v2 = vadd.f32 %v2593_v60, %v1583_v35  ;;  %1597 = vadd.xlane.f32.xlu0 %v1593_v38  ;;  %1895 = vmatpush1.bf16.msra.mxu1 %v2966_v5  ;;  %v3011_v1 = vld [vmem:[%s3971_s10 + $0x78] sm:$0xff]   ;;  %v3016_v5 = vld [vmem:[%s3971_s10 + $0xf0] sm:$0xff]  }
 0xa38   : > { %1896 = vmatprep.subr.bf16.mxu1 %v2974_v15  ;;  %2702 = vmatprep.subr.bf16.mxu0 %v3011_v1  ;;  %v3027_v15 = vld [vmem:[%s3971_s10 + $0x58] sm:$0xff]  }
 0xa39   : > { %v1594_v3 = vadd.f32 %v1592_v2, %v3487_v18  ;;  %v3012_v2 = vld [vmem:[%s3971_s10 + $0xf8] sm:$0xff]  }
 0xa3b   : > { %1599 = vadd.xlane.f32.xlu0 %v1594_v3  ;;  %1897 = vmatpush1.bf16.msra.mxu1 %v2972_v24  ;;  %v3029_v24 = vld [vmem:[%s3971_s10 + $0x18] sm:$0xff]  }
 0xa3c   : > { %1898 = vmatprep.subr.bf16.mxu1 %v2980_v31  ;;  %v3031_v31 = vld [vmem:[%s3971_s10 + $0x50] sm:$0xff]  }
 0xa3f   : > { %1899 = vmatpush1.bf16.msra.mxu1 %v2978_v33  ;;  %v3033_v33 = vld [vmem:[%s3971_s10 + $0x10] sm:$0xff]  }
 0xa40   : > { %1900 = vmatprep.subr.bf16.mxu1 %v2986_v37  ;;  %v3037_v37 = vld [vmem:[%s3971_s10 + $0x8] sm:$0xff]  }
 0xa43   : > { %1901 = vmatpush1.bf16.msra.mxu1 %v2984_v36  ;;  %v3036_v36 = vld [vmem:[%s3971_s10 + $0xc8] sm:$0xff]  }
 0xa44   : > { %1902 = vmatprep.subr.bf16.mxu1 %v2992_v51  ;;  %v3039_v51 = vld [vmem:[%s3971_s10 + $0x40] sm:$0xff]  }
 0xa47   : > { %1903 = vmatpush1.bf16.msra.mxu1 %v2990_v30  ;;  %v3041_v30 = vld [vmem:[%s3971_s10] sm:$0xff]  }
 0xa48   : > { %1904 = vmatprep.subr.bf16.mxu1 %v2998_v42  ;;  %v1669_v42 = vld [vmem:[#allocation6] sm:$0xf] }
 0xa49   : > { %v1682_v45 = vrot.slane %v1669_v42, %v612_v14  ;;  %v1686_v47 = vrot.slane %v1669_v42, %v1685_v43 }
 0xa4b   : > { %1905 = vmatpush1.bf16.msra.mxu1 %v2996_v44  ;;  %v1674_v44 = vrot.slane %v1669_v42, %v604_v27 }
 0xa4c   : > { %1906 = vmatprep.subr.bf16.mxu1 %v3004_v46  ;;  %v1678_v46 = vrot.slane %v1669_v42, %v608_v23 }
 0xa4f   : > { %1907 = vmatpush1.bf16.msra.mxu1 %v3002_v48 }
 0xa50   : > { %1908 = vmatprep.subr.bf16.mxu1 %v3010_v50 }
 0xa53   : > { %1909 = vmatpush1.bf16.msra.mxu1 %v3008_v53 }
 0xa54   : > { %2724 = vmatprep.subr.bf16.mxu1 %v3012_v2 }
 0xac0   : > { %v1598_v18 = vpop.xlane.xlu0 %1597 }
 0xac1   : > { %v1602_v6 = vmul.f32 0.0078125, %v1598_v18  ;;  %v3018_v18 = vld [vmem:[%s3971_s10 + $0xb0] sm:$0xff]  }
 0xac3   : > { %v3689_v7 = vsub.f32 %v1593_v38, %v1602_v6  ;;  %v3019_v6 = vld [vmem:[%s3971_s10 + $0x68] sm:$0xff]  }
 0xac4   : > { %v1600_v8 = vpop.xlane.xlu0 %1599 }
 0xac5   : > { %v1603_v9 = vmul.f32 0.0078125, %v1600_v8  ;;  %v1606_v10 = vmul.f32 %v3689_v7, %v3689_v7  ;;  %v3021_v8 = vld [vmem:[%s3971_s10 + $0x28] sm:$0xff]  }
 0xac7   : > { %v3693_v11 = vsub.f32 %v1594_v3, %v1603_v9  ;;  %1608 = vadd.xlane.f32.xlu0 %v1606_v10  ;;  %v3013_v3 = vld [vmem:[%s3971_s10 + $0x38] sm:$0xff]   ;;  %v3022_v9 = vld [vmem:[%s3971_s10 + $0xa8] sm:$0xff]   ;;  %v3023_v10 = vld [vmem:[%s3971_s10 + $0x60] sm:$0xff]  }
 0xac9   : > { %v1607_v12 = vmul.f32 %v3693_v11, %v3693_v11 }
 0xacb   : > { %1610 = vadd.xlane.f32.xlu0 %v1607_v12  ;;  %v3025_v12 = vld [vmem:[%s3971_s10 + $0x20] sm:$0xff]  }
 0xb50   : > { %v1609_v54 = vpop.xlane.xlu0 %1608 }
 0xb51   : > { %v1612_v55 = vmul.f32 0.0078125, %v1609_v54 }
 0xb53   : > { %v1614_v16 = vadd.f32 1e-12, %v1612_v55 }
 0xb54   : > { %v1611_v21 = vpop.xlane.xlu0 %1610 }
 0xb55   : > { %3075 = vrsqrt.f32 %v1614_v16  ;;  %v1613_v26 = vmul.f32 0.0078125, %v1611_v21 }
 0xb57   : > { %v1615_v29 = vadd.f32 1e-12, %v1613_v26 }
 0xb59   : > { %3077 = vrsqrt.f32 %v1615_v29 }
 0xb62   : > { %v3076_v56 = vpop.eup %3075 }
 0xb63   : > { %v1618_v57 = vmul.f32 %v3076_v56, %v3689_v7  ;;  %v3020_v7 = vld [vmem:[%s3971_s10 + $0xe8] sm:$0xff]  }
 0xb65   : > { %v1626_v20 = vmul.f32 %v2594_v58, %v1618_v57 }
 0xb66   : > { %v3078_v59 = vpop.eup %3077 }
 0xb67   : > { %v1619_v60 = vmul.f32 %v3078_v59, %v3693_v11  ;;  %v3786_v63 = vadd.f32 %v2595_v61, %v1626_v20  ;;  %v3024_v11 = vld [vmem:[%s3971_s10 + $0xe0] sm:$0xff]  }
 0xb69   : > { %v1627_v62 = vmul.f32 %v2594_v58, %v1619_v60 }
 0xb6b   : > { %v3788_v35 = vadd.f32 %v2595_v61, %v1627_v62 }
 0xb6d   : > { %v1636_v38 = vpack.c.bf16 %v3788_v35, %v3786_v63 }
 0xb6f   : > { %1884 = vmatmul.mubr.bf16.vlgmr.msra.gmra.mxu0 %v1636_v38  ;;  %1927 = vmatmul.mubr.bf16.vlgmr.msra.gmra.mxu1 %v1636_v38 }
 0xb70   : > { %2703 = vmatpush3.bf16.msra.mxu0 %v3013_v3  ;;  %2725 = vmatpush3.bf16.msra.mxu1 %v3014_v0 }
 0xb71   : > { %2704 = vmatprep.subr.bf16.mxu0 %v3015_v4  ;;  %2726 = vmatprep.subr.bf16.mxu1 %v3016_v5 }
 0xb74   : > { %2705 = vmatpush3.bf16.msra.mxu0 %v3017_v17  ;;  %2727 = vmatpush3.bf16.msra.mxu1 %v3018_v18 }
 0xb75   : > { %2706 = vmatprep.subr.bf16.mxu0 %v3019_v6  ;;  %2728 = vmatprep.subr.bf16.mxu1 %v3020_v7 }
 0xb78   : > { %2707 = vmatpush3.bf16.msra.mxu0 %v3021_v8  ;;  %2729 = vmatpush3.bf16.msra.mxu1 %v3022_v9 }
 0xb79   : > { %2708 = vmatprep.subr.bf16.mxu0 %v3023_v10  ;;  %2730 = vmatprep.subr.bf16.mxu1 %v3024_v11 }
 0xb7c   : > { %2709 = vmatpush3.bf16.msra.mxu0 %v3025_v12  ;;  %2731 = vmatpush3.bf16.msra.mxu1 %v3026_v13 }
 0xb7d   : > { %2710 = vmatprep.subr.bf16.mxu0 %v3027_v15  ;;  %2732 = vmatprep.subr.bf16.mxu1 %v3028_v19 }
 0xb80   : > { %2711 = vmatpush3.bf16.msra.mxu0 %v3029_v24  ;;  %2733 = vmatpush3.bf16.msra.mxu1 %v3030_v28 }
 0xb81   : > { %2712 = vmatprep.subr.bf16.mxu0 %v3031_v31  ;;  %2734 = vmatprep.subr.bf16.mxu1 %v3032_v32 }
 0xb84   : > { %2713 = vmatpush3.bf16.msra.mxu0 %v3033_v33  ;;  %2735 = vmatpush3.bf16.msra.mxu1 %v3034_v25 }
 0xb85   : > { %2714 = vmatprep.subr.bf16.mxu0 %v3035_v34  ;;  %2736 = vmatprep.subr.bf16.mxu1 %v3036_v36 }
 0xb88   : > { %2715 = vmatpush3.bf16.msra.mxu0 %v3037_v37  ;;  %2737 = vmatpush3.bf16.msra.mxu1 %v3038_v39 }
 0xb89   : > { %2716 = vmatprep.subr.bf16.mxu0 %v3039_v51  ;;  %2738 = vmatprep.subr.bf16.mxu1 %v3040_v40 }
 0xb8c   : > { %2717 = vmatpush3.bf16.msra.mxu0 %v3041_v30  ;;  %2739 = vmatpush3.bf16.msra.mxu1 %v3042_v41 }
 0xc2f   : > { %v1885_v48 = vpop.f32.mrf.mxu0  ;;  %v1928_v49 = vpop.f32.mrf.mxu1 }
 0xc30   : > { %v3895_v50 = vadd.f32 %v1885_v48, %v1674_v44  ;;  %v3897_v52 = vadd.f32 %v1928_v49, %v1682_v45 }
 0xc31   : > { %v1887_v53 = vpop.f32.mrf.mxu0  ;;  %v1930_v54 = vpop.f32.mrf.mxu1 }
 0xc32   : > { %v1937_v55 = vmul.f32 %v3895_v50, %v3895_v50  ;;  %v1939_v27 = vmul.f32 %v3897_v52, %v3897_v52  ;;  %v3903_v16 = vadd.f32 %v1887_v53, %v1678_v46  ;;  %v3905_v14 = vadd.f32 %v1930_v54, %v1686_v47 }
 0xc33   : > { %v1889_v22 = vpop.f32.mrf.mxu0  ;;  %v1932_v23 = vpop.f32.mrf.mxu1 }
 0xc34   : > { %v1945_v21 = vmul.f32 %v1937_v55, %v3895_v50  ;;  %v1947_v26 = vmul.f32 %v1939_v27, %v3897_v52  ;;  %v1938_v29 = vmul.f32 %v3903_v16, %v3903_v16  ;;  %v1940_v56 = vmul.f32 %v3905_v14, %v3905_v14 }
 0xc35   : > { %v3913_v57 = vadd.f32 %v1889_v22, %v1674_v44  ;;  %v3915_v58 = vadd.f32 %v1932_v23, %v1682_v45  ;;  %v1891_v59 = vpop.f32.mrf.mxu0  ;;  %v1934_v60 = vpop.f32.mrf.mxu1 }
 0xc36   : > { %v1953_v20 = vmul.f32 0.044715, %v1945_v21  ;;  %v1955_v61 = vmul.f32 0.044715, %v1947_v26  ;;  %v1946_v62 = vmul.f32 %v1938_v29, %v3903_v16  ;;  %v1948_v38 = vmul.f32 %v1940_v56, %v3905_v14 }
 0xc37   : > { %v1941_v1 = vmul.f32 %v3913_v57, %v3913_v57  ;;  %v1943_v2 = vmul.f32 %v3915_v58, %v3915_v58  ;;  %v3923_v3 = vadd.f32 %v1891_v59, %v1678_v46  ;;  %v3925_v0 = vadd.f32 %v1934_v60, %v1686_v47 }
 0xc38   : > { %v1961_v4 = vadd.f32 %v1953_v20, %v3895_v50  ;;  %v1963_v5 = vadd.f32 %v1955_v61, %v3897_v52  ;;  %v1954_v17 = vmul.f32 0.044715, %v1946_v62  ;;  %v1956_v18 = vmul.f32 0.044715, %v1948_v38 }
 0xc39   : > { %v1949_v6 = vmul.f32 %v1941_v1, %v3913_v57  ;;  %v1951_v7 = vmul.f32 %v1943_v2, %v3915_v58  ;;  %v1942_v8 = vmul.f32 %v3923_v3, %v3923_v3  ;;  %v1944_v9 = vmul.f32 %v3925_v0, %v3925_v0 }
 0xc3a   : > { %v1969_v10 = vmul.f32 0.7978846, %v1961_v4  ;;  %v1971_v11 = vmul.f32 0.7978846, %v1963_v5  ;;  %v1962_v12 = vadd.f32 %v1954_v17, %v3903_v16  ;;  %v1964_v13 = vadd.f32 %v1956_v18, %v3905_v14 }
 0xc3b   : > { %v1957_v15 = vmul.f32 0.044715, %v1949_v6  ;;  %v1959_v19 = vmul.f32 0.044715, %v1951_v7  ;;  %v1950_v24 = vmul.f32 %v1942_v8, %v3923_v3  ;;  %v1952_v28 = vmul.f32 %v1944_v9, %v3925_v0 }
 0xc3c   : > { %3079 = vtanh.f32 %v1969_v10  ;;  %v1970_v31 = vmul.f32 0.7978846, %v1962_v12  ;;  %v1972_v32 = vmul.f32 0.7978846, %v1964_v13 }
 0xc3d   : > { %3081 = vtanh.f32 %v1971_v11  ;;  %v1965_v33 = vadd.f32 %v1957_v15, %v3913_v57  ;;  %v1967_v25 = vadd.f32 %v1959_v19, %v3915_v58  ;;  %v1958_v34 = vmul.f32 0.044715, %v1950_v24  ;;  %v2628_v11 = vld [vmem:[#allocation7] ss:$0 sm:$0xff] }
 0xc3e   : > { %3083 = vtanh.f32 %v1970_v31  ;;  %v1960_v36 = vmul.f32 0.044715, %v1952_v28 }
 0xc3f   : > { %3085 = vtanh.f32 %v1972_v32  ;;  %v1973_v37 = vmul.f32 0.7978846, %v1965_v33  ;;  %v1975_v39 = vmul.f32 0.7978846, %v1967_v25  ;;  %v1966_v51 = vadd.f32 %v1958_v34, %v3923_v3 }
 0xc40   : > { %v1968_v40 = vadd.f32 %v1960_v36, %v3925_v0 }
 0xc41   : > { %3087 = vtanh.f32 %v1973_v37  ;;  %v1974_v30 = vmul.f32 0.7978846, %v1966_v51 }
 0xc42   : > { %3089 = vtanh.f32 %v1975_v39  ;;  %v1976_v41 = vmul.f32 0.7978846, %v1968_v40 }
 0xc43   : > { %3091 = vtanh.f32 %v1974_v30 }
 0xc44   : > { %3093 = vtanh.f32 %v1976_v41 }
 0xc49   : > { %v3080_v42 = vpop.eup %3079 }
 0xc4a   : > { %v3082_v43 = vpop.eup %3081  ;;  %v1985_v48 = vadd.f32 1.0, %v3080_v42 }
 0xc4b   : > { %v3084_v44 = vpop.eup %3083  ;;  %v1987_v54 = vadd.f32 1.0, %v3082_v43 }
 0xc4c   : > { %v3086_v45 = vpop.eup %3085  ;;  %v1986_v46 = vadd.f32 1.0, %v3084_v44  ;;  %v1993_v56 = vmul.f32 0.5, %v1985_v48  ;;  %v2661_v48 = vld [vmem:[#allocation9] ss:$0 sm:$0xff] }
 0xc4d   : > { %v1988_v49 = vadd.f32 1.0, %v3086_v45  ;;  %v1995_v61 = vmul.f32 0.5, %v1987_v54 }
 0xc4e   : > { %v3088_v47 = vpop.eup %3087  ;;  %v1994_v29 = vmul.f32 0.5, %v1986_v46  ;;  %v2001_v17 = vmul.f32 %v1993_v56, %v3895_v50 }
 0xc4f   : > { %v3090_v53 = vpop.eup %3089  ;;  %v1989_v55 = vadd.f32 1.0, %v3088_v47  ;;  %v1996_v20 = vmul.f32 0.5, %v1988_v49  ;;  %v2003_v7 = vmul.f32 %v1995_v61, %v3897_v52 }
 0xc50   : > { %v3092_v27 = vpop.eup %3091  ;;  %v1991_v22 = vadd.f32 1.0, %v3090_v53  ;;  %v2002_v4 = vmul.f32 %v1994_v29, %v3903_v16  ;;  %v2662_v53 = vld [vmem:[#allocation10] ss:$0 sm:$0xff] }
 0xc51   : > { %v3094_v23 = vpop.eup %3093  ;;  %v1997_v21 = vmul.f32 0.5, %v1989_v55  ;;  %v1990_v26 = vadd.f32 1.0, %v3092_v27  ;;  %v2004_v18 = vmul.f32 %v1996_v20, %v3905_v14 }
 0xc52   : > { %v1999_v59 = vmul.f32 0.5, %v1991_v22  ;;  %v1992_v60 = vadd.f32 1.0, %v3094_v23 }
 0xc53   : > { %v1998_v62 = vmul.f32 0.5, %v1990_v26  ;;  %v2005_v38 = vmul.f32 %v1997_v21, %v3913_v57 }
 0xc54   : > { %v2000_v1 = vmul.f32 0.5, %v1992_v60  ;;  %v2007_v2 = vmul.f32 %v1999_v59, %v3915_v58 }
 0xc55   : > { %v2006_v5 = vmul.f32 %v1998_v62, %v3923_v3  ;;  %v2009_v10 = vpack.c.bf16 %v2005_v38, %v2001_v17 }
 0xc56   : > { %v2008_v6 = vmul.f32 %v2000_v1, %v3925_v0  ;;  %v2011_v57 = vpack.c.bf16 %v2007_v2, %v2003_v7 }
 0xc57   : > { %v2010_v8 = vpack.c.bf16 %v2006_v5, %v2002_v4 }
 0xc58   : > { %v2012_v9 = vpack.c.bf16 %v2008_v6, %v2004_v18 }
 0xc59   : > { %2308 = vmatprep.mubr.bf16.mxu0 %v2010_v8 }
 0xc5a   : > { %2349 = vmatprep.mubr.bf16.mxu1 %v2012_v9  ;;  %2309 = vmatmul.mubr.bf16.vlgmr.msra.gmra.mxu0 %v2009_v10 }
 0xc5b   : > { %2350 = vmatmul.mubr.bf16.vlgmr.msra.gmra.mxu1 %v2011_v57 }
 0xd1a   : > { %v2718_v58 = vpop.f32.mrf.mxu0 }
 0xd1b   : > { %v2740_v16 = vpop.f32.mrf.mxu1 }
 0xd1c   : > { %v2719_v3 = vpop.f32.mrf.mxu0 }
 0xd1d   : > { %v2720_v12 = vadd.f32 %v2719_v3, %v2718_v58  ;;  %v2741_v50 = vpop.f32.mrf.mxu1 }
 0xd1e   : > { %v2721_v13 = vpop.f32.mrf.mxu0  ;;  %v2742_v15 = vadd.f32 %v2741_v50, %v2740_v16 }
 0xd1f   : > { %v2311_v14 = vadd.f32 %v2720_v12, %v2628_v11  ;;  %v2743_v0 = vpop.f32.mrf.mxu1 }
 0xd20   : > { %v2722_v19 = vpop.f32.mrf.mxu0 }
 0xd21   : > { %v2352_v52 = vadd.f32 %v2742_v15, %v2311_v14  ;;  %v2723_v24 = vadd.f32 %v2722_v19, %v2721_v13  ;;  %v2744_v28 = vpop.f32.mrf.mxu1 }
 0xd22   : > { %v2745_v32 = vadd.f32 %v2744_v28, %v2743_v0 }
 0xd23   : > { %v2314_v31 = vadd.f32 %v2723_v24, %v2628_v11  ;;  %v2358_v33 = vadd.f32 %v2352_v52, %v3786_v63 }
 0xd25   : > { %v2355_v25 = vadd.f32 %v2745_v32, %v2314_v31  ;;  %2362 = vadd.xlane.f32.xlu1 %v2358_v33 }
 0xd27   : > { %v2359_v34 = vadd.f32 %v2355_v25, %v3788_v35 }
 0xd29   : > { %2364 = vadd.xlane.f32.xlu0 %v2359_v34 }
 0xdae   : > { %v2363_v36 = vpop.xlane.xlu1 %2362 }
 0xdaf   : > { %v2366_v37 = vmul.f32 0.0078125, %v2363_v36 }
 0xdb1   : > { %v2368_v39 = vsub.f32 %v2358_v33, %v2366_v37 }
 0xdb2   : > { %v2365_v51 = vpop.xlane.xlu0 %2364 }
 0xdb3   : > { %v2367_v40 = vmul.f32 0.0078125, %v2365_v51  ;;  %v2370_v30 = vmul.f32 %v2368_v39, %v2368_v39 }
 0xdb5   : > { %v2369_v41 = vsub.f32 %v2359_v34, %v2367_v40  ;;  %2372 = vadd.xlane.f32.xlu0 %v2370_v30 }
 0xdb7   : > { %v2371_v42 = vmul.f32 %v2369_v41, %v2369_v41 }
 0xdb9   : > { %2374 = vadd.xlane.f32.xlu0 %v2371_v42 }
 0xe3e   : > { %v2373_v43 = vpop.xlane.xlu0 %2372 }
 0xe3f   : > { %v2376_v44 = vmul.f32 0.0078125, %v2373_v43 }
 0xe41   : > { %v2378_v45 = vadd.f32 1e-12, %v2376_v44 }
 0xe42   : > { %v2375_v63 = vpop.xlane.xlu0 %2374 }
 0xe43   : > { %3095 = vrsqrt.f32 %v2378_v45  ;;  %v2377_v46 = vmul.f32 0.0078125, %v2375_v63 }
 0xe45   : > { %v2379_v47 = vadd.f32 1e-12, %v2377_v46 }
 0xe47   : > { %3097 = vrsqrt.f32 %v2379_v47 }
 0xe50   : > { %v3096_v35 = vpop.eup %3095 }
 0xe51   : > { %v2382_v49 = vmul.f32 %v3096_v35, %v2368_v39 }
 0xe53   : > { %v2390_v54 = vmul.f32 %v2661_v48, %v2382_v49 }
 0xe54   : > { %v3098_v55 = vpop.eup %3097 }
 0xe55   : > { %v2398_v27 = vadd.f32 %v2662_v53, %v2390_v54  ;;  %v2383_v22 = vmul.f32 %v3098_v55, %v2369_v41 }
 0xe57   : > { %2400 = vst [vmem:[%s561_s30] sm:$0xff] %v2398_v27  ;;  %v2391_v23 = vmul.f32 %v2661_v48, %v2383_v22 }
 0xe59   : > { %v2399_v21 = vadd.f32 %v2662_v53, %v2391_v23 }
 0xe5b   : > { %2401 = vst [vmem:[%s561_s30 + $0x8] sm:$0xff] %v2399_v21 }
 0xe5c PF: > { %s28_s29 = sadd.s32 1, %s3277_s29  }
 0xe5d   : > { %p25_p0 = scmp.ge.s32.totalorder %s28_s29, 4  }
 0xe5f   :  { %27 = sbr.rel (!%p25_p0) target bundleno = 4 (0x4), region = 134 }
 0xe64   :  { %2424 = vsyncpa [#allocation3], 1 }
 0xe65   :  { %2426 = vsyncpa [#allocation3 + $0x1], 1 }
 0xe66   :  { %2427 = vsyncpa [#allocation5], 1 }
 0xe67   :  { %2428 = vsyncpa [#allocation8], 1 }
 0xe68   :  { %2429 = vsyncpa [#allocation11], 1 }

</bundles_post_ra>
